<compile_context>
chip_gen: v7x
topology: tpu7x:2x2x1
jax: 0.10.0
libtpu: 0.0.40
codegen_flags: <defaults>
</compile_context>

<pallas_src>
import math
from functools import partial

import jax
import jax.numpy as jnp
from jax.experimental import pallas as pl
from jax.experimental.pallas import tpu as pltpu

NEG_INF = -1e9       # finite "-inf": identical result for the given masks, never NaN
LN_EPS = 1e-5
MXU_DTYPE = jnp.bfloat16   # MXU operand dtype; accumulation stays f32


# ----------------------------------------------------------------------------
# In-kernel helpers
# ----------------------------------------------------------------------------

def _layernorm(z, g, b, eps):
    mu = jnp.mean(z, axis=-1, keepdims=True)
    zc = z - mu
    var = jnp.mean(zc * zc, axis=-1, keepdims=True)
    return zc * jax.lax.rsqrt(var + eps) * g + b


def _mxu_dot(a, w):
    return jnp.dot(a.astype(MXU_DTYPE), w.astype(MXU_DTYPE),
                   preferred_element_type=jnp.float32)


# ----------------------------------------------------------------------------
# Pallas kernels
# ----------------------------------------------------------------------------

def _mha_ln_kernel(*refs, nhead, scale, causal, use_pad, eps):
    """Fused: (q/k/v proj) + multi-head attention + out proj + residual add + LayerNorm.

    One grid step == one batch element.  Weights come pre-split per head:
      wq/wk/wv: (nhead, D, Dh), bq/bk/bv: (nhead, 1, Dh), wo: (nhead, Dh, D), bo: (1, D).
    """
    if use_pad:
        (q_src_ref, q_pos_ref, kv_src_ref, kv_pos_ref, pad_ref,
         wq_ref, wk_ref, wv_ref, bq_ref, bk_ref, bv_ref,
         wo_ref, bo_ref, g_ref, b_ref, o_ref) = refs
    else:
        (q_src_ref, q_pos_ref, kv_src_ref, kv_pos_ref,
         wq_ref, wk_ref, wv_ref, bq_ref, bk_ref, bv_ref,
         wo_ref, bo_ref, g_ref, b_ref, o_ref) = refs
        pad_ref = None

    resid = q_src_ref[0]                        # (Lq, D)  (residual input)
    q_in = resid + q_pos_ref[0]                 # (Lq, D)
    k_in = kv_src_ref[0] + kv_pos_ref[0]        # (Lk, D)
    v_in = kv_src_ref[0]                        # (Lk, D)

    Lq, D = q_in.shape
    Lk = k_in.shape[0]

    # Additive attention bias, generated in-kernel (never materialized in HBM).
    bias = None
    if causal:
        row = jax.lax.broadcasted_iota(jnp.int32, (Lq, Lk), 0)
        col = jax.lax.broadcasted_iota(jnp.int32, (Lq, Lk), 1)
        bias = jnp.where(col <= row, 0.0, NEG_INF).astype(jnp.float32)
    if pad_ref is not None:
        pad_bias = pad_ref[0] * NEG_INF         # (1, Lk), 1.0 == padded key
        bias = pad_bias if bias is None else bias + pad_bias

    q_in_m = q_in.astype(MXU_DTYPE)
    k_in_m = k_in.astype(MXU_DTYPE)
    v_in_m = v_in.astype(MXU_DTYPE)

    attn = jnp.zeros((Lq, D), jnp.float32)
    for h in range(nhead):                      # static unroll: all heads in one invocation
        q_h = jnp.dot(q_in_m, wq_ref[h].astype(MXU_DTYPE),
                      preferred_element_type=jnp.float32) + bq_ref[h]       # (Lq, Dh)
        k_h = jnp.dot(k_in_m, wk_ref[h].astype(MXU_DTYPE),
                      preferred_element_type=jnp.float32) + bk_ref[h]       # (Lk, Dh)
        v_h = jnp.dot(v_in_m, wv_ref[h].astype(MXU_DTYPE),
                      preferred_element_type=jnp.float32) + bv_ref[h]       # (Lk, Dh)
        s = jax.lax.dot_general(q_h.astype(MXU_DTYPE), k_h.astype(MXU_DTYPE),
                                (((1,), (1,)), ((), ())),
                                preferred_element_type=jnp.float32) * scale  # (Lq, Lk)
        if bias is not None:
            s = s + bias
        m = jnp.max(s, axis=-1, keepdims=True)
        p = jnp.exp(s - m)
        denom = jnp.sum(p, axis=-1, keepdims=True)
        p = p * pl.reciprocal(denom, approx=True)
        o_h = jnp.dot(p.astype(MXU_DTYPE), v_h.astype(MXU_DTYPE),
                      preferred_element_type=jnp.float32)                   # (Lq, Dh)
        attn = attn + jnp.dot(o_h.astype(MXU_DTYPE), wo_ref[h].astype(MXU_DTYPE),
                              preferred_element_type=jnp.float32)           # (Lq, D)
    attn = attn + bo_ref[...]

    o_ref[0] = _layernorm(resid + attn, g_ref[...], b_ref[...], eps)


def _ffn_ln_kernel(x_ref, w1_ref, b1_ref, w2_ref, b2_ref, g_ref, b_ref, o_ref, *, eps):
    """Fused: Linear -> ReLU -> Linear -> residual add -> LayerNorm (row-wise)."""
    x = x_ref[...]                                              # (M, D)
    h = _mxu_dot(x, w1_ref[...]) + b1_ref[...]
    h = jnp.maximum(h, 0.0)
    y = _mxu_dot(h, w2_ref[...]) + b2_ref[...]
    o_ref[...] = _layernorm(x + y, g_ref[...], b_ref[...], eps)


def _add_ln_kernel(x_ref, y_ref, g_ref, b_ref, o_ref, *, eps):
    o_ref[...] = _layernorm(x_ref[...] + y_ref[...], g_ref[...], b_ref[...], eps)


def _ln_kernel(x_ref, g_ref, b_ref, o_ref, *, eps):
    o_ref[...] = _layernorm(x_ref[...], g_ref[...], b_ref[...], eps)


def _mlp3_kernel(x_ref, w0_ref, b0_ref, w1_ref, b1_ref, w2_ref, b2_ref, o_ref):
    """Fused MLP(d, d, num_classes, 3): Linear->ReLU->Linear->ReLU->Linear."""
    h = jnp.maximum(_mxu_dot(x_ref[...], w0_ref[...]) + b0_ref[...], 0.0)
    h = jnp.maximum(_mxu_dot(h, w1_ref[...]) + b1_ref[...], 0.0)
    o_ref[...] = _mxu_dot(h, w2_ref[...]) + b2_ref[...]


# ----------------------------------------------------------------------------
# Pallas wrappers
# ----------------------------------------------------------------------------

def fused_mha_add_ln(q_src, q_pos, kv_src, kv_pos, key_pad, attn_p, gamma, beta,
                     *, nhead, causal):
    """LayerNorm(q_src + MHA(q_src+q_pos, kv_src+kv_pos, kv_src)) per batch element."""
    B, Lq, D = q_src.shape
    Lk = kv_src.shape[1]
    Dh = D // nhead
    use_pad = key_pad is not None

    seq3 = lambda L: pl.BlockSpec((1, L, D), lambda b: (b, 0, 0))
    full3 = lambda s: pl.BlockSpec(s, lambda b: (0, 0, 0))
    full2 = lambda s: pl.BlockSpec(s, lambda b: (0, 0))

    in_specs = [seq3(Lq), seq3(Lq), seq3(Lk), seq3(Lk)]
    args = [q_src, q_pos, kv_src, kv_pos]
    if use_pad:
        in_specs.append(pl.BlockSpec((1, 1, Lk), lambda b: (b, 0, 0)))
        args.append(key_pad)
    in_specs += [full3((nhead, D, Dh)), full3((nhead, D, Dh)), full3((nhead, D, Dh)),
                 full3((nhead, 1, Dh)), full3((nhead, 1, Dh)), full3((nhead, 1, Dh)),
                 full3((nhead, Dh, D)), full2((1, D)), full2((1, D)), full2((1, D))]
    args += [attn_p["wq"], attn_p["wk"], attn_p["wv"],
             attn_p["bq"], attn_p["bk"], attn_p["bv"],
             attn_p["wo"], attn_p["bo"], gamma, beta]

    return pl.pallas_call(
        partial(_mha_ln_kernel, nhead=nhead, scale=1.0 / math.sqrt(Dh),
                causal=causal, use_pad=use_pad, eps=LN_EPS),
        grid=(B,),
        in_specs=in_specs,
        out_specs=pl.BlockSpec((1, Lq, D), lambda b: (b, 0, 0)),
        out_shape=jax.ShapeDtypeStruct((B, Lq, D), jnp.float32),
        compiler_params=pltpu.CompilerParams(dimension_semantics=("parallel",)),
    )(*args)


def pallas_ffn_add_layernorm(x2d, w1, b1, w2, b2, gamma, beta):
    M, D = x2d.shape
    return pl.pallas_call(
        partial(_ffn_ln_kernel, eps=LN_EPS),
        out_shape=jax.ShapeDtypeStruct((M, D), jnp.float32),
    )(x2d, w1, b1, w2, b2, gamma, beta)


def pallas_add_layernorm(x2d, y2d, gamma, beta):
    M, D = x2d.shape
    return pl.pallas_call(
        partial(_add_ln_kernel, eps=LN_EPS),
        out_shape=jax.ShapeDtypeStruct((M, D), jnp.float32),
    )(x2d, y2d, gamma, beta)


def pallas_layernorm(x2d, gamma, beta):
    M, D = x2d.shape
    return pl.pallas_call(
        partial(_ln_kernel, eps=LN_EPS),
        out_shape=jax.ShapeDtypeStruct((M, D), jnp.float32),
    )(x2d, gamma, beta)


def pallas_mlp3(x2d, pp):
    M, _ = x2d.shape
    N = pp["w2"].shape[1]
    return pl.pallas_call(
        _mlp3_kernel,
        out_shape=jax.ShapeDtypeStruct((M, N), jnp.float32),
    )(x2d, pp["w0"], pp["b0"], pp["w1"], pp["b1"], pp["w2"], pp["b2"])


# ----------------------------------------------------------------------------
# Model (glue in plain JAX; all hot compute inside the fused Pallas kernels)
# ----------------------------------------------------------------------------

def decode(tokens, memory, key_pad, pos_embed, params, input_type, nhead):
    """One TransformerDecoder pass + prediction MLP for a given input_type."""
    ep = params["embedding"]
    B, L = tokens.shape
    D = ep["word_emb"].shape[1]

    # DecoderEmbeddings: word-emb gather (glue) + per-type pos emb, fused add + LayerNorm.
    word = jnp.take(ep["word_emb"], tokens, axis=0)                       # (B, L, D)
    qpos = jnp.broadcast_to(ep[f"{input_type}_pos_emb"][:L][None], (B, L, D))
    out = pallas_add_layernorm(word.reshape(B * L, D), qpos.reshape(B * L, D),
                               ep["ln_g"], ep["ln_b"]).reshape(B, L, D)

    for lp in params[f"{input_type}_decoder"]:
        # self-attention (+ residual + norm1); causal mask generated in-kernel
        out = fused_mha_add_ln(out, qpos, out, qpos, None, lp["self_attn"],
                               lp["norm1_g"], lp["norm1_b"], nhead=nhead, causal=True)
        # cross-attention (+ residual + norm2); key-padding mask applied in-kernel
        out = fused_mha_add_ln(out, qpos, memory, pos_embed, key_pad, lp["cross_attn"],
                               lp["norm2_g"], lp["norm2_b"], nhead=nhead, causal=False)
        # feed-forward (+ residual + norm3)
        out = pallas_ffn_add_layernorm(out.reshape(B * L, D),
                                       lp["lin1_w"], lp["lin1_b"],
                                       lp["lin2_w"], lp["lin2_b"],
                                       lp["norm3_g"], lp["norm3_b"]).reshape(B, L, D)

    # final shared decoder norm (hs[-1] of the torch decoder), then fused prediction MLP
    out2 = pallas_layernorm(out.reshape(B * L, D),
                            params["decoder_norm_g"], params["decoder_norm_b"])
    pred = pallas_mlp3(out2, params[f"{input_type}_pred"])
    return pred.reshape(B, L, -1)


def transformer_forward(params, src, mask, pos_embed, seqs, *, nhead):
    """Training-mode forward of `Transformer`: returns (pred_pt, pred_poly, pred_rec)."""
    B, C, H, W = src.shape
    S = H * W
    memory = src.reshape(B, C, S).transpose(0, 2, 1)        # (B, S, C)
    pos = pos_embed.reshape(B, C, S).transpose(0, 2, 1)     # (B, S, C)
    # key padding mask shared by all three decodes: (B, 1, S) float, 1.0 == padded
    key_pad = mask.reshape(B, 1, S).astype(jnp.float32)

    pred_pt = decode(seqs[0], memory, key_pad, pos, params, "pt", nhead)
    pred_poly = decode(seqs[1], memory, key_pad, pos, params, "poly", nhead)
    pred_rec = decode(seqs[2], memory, key_pad, pos, params, "rec", nhead)
    return pred_pt, pred_poly, pred_rec


# ----------------------------------------------------------------------------
# Deterministic synthetic parameter init (stored in kernel-consumed layouts)
# ----------------------------------------------------------------------------

def _rand(key, shape, scale=0.05):
    return scale * jax.random.normal(key, shape, dtype=jnp.float32)


def init_attn(key, d, nhead):
    dh = d // nhead
    k = jax.random.split(key, 8)
    # Per-head slabs, already "transposed" so the kernel does x @ w[h]
    return {
        "wq": _rand(k[0], (nhead, d, dh)), "bq": _rand(k[1], (nhead, 1, dh)),
        "wk": _rand(k[2], (nhead, d, dh)), "bk": _rand(k[3], (nhead, 1, dh)),
        "wv": _rand(k[4], (nhead, d, dh)), "bv": _rand(k[5], (nhead, 1, dh)),
        "wo": _rand(k[6], (nhead, dh, d)), "bo": _rand(k[7], (1, d)),
    }


def init_layer(key, d, ff, nhead):
    k = jax.random.split(key, 6)
    ones = lambda n: jnp.ones((1, n), jnp.float32)
    zeros = lambda n: jnp.zeros((1, n), jnp.float32)
    return {
        "self_attn": init_attn(k[0], d, nhead),
        "cross_attn": init_attn(k[1], d, nhead),
        "lin1_w": _rand(k[2], (d, ff)), "lin1_b": _rand(k[3], (1, ff)),
        "lin2_w": _rand(k[4], (ff, d)), "lin2_b": _rand(k[5], (1, d)),
        "norm1_g": ones(d), "norm1_b": zeros(d),
        "norm2_g": ones(d), "norm2_b": zeros(d),
        "norm3_g": ones(d), "norm3_b": zeros(d),
    }


def init_mlp(key, d, num_classes):
    k = jax.random.split(key, 6)
    return {
        "w0": _rand(k[0], (d, d)), "b0": _rand(k[1], (1, d)),
        "w1": _rand(k[2], (d, d)), "b1": _rand(k[3], (1, d)),
        "w2": _rand(k[4], (d, num_classes)), "b2": _rand(k[5], (1, num_classes)),
    }


def init_transformer(key, d, nhead, num_layers, ff, num_classes, max_pos):
    keys = jax.random.split(key, 11)
    emb = {
        "word_emb": _rand(keys[0], (num_classes, d)),
        "pt_pos_emb": _rand(keys[1], (max_pos, d)),
        "poly_pos_emb": _rand(keys[2], (max_pos, d)),
        "rec_pos_emb": _rand(keys[3], (max_pos, d)),
        "other_pos_emb": _rand(keys[4], (max_pos, d)),
        "ln_g": jnp.ones((1, d), jnp.float32), "ln_b": jnp.zeros((1, d), jnp.float32),
    }
    return {
        "embedding": emb,
        "decoder_norm_g": jnp.ones((1, d), jnp.float32),
        "decoder_norm_b": jnp.zeros((1, d), jnp.float32),
        "pt_decoder": [init_layer(k, d, ff, nhead) for k in jax.random.split(keys[5], num_layers)],
        "poly_decoder": [init_layer(k, d, ff, nhead) for k in jax.random.split(keys[6], num_layers)],
        "rec_decoder": [init_layer(k, d, ff, nhead) for k in jax.random.split(keys[7], num_layers)],
        "pt_pred": init_mlp(keys[8], d, num_classes),
        "poly_pred": init_mlp(keys[9], d, num_classes),
        "rec_pred": init_mlp(keys[10], d, num_classes),
    }


# ----------------------------------------------------------------------------
# Main
# ----------------------------------------------------------------------------

if __name__ == "__main__":
    D_MODEL = 32
    NHEAD = 4
    NUM_LAYERS = 2
    DIM_FF = 64
    NUM_CLASSES = 40
    MAX_POS = 16
    B, H, W = 2, 4, 4          # memory length S = 16
    L = 8                      # target sequence length

    root = jax.random.PRNGKey(0)
    k_par, k_src, k_pos, k_s0, k_s1, k_s2 = jax.random.split(root, 6)

    params = init_transformer(k_par, D_MODEL, NHEAD, NUM_LAYERS, DIM_FF, NUM_CLASSES, MAX_POS)

    src = jax.random.normal(k_src, (B, D_MODEL, H, W), dtype=jnp.float32)        # NCHW
    pos_embed = jax.random.normal(k_pos, (B, D_MODEL, H, W), dtype=jnp.float32)  # NCHW
    # key padding mask: True = padded; pad the last two spatial positions of each image
    mask = jnp.zeros((B, H, W), dtype=bool).at[:, -1, -2:].set(True)

    seq_pt = jax.random.randint(k_s0, (B, L), 0, NUM_CLASSES)
    seq_poly = jax.random.randint(k_s1, (B, L), 0, NUM_CLASSES)
    seq_rec = jax.random.randint(k_s2, (B, L), 0, NUM_CLASSES)

    fwd = jax.jit(partial(transformer_forward, nhead=NHEAD))
    pred_pt, pred_poly, pred_rec = fwd(params, src, mask, pos_embed,
                                       (seq_pt, seq_poly, seq_rec))
    jax.block_until_ready((pred_pt, pred_poly, pred_rec))

    assert pred_pt.shape == (B, L, NUM_CLASSES)
    assert pred_poly.shape == (B, L, NUM_CLASSES)
    assert pred_rec.shape == (B, L, NUM_CLASSES)
    assert jnp.all(jnp.isfinite(pred_pt)) and jnp.all(jnp.isfinite(pred_poly)) \
        and jnp.all(jnp.isfinite(pred_rec))
    print("KERNEL_OK")
</pallas_src>

<mosaic_0001>
module attributes {stable_mosaic.version = 11 : i64} {
  func.func @_add_ln_kernel(%arg0: memref<16x32xf32, #tpu.memory_space<vmem>>, %arg1: memref<16x32xf32, #tpu.memory_space<vmem>>, %arg2: memref<1x32xf32, #tpu.memory_space<vmem>>, %arg3: memref<1x32xf32, #tpu.memory_space<vmem>>, %arg4: memref<16x32xf32, #tpu.memory_space<vmem>>) attributes {dimension_semantics = [], scalar_prefetch = 0 : i64, scratch_operands = 0 : i64, tpu.core_type = #tpu.core_type<tc>} {
    %c0 = arith.constant 0 : index
    %c0_0 = arith.constant 0 : index
    %0 = vector.load %arg0[%c0, %c0_0] : memref<16x32xf32, #tpu.memory_space<vmem>>, vector<16x32xf32>
    %c0_1 = arith.constant 0 : index
    %c0_2 = arith.constant 0 : index
    %1 = vector.load %arg1[%c0_1, %c0_2] : memref<16x32xf32, #tpu.memory_space<vmem>>, vector<16x32xf32>
    %2 = arith.addf %0, %1 : vector<16x32xf32>
    %c0_3 = arith.constant 0 : index
    %c0_4 = arith.constant 0 : index
    %3 = vector.load %arg2[%c0_3, %c0_4] : memref<1x32xf32, #tpu.memory_space<vmem>>, vector<1x32xf32>
    %c0_5 = arith.constant 0 : index
    %c0_6 = arith.constant 0 : index
    %4 = vector.load %arg3[%c0_5, %c0_6] : memref<1x32xf32, #tpu.memory_space<vmem>>, vector<1x32xf32>
    %cst = arith.constant dense<0.000000e+00> : vector<16xf32>
    %5 = vector.multi_reduction <add>, %2, %cst [1] : vector<16x32xf32> to vector<16xf32>
    %6 = vector.shape_cast %5 : vector<16xf32> to vector<16x1xf32>
    %cst_7 = arith.constant 3.200000e+01 : f32
    %7 = vector.broadcast %cst_7 : f32 to vector<16x1xf32>
    %8 = arith.divf %6, %7 : vector<16x1xf32>
    %9 = vector.broadcast %8 : vector<16x1xf32> to vector<16x32xf32>
    %10 = arith.subf %2, %9 : vector<16x32xf32>
    %11 = arith.mulf %10, %10 : vector<16x32xf32>
    %cst_8 = arith.constant dense<0.000000e+00> : vector<16xf32>
    %12 = vector.multi_reduction <add>, %11, %cst_8 [1] : vector<16x32xf32> to vector<16xf32>
    %13 = vector.shape_cast %12 : vector<16xf32> to vector<16x1xf32>
    %cst_9 = arith.constant 3.200000e+01 : f32
    %14 = vector.broadcast %cst_9 : f32 to vector<16x1xf32>
    %15 = arith.divf %13, %14 : vector<16x1xf32>
    %cst_10 = arith.constant 9.99999974E-6 : f32
    %16 = vector.broadcast %cst_10 : f32 to vector<16x1xf32>
    %17 = arith.addf %15, %16 : vector<16x1xf32>
    %18 = math.rsqrt %17 : vector<16x1xf32>
    %19 = vector.broadcast %18 : vector<16x1xf32> to vector<16x32xf32>
    %20 = arith.mulf %10, %19 : vector<16x32xf32>
    %21 = vector.broadcast %3 : vector<1x32xf32> to vector<16x32xf32>
    %22 = arith.mulf %20, %21 : vector<16x32xf32>
    %23 = vector.broadcast %4 : vector<1x32xf32> to vector<16x32xf32>
    %24 = arith.addf %22, %23 : vector<16x32xf32>
    %c0_11 = arith.constant 0 : index
    %c0_12 = arith.constant 0 : index
    %25 = vector.load %arg4[%c0_11, %c0_12] : memref<16x32xf32, #tpu.memory_space<vmem>>, vector<16x32xf32>
    tpu.vector_store %arg4[%c0_11, %c0_12], %24 {strides = array<i32>} : memref<16x32xf32, #tpu.memory_space<vmem>>, vector<16x32xf32>,
    return
  }
}

module attributes {stable_mosaic.version = 11 : i64} {
  func.func @_mha_ln_kernel(%arg0: i32, %arg1: memref<1x8x32xf32, #tpu.memory_space<vmem>>, %arg2: memref<1x8x32xf32, #tpu.memory_space<vmem>>, %arg3: memref<1x8x32xf32, #tpu.memory_space<vmem>>, %arg4: memref<1x8x32xf32, #tpu.memory_space<vmem>>, %arg5: memref<4x32x8xf32, #tpu.memory_space<vmem>>, %arg6: memref<4x32x8xf32, #tpu.memory_space<vmem>>, %arg7: memref<4x32x8xf32, #tpu.memory_space<vmem>>, %arg8: memref<4x1x8xf32, #tpu.memory_space<vmem>>, %arg9: memref<4x1x8xf32, #tpu.memory_space<vmem>>, %arg10: memref<4x1x8xf32, #tpu.memory_space<vmem>>, %arg11: memref<4x8x32xf32, #tpu.memory_space<vmem>>, %arg12: memref<1x32xf32, #tpu.memory_space<vmem>>, %arg13: memref<1x32xf32, #tpu.memory_space<vmem>>, %arg14: memref<1x32xf32, #tpu.memory_space<vmem>>, %arg15: memref<1x8x32xf32, #tpu.memory_space<vmem>>) attributes {dimension_semantics = [#tpu.dimension_semantics<parallel>], iteration_bounds = array<i64: 2>, scalar_prefetch = 0 : i64, scratch_operands = 0 : i64, tpu.core_type = #tpu.core_type<tc>, window_params = [{transform_indices = @transform_0, window_bounds = array<i64: 1, 8, 32>}, {transform_indices = @transform_1, window_bounds = array<i64: 1, 8, 32>}, {transform_indices = @transform_2, window_bounds = array<i64: 1, 8, 32>}, {transform_indices = @transform_3, window_bounds = array<i64: 1, 8, 32>}, {pipeline_mode = #tpu.pipeline_mode<synchronous>, transform_indices = @transform_4, window_bounds = array<i64: 4, 32, 8>}, {pipeline_mode = #tpu.pipeline_mode<synchronous>, transform_indices = @transform_5, window_bounds = array<i64: 4, 32, 8>}, {pipeline_mode = #tpu.pipeline_mode<synchronous>, transform_indices = @transform_6, window_bounds = array<i64: 4, 32, 8>}, {pipeline_mode = #tpu.pipeline_mode<synchronous>, transform_indices = @transform_7, window_bounds = array<i64: 4, 1, 8>}, {pipeline_mode = #tpu.pipeline_mode<synchronous>, transform_indices = @transform_8, window_bounds = array<i64: 4, 1, 8>}, {pipeline_mode = #tpu.pipeline_mode<synchronous>, transform_indices = @transform_9, window_bounds = array<i64: 4, 1, 8>}, {pipeline_mode = #tpu.pipeline_mode<synchronous>, transform_indices = @transform_10, window_bounds = array<i64: 4, 8, 32>}, {pipeline_mode = #tpu.pipeline_mode<synchronous>, transform_indices = @transform_11, window_bounds = array<i64: 1, 32>}, {pipeline_mode = #tpu.pipeline_mode<synchronous>, transform_indices = @transform_12, window_bounds = array<i64: 1, 32>}, {pipeline_mode = #tpu.pipeline_mode<synchronous>, transform_indices = @transform_13, window_bounds = array<i64: 1, 32>}, {transform_indices = @transform_14, window_bounds = array<i64: 1, 8, 32>}]} {
    %c0 = arith.constant 0 : index
    %c0_0 = arith.constant 0 : index
    %c0_1 = arith.constant 0 : index
    %0 = vector.load %arg1[%c0, %c0_0, %c0_1] : memref<1x8x32xf32, #tpu.memory_space<vmem>>, vector<1x8x32xf32>
    %1 = vector.shape_cast %0 : vector<1x8x32xf32> to vector<8x32xf32>
    %c0_2 = arith.constant 0 : index
    %c0_3 = arith.constant 0 : index
    %c0_4 = arith.constant 0 : index
    %2 = vector.load %arg2[%c0_2, %c0_3, %c0_4] : memref<1x8x32xf32, #tpu.memory_space<vmem>>, vector<1x8x32xf32>
    %3 = vector.shape_cast %2 : vector<1x8x32xf32> to vector<8x32xf32>
    %4 = arith.addf %1, %3 : vector<8x32xf32>
    %c0_5 = arith.constant 0 : index
    %c0_6 = arith.constant 0 : index
    %c0_7 = arith.constant 0 : index
    %5 = vector.load %arg3[%c0_5, %c0_6, %c0_7] : memref<1x8x32xf32, #tpu.memory_space<vmem>>, vector<1x8x32xf32>
    %6 = vector.shape_cast %5 : vector<1x8x32xf32> to vector<8x32xf32>
    %c0_8 = arith.constant 0 : index
    %c0_9 = arith.constant 0 : index
    %c0_10 = arith.constant 0 : index
    %7 = vector.load %arg4[%c0_8, %c0_9, %c0_10] : memref<1x8x32xf32, #tpu.memory_space<vmem>>, vector<1x8x32xf32>
    %8 = vector.shape_cast %7 : vector<1x8x32xf32> to vector<8x32xf32>
    %9 = arith.addf %6, %8 : vector<8x32xf32>
    %c0_11 = arith.constant 0 : index
    %c0_12 = arith.constant 0 : index
    %c0_13 = arith.constant 0 : index
    %10 = vector.load %arg3[%c0_11, %c0_12, %c0_13] : memref<1x8x32xf32, #tpu.memory_space<vmem>>, vector<1x8x32xf32>
    %11 = vector.shape_cast %10 : vector<1x8x32xf32> to vector<8x32xf32>
    %12 = tpu.iota {dimensions = array<i32: 0>} : vector<8x8xi32>
    %13 = tpu.iota {dimensions = array<i32: 1>} : vector<8x8xi32>
    %14 = arith.cmpi sle, %13, %12 : vector<8x8xi32>
    %cst = arith.constant 0.000000e+00 : f32
    %cst_14 = arith.constant -1.000000e+09 : f32
    %15 = vector.broadcast %cst : f32 to vector<8x8xf32>
    %16 = vector.broadcast %cst_14 : f32 to vector<8x8xf32>
    %17 = arith.select %14, %15, %16 : vector<8x8xi1>, vector<8x8xf32>
    %18 = arith.truncf %4 : vector<8x32xf32> to vector<8x32xbf16>
    %19 = arith.truncf %9 : vector<8x32xf32> to vector<8x32xbf16>
    %20 = arith.truncf %11 : vector<8x32xf32> to vector<8x32xbf16>
    %cst_15 = arith.constant 0.000000e+00 : f32
    %21 = vector.broadcast %cst_15 : f32 to vector<8x32xf32>
    %c0_16 = arith.constant 0 : index
    %c0_17 = arith.constant 0 : index
    %c0_18 = arith.constant 0 : index
    %22 = vector.load %arg5[%c0_16, %c0_17, %c0_18] : memref<4x32x8xf32, #tpu.memory_space<vmem>>, vector<1x32x8xf32>
    %23 = vector.shape_cast %22 : vector<1x32x8xf32> to vector<32x8xf32>
    %24 = arith.truncf %23 : vector<32x8xf32> to vector<32x8xbf16>
    %cst_19 = arith.constant dense<0.000000e+00> : vector<8x8xf32>
    %25 = tpu.matmul %18, %24, %cst_19 {dimension_numbers = #tpu.dot_dimension_numbers<[1], [0], [0], [1], [0, 0, 1, 1], [], []>} : vector<8x32xbf16>, vector<32x8xbf16>, vector<8x8xf32> -> vector<8x8xf32>
    %c0_20 = arith.constant 0 : index
    %c0_21 = arith.constant 0 : index
    %c0_22 = arith.constant 0 : index
    %26 = vector.load %arg8[%c0_20, %c0_21, %c0_22] : memref<4x1x8xf32, #tpu.memory_space<vmem>>, vector<1x1x8xf32>
    %27 = vector.shape_cast %26 : vector<1x1x8xf32> to vector<1x8xf32>
    %28 = vector.broadcast %27 : vector<1x8xf32> to vector<8x8xf32>
    %29 = arith.addf %25, %28 : vector<8x8xf32>
    %c0_23 = arith.constant 0 : index
    %c0_24 = arith.constant 0 : index
    %c0_25 = arith.constant 0 : index
    %30 = vector.load %arg6[%c0_23, %c0_24, %c0_25] : memref<4x32x8xf32, #tpu.memory_space<vmem>>, vector<1x32x8xf32>
    %31 = vector.shape_cast %30 : vector<1x32x8xf32> to vector<32x8xf32>
    %32 = arith.truncf %31 : vector<32x8xf32> to vector<32x8xbf16>
    %cst_26 = arith.constant dense<0.000000e+00> : vector<8x8xf32>
    %33 = tpu.matmul %19, %32, %cst_26 {dimension_numbers = #tpu.dot_dimension_numbers<[1], [0], [0], [1], [0, 0, 1, 1], [], []>} : vector<8x32xbf16>, vector<32x8xbf16>, vector<8x8xf32> -> vector<8x8xf32>
    %c0_27 = arith.constant 0 : index
    %c0_28 = arith.constant 0 : index
    %c0_29 = arith.constant 0 : index
    %34 = vector.load %arg9[%c0_27, %c0_28, %c0_29] : memref<4x1x8xf32, #tpu.memory_space<vmem>>, vector<1x1x8xf32>
    %35 = vector.shape_cast %34 : vector<1x1x8xf32> to vector<1x8xf32>
    %36 = vector.broadcast %35 : vector<1x8xf32> to vector<8x8xf32>
    %37 = arith.addf %33, %36 : vector<8x8xf32>
    %c0_30 = arith.constant 0 : index
    %c0_31 = arith.constant 0 : index
    %c0_32 = arith.constant 0 : index
    %38 = vector.load %arg7[%c0_30, %c0_31, %c0_32] : memref<4x32x8xf32, #tpu.memory_space<vmem>>, vector<1x32x8xf32>
    %39 = vector.shape_cast %38 : vector<1x32x8xf32> to vector<32x8xf32>
    %40 = arith.truncf %39 : vector<32x8xf32> to vector<32x8xbf16>
    %cst_33 = arith.constant dense<0.000000e+00> : vector<8x8xf32>
    %41 = tpu.matmul %20, %40, %cst_33 {dimension_numbers = #tpu.dot_dimension_numbers<[1], [0], [0], [1], [0, 0, 1, 1], [], []>} : vector<8x32xbf16>, vector<32x8xbf16>, vector<8x8xf32> -> vector<8x8xf32>
    %c0_34 = arith.constant 0 : index
    %c0_35 = arith.constant 0 : index
    %c0_36 = arith.constant 0 : index
    %42 = vector.load %arg10[%c0_34, %c0_35, %c0_36] : memref<4x1x8xf32, #tpu.memory_space<vmem>>, vector<1x1x8xf32>
    %43 = vector.shape_cast %42 : vector<1x1x8xf32> to vector<1x8xf32>
    %44 = vector.broadcast %43 : vector<1x8xf32> to vector<8x8xf32>
    %45 = arith.addf %41, %44 : vector<8x8xf32>
    %46 = arith.truncf %29 : vector<8x8xf32> to vector<8x8xbf16>
    %47 = arith.truncf %37 : vector<8x8xf32> to vector<8x8xbf16>
    %cst_37 = arith.constant dense<0.000000e+00> : vector<8x8xf32>
    %48 = tpu.matmul %46, %47, %cst_37 {dimension_numbers = #tpu.dot_dimension_numbers<[1], [1], [0], [0], [0, 0, 1, 0], [], []>} : vector<8x8xbf16>, vector<8x8xbf16>, vector<8x8xf32> -> vector<8x8xf32>
    %cst_38 = arith.constant 0.353553385 : f32
    %49 = vector.broadcast %cst_38 : f32 to vector<8x8xf32>
    %50 = arith.mulf %48, %49 : vector<8x8xf32>
    %51 = arith.addf %50, %17 : vector<8x8xf32>
    %cst_39 = arith.constant dense<0xFF800000> : vector<8xf32>
    %52 = vector.multi_reduction <maximumf>, %51, %cst_39 [1] : vector<8x8xf32> to vector<8xf32>
    %53 = vector.shape_cast %52 : vector<8xf32> to vector<8x1xf32>
    %54 = vector.broadcast %53 : vector<8x1xf32> to vector<8x8xf32>
    %55 = arith.subf %51, %54 : vector<8x8xf32>
    %56 = math.exp %55 : vector<8x8xf32>
    %cst_40 = arith.constant dense<0.000000e+00> : vector<8xf32>
    %57 = vector.multi_reduction <add>, %56, %cst_40 [1] : vector<8x8xf32> to vector<8xf32>
    %58 = vector.shape_cast %57 : vector<8xf32> to vector<8x1xf32>
    %59 = tpu.reciprocal %58 {approx = true} : vector<8x1xf32> -> vector<8x1xf32>
    %60 = vector.broadcast %59 : vector<8x1xf32> to vector<8x8xf32>
    %61 = arith.mulf %56, %60 : vector<8x8xf32>
    %62 = arith.truncf %61 : vector<8x8xf32> to vector<8x8xbf16>
    %63 = arith.truncf %45 : vector<8x8xf32> to vector<8x8xbf16>
    %cst_41 = arith.constant dense<0.000000e+00> : vector<8x8xf32>
    %64 = tpu.matmul %62, %63, %cst_41 {dimension_numbers = #tpu.dot_dimension_numbers<[1], [0], [0], [1], [0, 0, 1, 1], [], []>} : vector<8x8xbf16>, vector<8x8xbf16>, vector<8x8xf32> -> vector<8x8xf32>
    %65 = arith.truncf %64 : vector<8x8xf32> to vector<8x8xbf16>
    %c0_42 = arith.constant 0 : index
    %c0_43 = arith.constant 0 : index
    %c0_44 = arith.constant 0 : index
    %66 = vector.load %arg11[%c0_42, %c0_43, %c0_44] : memref<4x8x32xf32, #tpu.memory_space<vmem>>, vector<1x8x32xf32>
    %67 = vector.shape_cast %66 : vector<1x8x32xf32> to vector<8x32xf32>
    %68 = arith.truncf %67 : vector<8x32xf32> to vector<8x32xbf16>
    %cst_45 = arith.constant dense<0.000000e+00> : vector<8x32xf32>
    %69 = tpu.matmul %65, %68, %cst_45 {dimension_numbers = #tpu.dot_dimension_numbers<[1], [0], [0], [1], [0, 0, 1, 1], [], []>} : vector<8x8xbf16>, vector<8x32xbf16>, vector<8x32xf32> -> vector<8x32xf32>
    %70 = arith.addf %21, %69 : vector<8x32xf32>
    %c1 = arith.constant 1 : index
    %c0_46 = arith.constant 0 : index
    %c0_47 = arith.constant 0 : index
    %71 = vector.load %arg5[%c1, %c0_46, %c0_47] : memref<4x32x8xf32, #tpu.memory_space<vmem>>, vector<1x32x8xf32>
    %72 = vector.shape_cast %71 : vector<1x32x8xf32> to vector<32x8xf32>
    %73 = arith.truncf %72 : vector<32x8xf32> to vector<32x8xbf16>
    %cst_48 = arith.constant dense<0.000000e+00> : vector<8x8xf32>
    %74 = tpu.matmul %18, %73, %cst_48 {dimension_numbers = #tpu.dot_dimension_numbers<[1], [0], [0], [1], [0, 0, 1, 1], [], []>} : vector<8x32xbf16>, vector<32x8xbf16>, vector<8x8xf32> -> vector<8x8xf32>
    %c1_49 = arith.constant 1 : index
    %c0_50 = arith.constant 0 : index
    %c0_51 = arith.constant 0 : index
    %75 = vector.load %arg8[%c1_49, %c0_50, %c0_51] : memref<4x1x8xf32, #tpu.memory_space<vmem>>, vector<1x1x8xf32>
    %76 = vector.shape_cast %75 : vector<1x1x8xf32> to vector<1x8xf32>
    %77 = vector.broadcast %76 : vector<1x8xf32> to vector<8x8xf32>
    %78 = arith.addf %74, %77 : vector<8x8xf32>
    %c1_52 = arith.constant 1 : index
    %c0_53 = arith.constant 0 : index
    %c0_54 = arith.constant 0 : index
    %79 = vector.load %arg6[%c1_52, %c0_53, %c0_54] : memref<4x32x8xf32, #tpu.memory_space<vmem>>, vector<1x32x8xf32>
    %80 = vector.shape_cast %79 : vector<1x32x8xf32> to vector<32x8xf32>
    %81 = arith.truncf %80 : vector<32x8xf32> to vector<32x8xbf16>
    %cst_55 = arith.constant dense<0.000000e+00> : vector<8x8xf32>
    %82 = tpu.matmul %19, %81, %cst_55 {dimension_numbers = #tpu.dot_dimension_numbers<[1], [0], [0], [1], [0, 0, 1, 1], [], []>} : vector<8x32xbf16>, vector<32x8xbf16>, vector<8x8xf32> -> vector<8x8xf32>
    %c1_56 = arith.constant 1 : index
    %c0_57 = arith.constant 0 : index
    %c0_58 = arith.constant 0 : index
    %83 = vector.load %arg9[%c1_56, %c0_57, %c0_58] : memref<4x1x8xf32, #tpu.memory_space<vmem>>, vector<1x1x8xf32>
    %84 = vector.shape_cast %83 : vector<1x1x8xf32> to vector<1x8xf32>
    %85 = vector.broadcast %84 : vector<1x8xf32> to vector<8x8xf32>
    %86 = arith.addf %82, %85 : vector<8x8xf32>
    %c1_59 = arith.constant 1 : index
    %c0_60 = arith.constant 0 : index
    %c0_61 = arith.constant 0 : index
    %87 = vector.load %arg7[%c1_59, %c0_60, %c0_61] : memref<4x32x8xf32, #tpu.memory_space<vmem>>, vector<1x32x8xf32>
    %88 = vector.shape_cast %87 : vector<1x32x8xf32> to vector<32x8xf32>
    %89 = arith.truncf %88 : vector<32x8xf32> to vector<32x8xbf16>
    %cst_62 = arith.constant dense<0.000000e+00> : vector<8x8xf32>
    %90 = tpu.matmul %20, %89, %cst_62 {dimension_numbers = #tpu.dot_dimension_numbers<[1], [0], [0], [1], [0, 0, 1, 1], [], []>} : vector<8x32xbf16>, vector<32x8xbf16>, vector<8x8xf32> -> vector<8x8xf32>
    %c1_63 = arith.constant 1 : index
    %c0_64 = arith.constant 0 : index
    %c0_65 = arith.constant 0 : index
    %91 = vector.load %arg10[%c1_63, %c0_64, %c0_65] : memref<4x1x8xf32, #tpu.memory_space<vmem>>, vector<1x1x8xf32>
    %92 = vector.shape_cast %91 : vector<1x1x8xf32> to vector<1x8xf32>
    %93 = vector.broadcast %92 : vector<1x8xf32> to vector<8x8xf32>
    %94 = arith.addf %90, %93 : vector<8x8xf32>
    %95 = arith.truncf %78 : vector<8x8xf32> to vector<8x8xbf16>
    %96 = arith.truncf %86 : vector<8x8xf32> to vector<8x8xbf16>
    %cst_66 = arith.constant dense<0.000000e+00> : vector<8x8xf32>
    %97 = tpu.matmul %95, %96, %cst_66 {dimension_numbers = #tpu.dot_dimension_numbers<[1], [1], [0], [0], [0, 0, 1, 0], [], []>} : vector<8x8xbf16>, vector<8x8xbf16>, vector<8x8xf32> -> vector<8x8xf32>
    %cst_67 = arith.constant 0.353553385 : f32
    %98 = vector.broadcast %cst_67 : f32 to vector<8x8xf32>
    %99 = arith.mulf %97, %98 : vector<8x8xf32>
    %100 = arith.addf %99, %17 : vector<8x8xf32>
    %cst_68 = arith.constant dense<0xFF800000> : vector<8xf32>
    %101 = vector.multi_reduction <maximumf>, %100, %cst_68 [1] : vector<8x8xf32> to vector<8xf32>
    %102 = vector.shape_cast %101 : vector<8xf32> to vector<8x1xf32>
    %103 = vector.broadcast %102 : vector<8x1xf32> to vector<8x8xf32>
    %104 = arith.subf %100, %103 : vector<8x8xf32>
    %105 = math.exp %104 : vector<8x8xf32>
    %cst_69 = arith.constant dense<0.000000e+00> : vector<8xf32>
    %106 = vector.multi_reduction <add>, %105, %cst_69 [1] : vector<8x8xf32> to vector<8xf32>
    %107 = vector.shape_cast %106 : vector<8xf32> to vector<8x1xf32>
    %108 = tpu.reciprocal %107 {approx = true} : vector<8x1xf32> -> vector<8x1xf32>
    %109 = vector.broadcast %108 : vector<8x1xf32> to vector<8x8xf32>
    %110 = arith.mulf %105, %109 : vector<8x8xf32>
    %111 = arith.truncf %110 : vector<8x8xf32> to vector<8x8xbf16>
    %112 = arith.truncf %94 : vector<8x8xf32> to vector<8x8xbf16>
    %cst_70 = arith.constant dense<0.000000e+00> : vector<8x8xf32>
    %113 = tpu.matmul %111, %112, %cst_70 {dimension_numbers = #tpu.dot_dimension_numbers<[1], [0], [0], [1], [0, 0, 1, 1], [], []>} : vector<8x8xbf16>, vector<8x8xbf16>, vector<8x8xf32> -> vector<8x8xf32>
    %114 = arith.truncf %113 : vector<8x8xf32> to vector<8x8xbf16>
    %c1_71 = arith.constant 1 : index
    %c0_72 = arith.constant 0 : index
    %c0_73 = arith.constant 0 : index
    %115 = vector.load %arg11[%c1_71, %c0_72, %c0_73] : memref<4x8x32xf32, #tpu.memory_space<vmem>>, vector<1x8x32xf32>
    %116 = vector.shape_cast %115 : vector<1x8x32xf32> to vector<8x32xf32>
    %117 = arith.truncf %116 : vector<8x32xf32> to vector<8x32xbf16>
    %cst_74 = arith.constant dense<0.000000e+00> : vector<8x32xf32>
    %118 = tpu.matmul %114, %117, %cst_74 {dimension_numbers = #tpu.dot_dimension_numbers<[1], [0], [0], [1], [0, 0, 1, 1], [], []>} : vector<8x8xbf16>, vector<8x32xbf16>, vector<8x32xf32> -> vector<8x32xf32>
    %119 = arith.addf %70, %118 : vector<8x32xf32>
    %c2 = arith.constant 2 : index
    %c0_75 = arith.constant 0 : index
    %c0_76 = arith.constant 0 : index
    %120 = vector.load %arg5[%c2, %c0_75, %c0_76] : memref<4x32x8xf32, #tpu.memory_space<vmem>>, vector<1x32x8xf32>
    %121 = vector.shape_cast %120 : vector<1x32x8xf32> to vector<32x8xf32>
    %122 = arith.truncf %121 : vector<32x8xf32> to vector<32x8xbf16>
    %cst_77 = arith.constant dense<0.000000e+00> : vector<8x8xf32>
    %123 = tpu.matmul %18, %122, %cst_77 {dimension_numbers = #tpu.dot_dimension_numbers<[1], [0], [0], [1], [0, 0, 1, 1], [], []>} : vector<8x32xbf16>, vector<32x8xbf16>, vector<8x8xf32> -> vector<8x8xf32>
    %c2_78 = arith.constant 2 : index
    %c0_79 = arith.constant 0 : index
    %c0_80 = arith.constant 0 : index
    %124 = vector.load %arg8[%c2_78, %c0_79, %c0_80] : memref<4x1x8xf32, #tpu.memory_space<vmem>>, vector<1x1x8xf32>
    %125 = vector.shape_cast %124 : vector<1x1x8xf32> to vector<1x8xf32>
    %126 = vector.broadcast %125 : vector<1x8xf32> to vector<8x8xf32>
    %127 = arith.addf %123, %126 : vector<8x8xf32>
    %c2_81 = arith.constant 2 : index
    %c0_82 = arith.constant 0 : index
    %c0_83 = arith.constant 0 : index
    %128 = vector.load %arg6[%c2_81, %c0_82, %c0_83] : memref<4x32x8xf32, #tpu.memory_space<vmem>>, vector<1x32x8xf32>
    %129 = vector.shape_cast %128 : vector<1x32x8xf32> to vector<32x8xf32>
    %130 = arith.truncf %129 : vector<32x8xf32> to vector<32x8xbf16>
    %cst_84 = arith.constant dense<0.000000e+00> : vector<8x8xf32>
    %131 = tpu.matmul %19, %130, %cst_84 {dimension_numbers = #tpu.dot_dimension_numbers<[1], [0], [0], [1], [0, 0, 1, 1], [], []>} : vector<8x32xbf16>, vector<32x8xbf16>, vector<8x8xf32> -> vector<8x8xf32>
    %c2_85 = arith.constant 2 : index
    %c0_86 = arith.constant 0 : index
    %c0_87 = arith.constant 0 : index
    %132 = vector.load %arg9[%c2_85, %c0_86, %c0_87] : memref<4x1x8xf32, #tpu.memory_space<vmem>>, vector<1x1x8xf32>
    %133 = vector.shape_cast %132 : vector<1x1x8xf32> to vector<1x8xf32>
    %134 = vector.broadcast %133 : vector<1x8xf32> to vector<8x8xf32>
    %135 = arith.addf %131, %134 : vector<8x8xf32>
    %c2_88 = arith.constant 2 : index
    %c0_89 = arith.constant 0 : index
    %c0_90 = arith.constant 0 : index
    %136 = vector.load %arg7[%c2_88, %c0_89, %c0_90] : memref<4x32x8xf32, #tpu.memory_space<vmem>>, vector<1x32x8xf32>
    %137 = vector.shape_cast %136 : vector<1x32x8xf32> to vector<32x8xf32>
    %138 = arith.truncf %137 : vector<32x8xf32> to vector<32x8xbf16>
    %cst_91 = arith.constant dense<0.000000e+00> : vector<8x8xf32>
    %139 = tpu.matmul %20, %138, %cst_91 {dimension_numbers = #tpu.dot_dimension_numbers<[1], [0], [0], [1], [0, 0, 1, 1], [], []>} : vector<8x32xbf16>, vector<32x8xbf16>, vector<8x8xf32> -> vector<8x8xf32>
    %c2_92 = arith.constant 2 : index
    %c0_93 = arith.constant 0 : index
    %c0_94 = arith.constant 0 : index
    %140 = vector.load %arg10[%c2_92, %c0_93, %c0_94] : memref<4x1x8xf32, #tpu.memory_space<vmem>>, vector<1x1x8xf32>
    %141 = vector.shape_cast %140 : vector<1x1x8xf32> to vector<1x8xf32>
    %142 = vector.broadcast %141 : vector<1x8xf32> to vector<8x8xf32>
    %143 = arith.addf %139, %142 : vector<8x8xf32>
    %144 = arith.truncf %127 : vector<8x8xf32> to vector<8x8xbf16>
    %145 = arith.truncf %135 : vector<8x8xf32> to vector<8x8xbf16>
    %cst_95 = arith.constant dense<0.000000e+00> : vector<8x8xf32>
    %146 = tpu.matmul %144, %145, %cst_95 {dimension_numbers = #tpu.dot_dimension_numbers<[1], [1], [0], [0], [0, 0, 1, 0], [], []>} : vector<8x8xbf16>, vector<8x8xbf16>, vector<8x8xf32> -> vector<8x8xf32>
    %cst_96 = arith.constant 0.353553385 : f32
    %147 = vector.broadcast %cst_96 : f32 to vector<8x8xf32>
    %148 = arith.mulf %146, %147 : vector<8x8xf32>
    %149 = arith.addf %148, %17 : vector<8x8xf32>
    %cst_97 = arith.constant dense<0xFF800000> : vector<8xf32>
    %150 = vector.multi_reduction <maximumf>, %149, %cst_97 [1] : vector<8x8xf32> to vector<8xf32>
    %151 = vector.shape_cast %150 : vector<8xf32> to vector<8x1xf32>
    %152 = vector.broadcast %151 : vector<8x1xf32> to vector<8x8xf32>
    %153 = arith.subf %149, %152 : vector<8x8xf32>
    %154 = math.exp %153 : vector<8x8xf32>
    %cst_98 = arith.constant dense<0.000000e+00> : vector<8xf32>
    %155 = vector.multi_reduction <add>, %154, %cst_98 [1] : vector<8x8xf32> to vector<8xf32>
    %156 = vector.shape_cast %155 : vector<8xf32> to vector<8x1xf32>
    %157 = tpu.reciprocal %156 {approx = true} : vector<8x1xf32> -> vector<8x1xf32>
    %158 = vector.broadcast %157 : vector<8x1xf32> to vector<8x8xf32>
    %159 = arith.mulf %154, %158 : vector<8x8xf32>
    %160 = arith.truncf %159 : vector<8x8xf32> to vector<8x8xbf16>
    %161 = arith.truncf %143 : vector<8x8xf32> to vector<8x8xbf16>
    %cst_99 = arith.constant dense<0.000000e+00> : vector<8x8xf32>
    %162 = tpu.matmul %160, %161, %cst_99 {dimension_numbers = #tpu.dot_dimension_numbers<[1], [0], [0], [1], [0, 0, 1, 1], [], []>} : vector<8x8xbf16>, vector<8x8xbf16>, vector<8x8xf32> -> vector<8x8xf32>
    %163 = arith.truncf %162 : vector<8x8xf32> to vector<8x8xbf16>
    %c2_100 = arith.constant 2 : index
    %c0_101 = arith.constant 0 : index
    %c0_102 = arith.constant 0 : index
    %164 = vector.load %arg11[%c2_100, %c0_101, %c0_102] : memref<4x8x32xf32, #tpu.memory_space<vmem>>, vector<1x8x32xf32>
    %165 = vector.shape_cast %164 : vector<1x8x32xf32> to vector<8x32xf32>
    %166 = arith.truncf %165 : vector<8x32xf32> to vector<8x32xbf16>
    %cst_103 = arith.constant dense<0.000000e+00> : vector<8x32xf32>
    %167 = tpu.matmul %163, %166, %cst_103 {dimension_numbers = #tpu.dot_dimension_numbers<[1], [0], [0], [1], [0, 0, 1, 1], [], []>} : vector<8x8xbf16>, vector<8x32xbf16>, vector<8x32xf32> -> vector<8x32xf32>
    %168 = arith.addf %119, %167 : vector<8x32xf32>
    %c3 = arith.constant 3 : index
    %c0_104 = arith.constant 0 : index
    %c0_105 = arith.constant 0 : index
    %169 = vector.load %arg5[%c3, %c0_104, %c0_105] : memref<4x32x8xf32, #tpu.memory_space<vmem>>, vector<1x32x8xf32>
    %170 = vector.shape_cast %169 : vector<1x32x8xf32> to vector<32x8xf32>
    %171 = arith.truncf %170 : vector<32x8xf32> to vector<32x8xbf16>
    %cst_106 = arith.constant dense<0.000000e+00> : vector<8x8xf32>
    %172 = tpu.matmul %18, %171, %cst_106 {dimension_numbers = #tpu.dot_dimension_numbers<[1], [0], [0], [1], [0, 0, 1, 1], [], []>} : vector<8x32xbf16>, vector<32x8xbf16>, vector<8x8xf32> -> vector<8x8xf32>
    %c3_107 = arith.constant 3 : index
    %c0_108 = arith.constant 0 : index
    %c0_109 = arith.constant 0 : index
    %173 = vector.load %arg8[%c3_107, %c0_108, %c0_109] : memref<4x1x8xf32, #tpu.memory_space<vmem>>, vector<1x1x8xf32>
    %174 = vector.shape_cast %173 : vector<1x1x8xf32> to vector<1x8xf32>
    %175 = vector.broadcast %174 : vector<1x8xf32> to vector<8x8xf32>
    %176 = arith.addf %172, %175 : vector<8x8xf32>
    %c3_110 = arith.constant 3 : index
    %c0_111 = arith.constant 0 : index
    %c0_112 = arith.constant 0 : index
    %177 = vector.load %arg6[%c3_110, %c0_111, %c0_112] : memref<4x32x8xf32, #tpu.memory_space<vmem>>, vector<1x32x8xf32>
    %178 = vector.shape_cast %177 : vector<1x32x8xf32> to vector<32x8xf32>
    %179 = arith.truncf %178 : vector<32x8xf32> to vector<32x8xbf16>
    %cst_113 = arith.constant dense<0.000000e+00> : vector<8x8xf32>
    %180 = tpu.matmul %19, %179, %cst_113 {dimension_numbers = #tpu.dot_dimension_numbers<[1], [0], [0], [1], [0, 0, 1, 1], [], []>} : vector<8x32xbf16>, vector<32x8xbf16>, vector<8x8xf32> -> vector<8x8xf32>
    %c3_114 = arith.constant 3 : index
    %c0_115 = arith.constant 0 : index
    %c0_116 = arith.constant 0 : index
    %181 = vector.load %arg9[%c3_114, %c0_115, %c0_116] : memref<4x1x8xf32, #tpu.memory_space<vmem>>, vector<1x1x8xf32>
    %182 = vector.shape_cast %181 : vector<1x1x8xf32> to vector<1x8xf32>
    %183 = vector.broadcast %182 : vector<1x8xf32> to vector<8x8xf32>
    %184 = arith.addf %180, %183 : vector<8x8xf32>
    %c3_117 = arith.constant 3 : index
    %c0_118 = arith.constant 0 : index
    %c0_119 = arith.constant 0 : index
    %185 = vector.load %arg7[%c3_117, %c0_118, %c0_119] : memref<4x32x8xf32, #tpu.memory_space<vmem>>, vector<1x32x8xf32>
    %186 = vector.shape_cast %185 : vector<1x32x8xf32> to vector<32x8xf32>
    %187 = arith.truncf %186 : vector<32x8xf32> to vector<32x8xbf16>
    %cst_120 = arith.constant dense<0.000000e+00> : vector<8x8xf32>
    %188 = tpu.matmul %20, %187, %cst_120 {dimension_numbers = #tpu.dot_dimension_numbers<[1], [0], [0], [1], [0, 0, 1, 1], [], []>} : vector<8x32xbf16>, vector<32x8xbf16>, vector<8x8xf32> -> vector<8x8xf32>
    %c3_121 = arith.constant 3 : index
    %c0_122 = arith.constant 0 : index
    %c0_123 = arith.constant 0 : index
    %189 = vector.load %arg10[%c3_121, %c0_122, %c0_123] : memref<4x1x8xf32, #tpu.memory_space<vmem>>, vector<1x1x8xf32>
    %190 = vector.shape_cast %189 : vector<1x1x8xf32> to vector<1x8xf32>
    %191 = vector.broadcast %190 : vector<1x8xf32> to vector<8x8xf32>
    %192 = arith.addf %188, %191 : vector<8x8xf32>
    %193 = arith.truncf %176 : vector<8x8xf32> to vector<8x8xbf16>
    %194 = arith.truncf %184 : vector<8x8xf32> to vector<8x8xbf16>
    %cst_124 = arith.constant dense<0.000000e+00> : vector<8x8xf32>
    %195 = tpu.matmul %193, %194, %cst_124 {dimension_numbers = #tpu.dot_dimension_numbers<[1], [1], [0], [0], [0, 0, 1, 0], [], []>} : vector<8x8xbf16>, vector<8x8xbf16>, vector<8x8xf32> -> vector<8x8xf32>
    %cst_125 = arith.constant 0.353553385 : f32
    %196 = vector.broadcast %cst_125 : f32 to vector<8x8xf32>
    %197 = arith.mulf %195, %196 : vector<8x8xf32>
    %198 = arith.addf %197, %17 : vector<8x8xf32>
    %cst_126 = arith.constant dense<0xFF800000> : vector<8xf32>
    %199 = vector.multi_reduction <maximumf>, %198, %cst_126 [1] : vector<8x8xf32> to vector<8xf32>
    %200 = vector.shape_cast %199 : vector<8xf32> to vector<8x1xf32>
    %201 = vector.broadcast %200 : vector<8x1xf32> to vector<8x8xf32>
    %202 = arith.subf %198, %201 : vector<8x8xf32>
    %203 = math.exp %202 : vector<8x8xf32>
    %cst_127 = arith.constant dense<0.000000e+00> : vector<8xf32>
    %204 = vector.multi_reduction <add>, %203, %cst_127 [1] : vector<8x8xf32> to vector<8xf32>
    %205 = vector.shape_cast %204 : vector<8xf32> to vector<8x1xf32>
    %206 = tpu.reciprocal %205 {approx = true} : vector<8x1xf32> -> vector<8x1xf32>
    %207 = vector.broadcast %206 : vector<8x1xf32> to vector<8x8xf32>
    %208 = arith.mulf %203, %207 : vector<8x8xf32>
    %209 = arith.truncf %208 : vector<8x8xf32> to vector<8x8xbf16>
    %210 = arith.truncf %192 : vector<8x8xf32> to vector<8x8xbf16>
    %cst_128 = arith.constant dense<0.000000e+00> : vector<8x8xf32>
    %211 = tpu.matmul %209, %210, %cst_128 {dimension_numbers = #tpu.dot_dimension_numbers<[1], [0], [0], [1], [0, 0, 1, 1], [], []>} : vector<8x8xbf16>, vector<8x8xbf16>, vector<8x8xf32> -> vector<8x8xf32>
    %212 = arith.truncf %211 : vector<8x8xf32> to vector<8x8xbf16>
    %c3_129 = arith.constant 3 : index
    %c0_130 = arith.constant 0 : index
    %c0_131 = arith.constant 0 : index
    %213 = vector.load %arg11[%c3_129, %c0_130, %c0_131] : memref<4x8x32xf32, #tpu.memory_space<vmem>>, vector<1x8x32xf32>
    %214 = vector.shape_cast %213 : vector<1x8x32xf32> to vector<8x32xf32>
    %215 = arith.truncf %214 : vector<8x32xf32> to vector<8x32xbf16>
    %cst_132 = arith.constant dense<0.000000e+00> : vector<8x32xf32>
    %216 = tpu.matmul %212, %215, %cst_132 {dimension_numbers = #tpu.dot_dimension_numbers<[1], [0], [0], [1], [0, 0, 1, 1], [], []>} : vector<8x8xbf16>, vector<8x32xbf16>, vector<8x32xf32> -> vector<8x32xf32>
    %217 = arith.addf %168, %216 : vector<8x32xf32>
    %c0_133 = arith.constant 0 : index
    %c0_134 = arith.constant 0 : index
    %218 = vector.load %arg12[%c0_133, %c0_134] : memref<1x32xf32, #tpu.memory_space<vmem>>, vector<1x32xf32>
    %219 = vector.broadcast %218 : vector<1x32xf32> to vector<8x32xf32>
    %220 = arith.addf %217, %219 : vector<8x32xf32>
    %221 = arith.addf %1, %220 : vector<8x32xf32>
    %c0_135 = arith.constant 0 : index
    %c0_136 = arith.constant 0 : index
    %222 = vector.load %arg13[%c0_135, %c0_136] : memref<1x32xf32, #tpu.memory_space<vmem>>, vector<1x32xf32>
    %c0_137 = arith.constant 0 : index
    %c0_138 = arith.constant 0 : index
    %223 = vector.load %arg14[%c0_137, %c0_138] : memref<1x32xf32, #tpu.memory_space<vmem>>, vector<1x32xf32>
    %cst_139 = arith.constant dense<0.000000e+00> : vector<8xf32>
    %224 = vector.multi_reduction <add>, %221, %cst_139 [1] : vector<8x32xf32> to vector<8xf32>
    %225 = vector.shape_cast %224 : vector<8xf32> to vector<8x1xf32>
    %cst_140 = arith.constant 3.200000e+01 : f32
    %226 = vector.broadcast %cst_140 : f32 to vector<8x1xf32>
    %227 = arith.divf %225, %226 : vector<8x1xf32>
    %228 = vector.broadcast %227 : vector<8x1xf32> to vector<8x32xf32>
    %229 = arith.subf %221, %228 : vector<8x32xf32>
    %230 = arith.mulf %229, %229 : vector<8x32xf32>
    %cst_141 = arith.constant dense<0.000000e+00> : vector<8xf32>
    %231 = vector.multi_reduction <add>, %230, %cst_141 [1] : vector<8x32xf32> to vector<8xf32>
    %232 = vector.shape_cast %231 : vector<8xf32> to vector<8x1xf32>
    %cst_142 = arith.constant 3.200000e+01 : f32
    %233 = vector.broadcast %cst_142 : f32 to vector<8x1xf32>
    %234 = arith.divf %232, %233 : vector<8x1xf32>
    %cst_143 = arith.constant 9.99999974E-6 : f32
    %235 = vector.broadcast %cst_143 : f32 to vector<8x1xf32>
    %236 = arith.addf %234, %235 : vector<8x1xf32>
    %237 = math.rsqrt %236 : vector<8x1xf32>
    %238 = vector.broadcast %237 : vector<8x1xf32> to vector<8x32xf32>
    %239 = arith.mulf %229, %238 : vector<8x32xf32>
    %240 = vector.broadcast %222 : vector<1x32xf32> to vector<8x32xf32>
    %241 = arith.mulf %239, %240 : vector<8x32xf32>
    %242 = vector.broadcast %223 : vector<1x32xf32> to vector<8x32xf32>
    %243 = arith.addf %241, %242 : vector<8x32xf32>
    %c0_144 = arith.constant 0 : index
    %c0_145 = arith.constant 0 : index
    %c0_146 = arith.constant 0 : index
    %244 = vector.load %arg15[%c0_144, %c0_145, %c0_146] : memref<1x8x32xf32, #tpu.memory_space<vmem>>, vector<1x8x32xf32>
    %245 = vector.shape_cast %244 : vector<1x8x32xf32> to vector<8x32xf32>
    %246 = vector.shape_cast %243 : vector<8x32xf32> to vector<1x8x32xf32>
    tpu.vector_store %arg15[%c0_144, %c0_145, %c0_146], %246 {strides = array<i32>} : memref<1x8x32xf32, #tpu.memory_space<vmem>>, vector<1x8x32xf32>,
    return
  }
  func.func @transform_0(%arg0: i32) -> (i32, i32, i32) {
    %c0_i32 = arith.constant 0 : i32
    %c0_i32_0 = arith.constant 0 : i32
    %c0_i32_1 = arith.constant 0 : i32
    return %arg0, %c0_i32, %c0_i32_0 : i32, i32, i32
  }
  func.func @transform_1(%arg0: i32) -> (i32, i32, i32) {
    %c0_i32 = arith.constant 0 : i32
    %c0_i32_0 = arith.constant 0 : i32
    %c0_i32_1 = arith.constant 0 : i32
    return %arg0, %c0_i32, %c0_i32_0 : i32, i32, i32
  }
  func.func @transform_2(%arg0: i32) -> (i32, i32, i32) {
    %c0_i32 = arith.constant 0 : i32
    %c0_i32_0 = arith.constant 0 : i32
    %c0_i32_1 = arith.constant 0 : i32
    return %arg0, %c0_i32, %c0_i32_0 : i32, i32, i32
  }
  func.func @transform_3(%arg0: i32) -> (i32, i32, i32) {
    %c0_i32 = arith.constant 0 : i32
    %c0_i32_0 = arith.constant 0 : i32
    %c0_i32_1 = arith.constant 0 : i32
    return %arg0, %c0_i32, %c0_i32_0 : i32, i32, i32
  }
  func.func @transform_4(%arg0: i32) -> (i32, i32, i32) {
    %c0_i32 = arith.constant 0 : i32
    %c0_i32_0 = arith.constant 0 : i32
    %c0_i32_1 = arith.constant 0 : i32
    %c0_i32_2 = arith.constant 0 : i32
    return %c0_i32, %c0_i32_0, %c0_i32_1 : i32, i32, i32
  }
  func.func @transform_5(%arg0: i32) -> (i32, i32, i32) {
    %c0_i32 = arith.constant 0 : i32
    %c0_i32_0 = arith.constant 0 : i32
    %c0_i32_1 = arith.constant 0 : i32
    %c0_i32_2 = arith.constant 0 : i32
    return %c0_i32, %c0_i32_0, %c0_i32_1 : i32, i32, i32
  }
  func.func @transform_6(%arg0: i32) -> (i32, i32, i32) {
    %c0_i32 = arith.constant 0 : i32
    %c0_i32_0 = arith.constant 0 : i32
    %c0_i32_1 = arith.constant 0 : i32
    %c0_i32_2 = arith.constant 0 : i32
    return %c0_i32, %c0_i32_0, %c0_i32_1 : i32, i32, i32
  }
  func.func @transform_7(%arg0: i32) -> (i32, i32, i32) {
    %c0_i32 = arith.constant 0 : i32
    %c0_i32_0 = arith.constant 0 : i32
    %c0_i32_1 = arith.constant 0 : i32
    %c0_i32_2 = arith.constant 0 : i32
    return %c0_i32, %c0_i32_0, %c0_i32_1 : i32, i32, i32
  }
  func.func @transform_8(%arg0: i32) -> (i32, i32, i32) {
    %c0_i32 = arith.constant 0 : i32
    %c0_i32_0 = arith.constant 0 : i32
    %c0_i32_1 = arith.constant 0 : i32
    %c0_i32_2 = arith.constant 0 : i32
    return %c0_i32, %c0_i32_0, %c0_i32_1 : i32, i32, i32
  }
  func.func @transform_9(%arg0: i32) -> (i32, i32, i32) {
    %c0_i32 = arith.constant 0 : i32
    %c0_i32_0 = arith.constant 0 : i32
    %c0_i32_1 = arith.constant 0 : i32
    %c0_i32_2 = arith.constant 0 : i32
    return %c0_i32, %c0_i32_0, %c0_i32_1 : i32, i32, i32
  }
  func.func @transform_10(%arg0: i32) -> (i32, i32, i32) {
    %c0_i32 = arith.constant 0 : i32
    %c0_i32_0 = arith.constant 0 : i32
    %c0_i32_1 = arith.constant 0 : i32
    %c0_i32_2 = arith.constant 0 : i32
    return %c0_i32, %c0_i32_0, %c0_i32_1 : i32, i32, i32
  }
  func.func @transform_11(%arg0: i32) -> (i32, i32) {
    %c0_i32 = arith.constant 0 : i32
    %c0_i32_0 = arith.constant 0 : i32
    %c0_i32_1 = arith.constant 0 : i32
    return %c0_i32, %c0_i32_0 : i32, i32
  }
  func.func @transform_12(%arg0: i32) -> (i32, i32) {
    %c0_i32 = arith.constant 0 : i32
    %c0_i32_0 = arith.constant 0 : i32
    %c0_i32_1 = arith.constant 0 : i32
    return %c0_i32, %c0_i32_0 : i32, i32
  }
  func.func @transform_13(%arg0: i32) -> (i32, i32) {
    %c0_i32 = arith.constant 0 : i32
    %c0_i32_0 = arith.constant 0 : i32
    %c0_i32_1 = arith.constant 0 : i32
    return %c0_i32, %c0_i32_0 : i32, i32
  }
  func.func @transform_14(%arg0: i32) -> (i32, i32, i32) {
    %c0_i32 = arith.constant 0 : i32
    %c0_i32_0 = arith.constant 0 : i32
    %c0_i32_1 = arith.constant 0 : i32
    return %arg0, %c0_i32, %c0_i32_0 : i32, i32, i32
  }
}

module attributes {stable_mosaic.version = 11 : i64} {
  func.func @_ffn_ln_kernel(%arg0: memref<16x32xf32, #tpu.memory_space<vmem>>, %arg1: memref<32x64xf32, #tpu.memory_space<vmem>>, %arg2: memref<1x64xf32, #tpu.memory_space<vmem>>, %arg3: memref<64x32xf32, #tpu.memory_space<vmem>>, %arg4: memref<1x32xf32, #tpu.memory_space<vmem>>, %arg5: memref<1x32xf32, #tpu.memory_space<vmem>>, %arg6: memref<1x32xf32, #tpu.memory_space<vmem>>, %arg7: memref<16x32xf32, #tpu.memory_space<vmem>>) attributes {dimension_semantics = [], scalar_prefetch = 0 : i64, scratch_operands = 0 : i64, tpu.core_type = #tpu.core_type<tc>} {
    %c0 = arith.constant 0 : index
    %c0_0 = arith.constant 0 : index
    %0 = vector.load %arg0[%c0, %c0_0] : memref<16x32xf32, #tpu.memory_space<vmem>>, vector<16x32xf32>
    %c0_1 = arith.constant 0 : index
    %c0_2 = arith.constant 0 : index
    %1 = vector.load %arg1[%c0_1, %c0_2] : memref<32x64xf32, #tpu.memory_space<vmem>>, vector<32x64xf32>
    %2 = arith.truncf %0 : vector<16x32xf32> to vector<16x32xbf16>
    %3 = arith.truncf %1 : vector<32x64xf32> to vector<32x64xbf16>
    %cst = arith.constant dense<0.000000e+00> : vector<16x64xf32>
    %4 = tpu.matmul %2, %3, %cst {dimension_numbers = #tpu.dot_dimension_numbers<[1], [0], [0], [1], [0, 0, 1, 1], [], []>} : vector<16x32xbf16>, vector<32x64xbf16>, vector<16x64xf32> -> vector<16x64xf32>
    %c0_3 = arith.constant 0 : index
    %c0_4 = arith.constant 0 : index
    %5 = vector.load %arg2[%c0_3, %c0_4] : memref<1x64xf32, #tpu.memory_space<vmem>>, vector<1x64xf32>
    %6 = vector.broadcast %5 : vector<1x64xf32> to vector<16x64xf32>
    %7 = arith.addf %4, %6 : vector<16x64xf32>
    %cst_5 = arith.constant 0.000000e+00 : f32
    %8 = vector.broadcast %cst_5 : f32 to vector<16x64xf32>
    %9 = arith.maximumf %7, %8 : vector<16x64xf32>
    %c0_6 = arith.constant 0 : index
    %c0_7 = arith.constant 0 : index
    %10 = vector.load %arg3[%c0_6, %c0_7] : memref<64x32xf32, #tpu.memory_space<vmem>>, vector<64x32xf32>
    %11 = arith.truncf %9 : vector<16x64xf32> to vector<16x64xbf16>
    %12 = arith.truncf %10 : vector<64x32xf32> to vector<64x32xbf16>
    %cst_8 = arith.constant dense<0.000000e+00> : vector<16x32xf32>
    %13 = tpu.matmul %11, %12, %cst_8 {dimension_numbers = #tpu.dot_dimension_numbers<[1], [0], [0], [1], [0, 0, 1, 1], [], []>} : vector<16x64xbf16>, vector<64x32xbf16>, vector<16x32xf32> -> vector<16x32xf32>
    %c0_9 = arith.constant 0 : index
    %c0_10 = arith.constant 0 : index
    %14 = vector.load %arg4[%c0_9, %c0_10] : memref<1x32xf32, #tpu.memory_space<vmem>>, vector<1x32xf32>
    %15 = vector.broadcast %14 : vector<1x32xf32> to vector<16x32xf32>
    %16 = arith.addf %13, %15 : vector<16x32xf32>
    %17 = arith.addf %0, %16 : vector<16x32xf32>
    %c0_11 = arith.constant 0 : index
    %c0_12 = arith.constant 0 : index
    %18 = vector.load %arg5[%c0_11, %c0_12] : memref<1x32xf32, #tpu.memory_space<vmem>>, vector<1x32xf32>
    %c0_13 = arith.constant 0 : index
    %c0_14 = arith.constant 0 : index
    %19 = vector.load %arg6[%c0_13, %c0_14] : memref<1x32xf32, #tpu.memory_space<vmem>>, vector<1x32xf32>
    %cst_15 = arith.constant dense<0.000000e+00> : vector<16xf32>
    %20 = vector.multi_reduction <add>, %17, %cst_15 [1] : vector<16x32xf32> to vector<16xf32>
    %21 = vector.shape_cast %20 : vector<16xf32> to vector<16x1xf32>
    %cst_16 = arith.constant 3.200000e+01 : f32
    %22 = vector.broadcast %cst_16 : f32 to vector<16x1xf32>
    %23 = arith.divf %21, %22 : vector<16x1xf32>
    %24 = vector.broadcast %23 : vector<16x1xf32> to vector<16x32xf32>
    %25 = arith.subf %17, %24 : vector<16x32xf32>
    %26 = arith.mulf %25, %25 : vector<16x32xf32>
    %cst_17 = arith.constant dense<0.000000e+00> : vector<16xf32>
    %27 = vector.multi_reduction <add>, %26, %cst_17 [1] : vector<16x32xf32> to vector<16xf32>
    %28 = vector.shape_cast %27 : vector<16xf32> to vector<16x1xf32>
    %cst_18 = arith.constant 3.200000e+01 : f32
    %29 = vector.broadcast %cst_18 : f32 to vector<16x1xf32>
    %30 = arith.divf %28, %29 : vector<16x1xf32>
    %cst_19 = arith.constant 9.99999974E-6 : f32
    %31 = vector.broadcast %cst_19 : f32 to vector<16x1xf32>
    %32 = arith.addf %30, %31 : vector<16x1xf32>
    %33 = math.rsqrt %32 : vector<16x1xf32>
    %34 = vector.broadcast %33 : vector<16x1xf32> to vector<16x32xf32>
    %35 = arith.mulf %25, %34 : vector<16x32xf32>
    %36 = vector.broadcast %18 : vector<1x32xf32> to vector<16x32xf32>
    %37 = arith.mulf %35, %36 : vector<16x32xf32>
    %38 = vector.broadcast %19 : vector<1x32xf32> to vector<16x32xf32>
    %39 = arith.addf %37, %38 : vector<16x32xf32>
    %c0_20 = arith.constant 0 : index
    %c0_21 = arith.constant 0 : index
    %40 = vector.load %arg7[%c0_20, %c0_21] : memref<16x32xf32, #tpu.memory_space<vmem>>, vector<16x32xf32>
    tpu.vector_store %arg7[%c0_20, %c0_21], %39 {strides = array<i32>} : memref<16x32xf32, #tpu.memory_space<vmem>>, vector<16x32xf32>,
    return
  }
}

module attributes {stable_mosaic.version = 11 : i64} {
  func.func @_mha_ln_kernel(%arg0: i32, %arg1: memref<1x8x32xf32, #tpu.memory_space<vmem>>, %arg2: memref<1x8x32xf32, #tpu.memory_space<vmem>>, %arg3: memref<1x16x32xf32, #tpu.memory_space<vmem>>, %arg4: memref<1x16x32xf32, #tpu.memory_space<vmem>>, %arg5: memref<1x1x16xf32, #tpu.memory_space<vmem>>, %arg6: memref<4x32x8xf32, #tpu.memory_space<vmem>>, %arg7: memref<4x32x8xf32, #tpu.memory_space<vmem>>, %arg8: memref<4x32x8xf32, #tpu.memory_space<vmem>>, %arg9: memref<4x1x8xf32, #tpu.memory_space<vmem>>, %arg10: memref<4x1x8xf32, #tpu.memory_space<vmem>>, %arg11: memref<4x1x8xf32, #tpu.memory_space<vmem>>, %arg12: memref<4x8x32xf32, #tpu.memory_space<vmem>>, %arg13: memref<1x32xf32, #tpu.memory_space<vmem>>, %arg14: memref<1x32xf32, #tpu.memory_space<vmem>>, %arg15: memref<1x32xf32, #tpu.memory_space<vmem>>, %arg16: memref<1x8x32xf32, #tpu.memory_space<vmem>>) attributes {dimension_semantics = [#tpu.dimension_semantics<parallel>], iteration_bounds = array<i64: 2>, scalar_prefetch = 0 : i64, scratch_operands = 0 : i64, tpu.core_type = #tpu.core_type<tc>, window_params = [{transform_indices = @transform_0, window_bounds = array<i64: 1, 8, 32>}, {transform_indices = @transform_1, window_bounds = array<i64: 1, 8, 32>}, {transform_indices = @transform_2, window_bounds = array<i64: 1, 16, 32>}, {transform_indices = @transform_3, window_bounds = array<i64: 1, 16, 32>}, {transform_indices = @transform_4, window_bounds = array<i64: 1, 1, 16>}, {pipeline_mode = #tpu.pipeline_mode<synchronous>, transform_indices = @transform_5, window_bounds = array<i64: 4, 32, 8>}, {pipeline_mode = #tpu.pipeline_mode<synchronous>, transform_indices = @transform_6, window_bounds = array<i64: 4, 32, 8>}, {pipeline_mode = #tpu.pipeline_mode<synchronous>, transform_indices = @transform_7, window_bounds = array<i64: 4, 32, 8>}, {pipeline_mode = #tpu.pipeline_mode<synchronous>, transform_indices = @transform_8, window_bounds = array<i64: 4, 1, 8>}, {pipeline_mode = #tpu.pipeline_mode<synchronous>, transform_indices = @transform_9, window_bounds = array<i64: 4, 1, 8>}, {pipeline_mode = #tpu.pipeline_mode<synchronous>, transform_indices = @transform_10, window_bounds = array<i64: 4, 1, 8>}, {pipeline_mode = #tpu.pipeline_mode<synchronous>, transform_indices = @transform_11, window_bounds = array<i64: 4, 8, 32>}, {pipeline_mode = #tpu.pipeline_mode<synchronous>, transform_indices = @transform_12, window_bounds = array<i64: 1, 32>}, {pipeline_mode = #tpu.pipeline_mode<synchronous>, transform_indices = @transform_13, window_bounds = array<i64: 1, 32>}, {pipeline_mode = #tpu.pipeline_mode<synchronous>, transform_indices = @transform_14, window_bounds = array<i64: 1, 32>}, {transform_indices = @transform_15, window_bounds = array<i64: 1, 8, 32>}]} {
    %c0 = arith.constant 0 : index
    %c0_0 = arith.constant 0 : index
    %c0_1 = arith.constant 0 : index
    %0 = vector.load %arg1[%c0, %c0_0, %c0_1] : memref<1x8x32xf32, #tpu.memory_space<vmem>>, vector<1x8x32xf32>
    %1 = vector.shape_cast %0 : vector<1x8x32xf32> to vector<8x32xf32>
    %c0_2 = arith.constant 0 : index
    %c0_3 = arith.constant 0 : index
    %c0_4 = arith.constant 0 : index
    %2 = vector.load %arg2[%c0_2, %c0_3, %c0_4] : memref<1x8x32xf32, #tpu.memory_space<vmem>>, vector<1x8x32xf32>
    %3 = vector.shape_cast %2 : vector<1x8x32xf32> to vector<8x32xf32>
    %4 = arith.addf %1, %3 : vector<8x32xf32>
    %c0_5 = arith.constant 0 : index
    %c0_6 = arith.constant 0 : index
    %c0_7 = arith.constant 0 : index
    %5 = vector.load %arg3[%c0_5, %c0_6, %c0_7] : memref<1x16x32xf32, #tpu.memory_space<vmem>>, vector<1x16x32xf32>
    %6 = vector.shape_cast %5 : vector<1x16x32xf32> to vector<16x32xf32>
    %c0_8 = arith.constant 0 : index
    %c0_9 = arith.constant 0 : index
    %c0_10 = arith.constant 0 : index
    %7 = vector.load %arg4[%c0_8, %c0_9, %c0_10] : memref<1x16x32xf32, #tpu.memory_space<vmem>>, vector<1x16x32xf32>
    %8 = vector.shape_cast %7 : vector<1x16x32xf32> to vector<16x32xf32>
    %9 = arith.addf %6, %8 : vector<16x32xf32>
    %c0_11 = arith.constant 0 : index
    %c0_12 = arith.constant 0 : index
    %c0_13 = arith.constant 0 : index
    %10 = vector.load %arg3[%c0_11, %c0_12, %c0_13] : memref<1x16x32xf32, #tpu.memory_space<vmem>>, vector<1x16x32xf32>
    %11 = vector.shape_cast %10 : vector<1x16x32xf32> to vector<16x32xf32>
    %c0_14 = arith.constant 0 : index
    %c0_15 = arith.constant 0 : index
    %c0_16 = arith.constant 0 : index
    %12 = vector.load %arg5[%c0_14, %c0_15, %c0_16] : memref<1x1x16xf32, #tpu.memory_space<vmem>>, vector<1x1x16xf32>
    %13 = vector.shape_cast %12 : vector<1x1x16xf32> to vector<1x16xf32>
    %cst = arith.constant -1.000000e+09 : f32
    %14 = vector.broadcast %cst : f32 to vector<1x16xf32>
    %15 = arith.mulf %13, %14 : vector<1x16xf32>
    %16 = arith.truncf %4 : vector<8x32xf32> to vector<8x32xbf16>
    %17 = arith.truncf %9 : vector<16x32xf32> to vector<16x32xbf16>
    %18 = arith.truncf %11 : vector<16x32xf32> to vector<16x32xbf16>
    %cst_17 = arith.constant 0.000000e+00 : f32
    %19 = vector.broadcast %cst_17 : f32 to vector<8x32xf32>
    %c0_18 = arith.constant 0 : index
    %c0_19 = arith.constant 0 : index
    %c0_20 = arith.constant 0 : index
    %20 = vector.load %arg6[%c0_18, %c0_19, %c0_20] : memref<4x32x8xf32, #tpu.memory_space<vmem>>, vector<1x32x8xf32>
    %21 = vector.shape_cast %20 : vector<1x32x8xf32> to vector<32x8xf32>
    %22 = arith.truncf %21 : vector<32x8xf32> to vector<32x8xbf16>
    %cst_21 = arith.constant dense<0.000000e+00> : vector<8x8xf32>
    %23 = tpu.matmul %16, %22, %cst_21 {dimension_numbers = #tpu.dot_dimension_numbers<[1], [0], [0], [1], [0, 0, 1, 1], [], []>} : vector<8x32xbf16>, vector<32x8xbf16>, vector<8x8xf32> -> vector<8x8xf32>
    %c0_22 = arith.constant 0 : index
    %c0_23 = arith.constant 0 : index
    %c0_24 = arith.constant 0 : index
    %24 = vector.load %arg9[%c0_22, %c0_23, %c0_24] : memref<4x1x8xf32, #tpu.memory_space<vmem>>, vector<1x1x8xf32>
    %25 = vector.shape_cast %24 : vector<1x1x8xf32> to vector<1x8xf32>
    %26 = vector.broadcast %25 : vector<1x8xf32> to vector<8x8xf32>
    %27 = arith.addf %23, %26 : vector<8x8xf32>
    %c0_25 = arith.constant 0 : index
    %c0_26 = arith.constant 0 : index
    %c0_27 = arith.constant 0 : index
    %28 = vector.load %arg7[%c0_25, %c0_26, %c0_27] : memref<4x32x8xf32, #tpu.memory_space<vmem>>, vector<1x32x8xf32>
    %29 = vector.shape_cast %28 : vector<1x32x8xf32> to vector<32x8xf32>
    %30 = arith.truncf %29 : vector<32x8xf32> to vector<32x8xbf16>
    %cst_28 = arith.constant dense<0.000000e+00> : vector<16x8xf32>
    %31 = tpu.matmul %17, %30, %cst_28 {dimension_numbers = #tpu.dot_dimension_numbers<[1], [0], [0], [1], [0, 0, 1, 1], [], []>} : vector<16x32xbf16>, vector<32x8xbf16>, vector<16x8xf32> -> vector<16x8xf32>
    %c0_29 = arith.constant 0 : index
    %c0_30 = arith.constant 0 : index
    %c0_31 = arith.constant 0 : index
    %32 = vector.load %arg10[%c0_29, %c0_30, %c0_31] : memref<4x1x8xf32, #tpu.memory_space<vmem>>, vector<1x1x8xf32>
    %33 = vector.shape_cast %32 : vector<1x1x8xf32> to vector<1x8xf32>
    %34 = vector.broadcast %33 : vector<1x8xf32> to vector<16x8xf32>
    %35 = arith.addf %31, %34 : vector<16x8xf32>
    %c0_32 = arith.constant 0 : index
    %c0_33 = arith.constant 0 : index
    %c0_34 = arith.constant 0 : index
    %36 = vector.load %arg8[%c0_32, %c0_33, %c0_34] : memref<4x32x8xf32, #tpu.memory_space<vmem>>, vector<1x32x8xf32>
    %37 = vector.shape_cast %36 : vector<1x32x8xf32> to vector<32x8xf32>
    %38 = arith.truncf %37 : vector<32x8xf32> to vector<32x8xbf16>
    %cst_35 = arith.constant dense<0.000000e+00> : vector<16x8xf32>
    %39 = tpu.matmul %18, %38, %cst_35 {dimension_numbers = #tpu.dot_dimension_numbers<[1], [0], [0], [1], [0, 0, 1, 1], [], []>} : vector<16x32xbf16>, vector<32x8xbf16>, vector<16x8xf32> -> vector<16x8xf32>
    %c0_36 = arith.constant 0 : index
    %c0_37 = arith.constant 0 : index
    %c0_38 = arith.constant 0 : index
    %40 = vector.load %arg11[%c0_36, %c0_37, %c0_38] : memref<4x1x8xf32, #tpu.memory_space<vmem>>, vector<1x1x8xf32>
    %41 = vector.shape_cast %40 : vector<1x1x8xf32> to vector<1x8xf32>
    %42 = vector.broadcast %41 : vector<1x8xf32> to vector<16x8xf32>
    %43 = arith.addf %39, %42 : vector<16x8xf32>
    %44 = arith.truncf %27 : vector<8x8xf32> to vector<8x8xbf16>
    %45 = arith.truncf %35 : vector<16x8xf32> to vector<16x8xbf16>
    %cst_39 = arith.constant dense<0.000000e+00> : vector<8x16xf32>
    %46 = tpu.matmul %44, %45, %cst_39 {dimension_numbers = #tpu.dot_dimension_numbers<[1], [1], [0], [0], [0, 0, 1, 0], [], []>} : vector<8x8xbf16>, vector<16x8xbf16>, vector<8x16xf32> -> vector<8x16xf32>
    %cst_40 = arith.constant 0.353553385 : f32
    %47 = vector.broadcast %cst_40 : f32 to vector<8x16xf32>
    %48 = arith.mulf %46, %47 : vector<8x16xf32>
    %49 = vector.broadcast %15 : vector<1x16xf32> to vector<8x16xf32>
    %50 = arith.addf %48, %49 : vector<8x16xf32>
    %cst_41 = arith.constant dense<0xFF800000> : vector<8xf32>
    %51 = vector.multi_reduction <maximumf>, %50, %cst_41 [1] : vector<8x16xf32> to vector<8xf32>
    %52 = vector.shape_cast %51 : vector<8xf32> to vector<8x1xf32>
    %53 = vector.broadcast %52 : vector<8x1xf32> to vector<8x16xf32>
    %54 = arith.subf %50, %53 : vector<8x16xf32>
    %55 = math.exp %54 : vector<8x16xf32>
    %cst_42 = arith.constant dense<0.000000e+00> : vector<8xf32>
    %56 = vector.multi_reduction <add>, %55, %cst_42 [1] : vector<8x16xf32> to vector<8xf32>
    %57 = vector.shape_cast %56 : vector<8xf32> to vector<8x1xf32>
    %58 = tpu.reciprocal %57 {approx = true} : vector<8x1xf32> -> vector<8x1xf32>
    %59 = vector.broadcast %58 : vector<8x1xf32> to vector<8x16xf32>
    %60 = arith.mulf %55, %59 : vector<8x16xf32>
    %61 = arith.truncf %60 : vector<8x16xf32> to vector<8x16xbf16>
    %62 = arith.truncf %43 : vector<16x8xf32> to vector<16x8xbf16>
    %cst_43 = arith.constant dense<0.000000e+00> : vector<8x8xf32>
    %63 = tpu.matmul %61, %62, %cst_43 {dimension_numbers = #tpu.dot_dimension_numbers<[1], [0], [0], [1], [0, 0, 1, 1], [], []>} : vector<8x16xbf16>, vector<16x8xbf16>, vector<8x8xf32> -> vector<8x8xf32>
    %64 = arith.truncf %63 : vector<8x8xf32> to vector<8x8xbf16>
    %c0_44 = arith.constant 0 : index
    %c0_45 = arith.constant 0 : index
    %c0_46 = arith.constant 0 : index
    %65 = vector.load %arg12[%c0_44, %c0_45, %c0_46] : memref<4x8x32xf32, #tpu.memory_space<vmem>>, vector<1x8x32xf32>
    %66 = vector.shape_cast %65 : vector<1x8x32xf32> to vector<8x32xf32>
    %67 = arith.truncf %66 : vector<8x32xf32> to vector<8x32xbf16>
    %cst_47 = arith.constant dense<0.000000e+00> : vector<8x32xf32>
    %68 = tpu.matmul %64, %67, %cst_47 {dimension_numbers = #tpu.dot_dimension_numbers<[1], [0], [0], [1], [0, 0, 1, 1], [], []>} : vector<8x8xbf16>, vector<8x32xbf16>, vector<8x32xf32> -> vector<8x32xf32>
    %69 = arith.addf %19, %68 : vector<8x32xf32>
    %c1 = arith.constant 1 : index
    %c0_48 = arith.constant 0 : index
    %c0_49 = arith.constant 0 : index
    %70 = vector.load %arg6[%c1, %c0_48, %c0_49] : memref<4x32x8xf32, #tpu.memory_space<vmem>>, vector<1x32x8xf32>
    %71 = vector.shape_cast %70 : vector<1x32x8xf32> to vector<32x8xf32>
    %72 = arith.truncf %71 : vector<32x8xf32> to vector<32x8xbf16>
    %cst_50 = arith.constant dense<0.000000e+00> : vector<8x8xf32>
    %73 = tpu.matmul %16, %72, %cst_50 {dimension_numbers = #tpu.dot_dimension_numbers<[1], [0], [0], [1], [0, 0, 1, 1], [], []>} : vector<8x32xbf16>, vector<32x8xbf16>, vector<8x8xf32> -> vector<8x8xf32>
    %c1_51 = arith.constant 1 : index
    %c0_52 = arith.constant 0 : index
    %c0_53 = arith.constant 0 : index
    %74 = vector.load %arg9[%c1_51, %c0_52, %c0_53] : memref<4x1x8xf32, #tpu.memory_space<vmem>>, vector<1x1x8xf32>
    %75 = vector.shape_cast %74 : vector<1x1x8xf32> to vector<1x8xf32>
    %76 = vector.broadcast %75 : vector<1x8xf32> to vector<8x8xf32>
    %77 = arith.addf %73, %76 : vector<8x8xf32>
    %c1_54 = arith.constant 1 : index
    %c0_55 = arith.constant 0 : index
    %c0_56 = arith.constant 0 : index
    %78 = vector.load %arg7[%c1_54, %c0_55, %c0_56] : memref<4x32x8xf32, #tpu.memory_space<vmem>>, vector<1x32x8xf32>
    %79 = vector.shape_cast %78 : vector<1x32x8xf32> to vector<32x8xf32>
    %80 = arith.truncf %79 : vector<32x8xf32> to vector<32x8xbf16>
    %cst_57 = arith.constant dense<0.000000e+00> : vector<16x8xf32>
    %81 = tpu.matmul %17, %80, %cst_57 {dimension_numbers = #tpu.dot_dimension_numbers<[1], [0], [0], [1], [0, 0, 1, 1], [], []>} : vector<16x32xbf16>, vector<32x8xbf16>, vector<16x8xf32> -> vector<16x8xf32>
    %c1_58 = arith.constant 1 : index
    %c0_59 = arith.constant 0 : index
    %c0_60 = arith.constant 0 : index
    %82 = vector.load %arg10[%c1_58, %c0_59, %c0_60] : memref<4x1x8xf32, #tpu.memory_space<vmem>>, vector<1x1x8xf32>
    %83 = vector.shape_cast %82 : vector<1x1x8xf32> to vector<1x8xf32>
    %84 = vector.broadcast %83 : vector<1x8xf32> to vector<16x8xf32>
    %85 = arith.addf %81, %84 : vector<16x8xf32>
    %c1_61 = arith.constant 1 : index
    %c0_62 = arith.constant 0 : index
    %c0_63 = arith.constant 0 : index
    %86 = vector.load %arg8[%c1_61, %c0_62, %c0_63] : memref<4x32x8xf32, #tpu.memory_space<vmem>>, vector<1x32x8xf32>
    %87 = vector.shape_cast %86 : vector<1x32x8xf32> to vector<32x8xf32>
    %88 = arith.truncf %87 : vector<32x8xf32> to vector<32x8xbf16>
    %cst_64 = arith.constant dense<0.000000e+00> : vector<16x8xf32>
    %89 = tpu.matmul %18, %88, %cst_64 {dimension_numbers = #tpu.dot_dimension_numbers<[1], [0], [0], [1], [0, 0, 1, 1], [], []>} : vector<16x32xbf16>, vector<32x8xbf16>, vector<16x8xf32> -> vector<16x8xf32>
    %c1_65 = arith.constant 1 : index
    %c0_66 = arith.constant 0 : index
    %c0_67 = arith.constant 0 : index
    %90 = vector.load %arg11[%c1_65, %c0_66, %c0_67] : memref<4x1x8xf32, #tpu.memory_space<vmem>>, vector<1x1x8xf32>
    %91 = vector.shape_cast %90 : vector<1x1x8xf32> to vector<1x8xf32>
    %92 = vector.broadcast %91 : vector<1x8xf32> to vector<16x8xf32>
    %93 = arith.addf %89, %92 : vector<16x8xf32>
    %94 = arith.truncf %77 : vector<8x8xf32> to vector<8x8xbf16>
    %95 = arith.truncf %85 : vector<16x8xf32> to vector<16x8xbf16>
    %cst_68 = arith.constant dense<0.000000e+00> : vector<8x16xf32>
    %96 = tpu.matmul %94, %95, %cst_68 {dimension_numbers = #tpu.dot_dimension_numbers<[1], [1], [0], [0], [0, 0, 1, 0], [], []>} : vector<8x8xbf16>, vector<16x8xbf16>, vector<8x16xf32> -> vector<8x16xf32>
    %cst_69 = arith.constant 0.353553385 : f32
    %97 = vector.broadcast %cst_69 : f32 to vector<8x16xf32>
    %98 = arith.mulf %96, %97 : vector<8x16xf32>
    %99 = vector.broadcast %15 : vector<1x16xf32> to vector<8x16xf32>
    %100 = arith.addf %98, %99 : vector<8x16xf32>
    %cst_70 = arith.constant dense<0xFF800000> : vector<8xf32>
    %101 = vector.multi_reduction <maximumf>, %100, %cst_70 [1] : vector<8x16xf32> to vector<8xf32>
    %102 = vector.shape_cast %101 : vector<8xf32> to vector<8x1xf32>
    %103 = vector.broadcast %102 : vector<8x1xf32> to vector<8x16xf32>
    %104 = arith.subf %100, %103 : vector<8x16xf32>
    %105 = math.exp %104 : vector<8x16xf32>
    %cst_71 = arith.constant dense<0.000000e+00> : vector<8xf32>
    %106 = vector.multi_reduction <add>, %105, %cst_71 [1] : vector<8x16xf32> to vector<8xf32>
    %107 = vector.shape_cast %106 : vector<8xf32> to vector<8x1xf32>
    %108 = tpu.reciprocal %107 {approx = true} : vector<8x1xf32> -> vector<8x1xf32>
    %109 = vector.broadcast %108 : vector<8x1xf32> to vector<8x16xf32>
    %110 = arith.mulf %105, %109 : vector<8x16xf32>
    %111 = arith.truncf %110 : vector<8x16xf32> to vector<8x16xbf16>
    %112 = arith.truncf %93 : vector<16x8xf32> to vector<16x8xbf16>
    %cst_72 = arith.constant dense<0.000000e+00> : vector<8x8xf32>
    %113 = tpu.matmul %111, %112, %cst_72 {dimension_numbers = #tpu.dot_dimension_numbers<[1], [0], [0], [1], [0, 0, 1, 1], [], []>} : vector<8x16xbf16>, vector<16x8xbf16>, vector<8x8xf32> -> vector<8x8xf32>
    %114 = arith.truncf %113 : vector<8x8xf32> to vector<8x8xbf16>
    %c1_73 = arith.constant 1 : index
    %c0_74 = arith.constant 0 : index
    %c0_75 = arith.constant 0 : index
    %115 = vector.load %arg12[%c1_73, %c0_74, %c0_75] : memref<4x8x32xf32, #tpu.memory_space<vmem>>, vector<1x8x32xf32>
    %116 = vector.shape_cast %115 : vector<1x8x32xf32> to vector<8x32xf32>
    %117 = arith.truncf %116 : vector<8x32xf32> to vector<8x32xbf16>
    %cst_76 = arith.constant dense<0.000000e+00> : vector<8x32xf32>
    %118 = tpu.matmul %114, %117, %cst_76 {dimension_numbers = #tpu.dot_dimension_numbers<[1], [0], [0], [1], [0, 0, 1, 1], [], []>} : vector<8x8xbf16>, vector<8x32xbf16>, vector<8x32xf32> -> vector<8x32xf32>
    %119 = arith.addf %69, %118 : vector<8x32xf32>
    %c2 = arith.constant 2 : index
    %c0_77 = arith.constant 0 : index
    %c0_78 = arith.constant 0 : index
    %120 = vector.load %arg6[%c2, %c0_77, %c0_78] : memref<4x32x8xf32, #tpu.memory_space<vmem>>, vector<1x32x8xf32>
    %121 = vector.shape_cast %120 : vector<1x32x8xf32> to vector<32x8xf32>
    %122 = arith.truncf %121 : vector<32x8xf32> to vector<32x8xbf16>
    %cst_79 = arith.constant dense<0.000000e+00> : vector<8x8xf32>
    %123 = tpu.matmul %16, %122, %cst_79 {dimension_numbers = #tpu.dot_dimension_numbers<[1], [0], [0], [1], [0, 0, 1, 1], [], []>} : vector<8x32xbf16>, vector<32x8xbf16>, vector<8x8xf32> -> vector<8x8xf32>
    %c2_80 = arith.constant 2 : index
    %c0_81 = arith.constant 0 : index
    %c0_82 = arith.constant 0 : index
    %124 = vector.load %arg9[%c2_80, %c0_81, %c0_82] : memref<4x1x8xf32, #tpu.memory_space<vmem>>, vector<1x1x8xf32>
    %125 = vector.shape_cast %124 : vector<1x1x8xf32> to vector<1x8xf32>
    %126 = vector.broadcast %125 : vector<1x8xf32> to vector<8x8xf32>
    %127 = arith.addf %123, %126 : vector<8x8xf32>
    %c2_83 = arith.constant 2 : index
    %c0_84 = arith.constant 0 : index
    %c0_85 = arith.constant 0 : index
    %128 = vector.load %arg7[%c2_83, %c0_84, %c0_85] : memref<4x32x8xf32, #tpu.memory_space<vmem>>, vector<1x32x8xf32>
    %129 = vector.shape_cast %128 : vector<1x32x8xf32> to vector<32x8xf32>
    %130 = arith.truncf %129 : vector<32x8xf32> to vector<32x8xbf16>
    %cst_86 = arith.constant dense<0.000000e+00> : vector<16x8xf32>
    %131 = tpu.matmul %17, %130, %cst_86 {dimension_numbers = #tpu.dot_dimension_numbers<[1], [0], [0], [1], [0, 0, 1, 1], [], []>} : vector<16x32xbf16>, vector<32x8xbf16>, vector<16x8xf32> -> vector<16x8xf32>
    %c2_87 = arith.constant 2 : index
    %c0_88 = arith.constant 0 : index
    %c0_89 = arith.constant 0 : index
    %132 = vector.load %arg10[%c2_87, %c0_88, %c0_89] : memref<4x1x8xf32, #tpu.memory_space<vmem>>, vector<1x1x8xf32>
    %133 = vector.shape_cast %132 : vector<1x1x8xf32> to vector<1x8xf32>
    %134 = vector.broadcast %133 : vector<1x8xf32> to vector<16x8xf32>
    %135 = arith.addf %131, %134 : vector<16x8xf32>
    %c2_90 = arith.constant 2 : index
    %c0_91 = arith.constant 0 : index
    %c0_92 = arith.constant 0 : index
    %136 = vector.load %arg8[%c2_90, %c0_91, %c0_92] : memref<4x32x8xf32, #tpu.memory_space<vmem>>, vector<1x32x8xf32>
    %137 = vector.shape_cast %136 : vector<1x32x8xf32> to vector<32x8xf32>
    %138 = arith.truncf %137 : vector<32x8xf32> to vector<32x8xbf16>
    %cst_93 = arith.constant dense<0.000000e+00> : vector<16x8xf32>
    %139 = tpu.matmul %18, %138, %cst_93 {dimension_numbers = #tpu.dot_dimension_numbers<[1], [0], [0], [1], [0, 0, 1, 1], [], []>} : vector<16x32xbf16>, vector<32x8xbf16>, vector<16x8xf32> -> vector<16x8xf32>
    %c2_94 = arith.constant 2 : index
    %c0_95 = arith.constant 0 : index
    %c0_96 = arith.constant 0 : index
    %140 = vector.load %arg11[%c2_94, %c0_95, %c0_96] : memref<4x1x8xf32, #tpu.memory_space<vmem>>, vector<1x1x8xf32>
    %141 = vector.shape_cast %140 : vector<1x1x8xf32> to vector<1x8xf32>
    %142 = vector.broadcast %141 : vector<1x8xf32> to vector<16x8xf32>
    %143 = arith.addf %139, %142 : vector<16x8xf32>
    %144 = arith.truncf %127 : vector<8x8xf32> to vector<8x8xbf16>
    %145 = arith.truncf %135 : vector<16x8xf32> to vector<16x8xbf16>
    %cst_97 = arith.constant dense<0.000000e+00> : vector<8x16xf32>
    %146 = tpu.matmul %144, %145, %cst_97 {dimension_numbers = #tpu.dot_dimension_numbers<[1], [1], [0], [0], [0, 0, 1, 0], [], []>} : vector<8x8xbf16>, vector<16x8xbf16>, vector<8x16xf32> -> vector<8x16xf32>
    %cst_98 = arith.constant 0.353553385 : f32
    %147 = vector.broadcast %cst_98 : f32 to vector<8x16xf32>
    %148 = arith.mulf %146, %147 : vector<8x16xf32>
    %149 = vector.broadcast %15 : vector<1x16xf32> to vector<8x16xf32>
    %150 = arith.addf %148, %149 : vector<8x16xf32>
    %cst_99 = arith.constant dense<0xFF800000> : vector<8xf32>
    %151 = vector.multi_reduction <maximumf>, %150, %cst_99 [1] : vector<8x16xf32> to vector<8xf32>
    %152 = vector.shape_cast %151 : vector<8xf32> to vector<8x1xf32>
    %153 = vector.broadcast %152 : vector<8x1xf32> to vector<8x16xf32>
    %154 = arith.subf %150, %153 : vector<8x16xf32>
    %155 = math.exp %154 : vector<8x16xf32>
    %cst_100 = arith.constant dense<0.000000e+00> : vector<8xf32>
    %156 = vector.multi_reduction <add>, %155, %cst_100 [1] : vector<8x16xf32> to vector<8xf32>
    %157 = vector.shape_cast %156 : vector<8xf32> to vector<8x1xf32>
    %158 = tpu.reciprocal %157 {approx = true} : vector<8x1xf32> -> vector<8x1xf32>
    %159 = vector.broadcast %158 : vector<8x1xf32> to vector<8x16xf32>
    %160 = arith.mulf %155, %159 : vector<8x16xf32>
    %161 = arith.truncf %160 : vector<8x16xf32> to vector<8x16xbf16>
    %162 = arith.truncf %143 : vector<16x8xf32> to vector<16x8xbf16>
    %cst_101 = arith.constant dense<0.000000e+00> : vector<8x8xf32>
    %163 = tpu.matmul %161, %162, %cst_101 {dimension_numbers = #tpu.dot_dimension_numbers<[1], [0], [0], [1], [0, 0, 1, 1], [], []>} : vector<8x16xbf16>, vector<16x8xbf16>, vector<8x8xf32> -> vector<8x8xf32>
    %164 = arith.truncf %163 : vector<8x8xf32> to vector<8x8xbf16>
    %c2_102 = arith.constant 2 : index
    %c0_103 = arith.constant 0 : index
    %c0_104 = arith.constant 0 : index
    %165 = vector.load %arg12[%c2_102, %c0_103, %c0_104] : memref<4x8x32xf32, #tpu.memory_space<vmem>>, vector<1x8x32xf32>
    %166 = vector.shape_cast %165 : vector<1x8x32xf32> to vector<8x32xf32>
    %167 = arith.truncf %166 : vector<8x32xf32> to vector<8x32xbf16>
    %cst_105 = arith.constant dense<0.000000e+00> : vector<8x32xf32>
    %168 = tpu.matmul %164, %167, %cst_105 {dimension_numbers = #tpu.dot_dimension_numbers<[1], [0], [0], [1], [0, 0, 1, 1], [], []>} : vector<8x8xbf16>, vector<8x32xbf16>, vector<8x32xf32> -> vector<8x32xf32>
    %169 = arith.addf %119, %168 : vector<8x32xf32>
    %c3 = arith.constant 3 : index
    %c0_106 = arith.constant 0 : index
    %c0_107 = arith.constant 0 : index
    %170 = vector.load %arg6[%c3, %c0_106, %c0_107] : memref<4x32x8xf32, #tpu.memory_space<vmem>>, vector<1x32x8xf32>
    %171 = vector.shape_cast %170 : vector<1x32x8xf32> to vector<32x8xf32>
    %172 = arith.truncf %171 : vector<32x8xf32> to vector<32x8xbf16>
    %cst_108 = arith.constant dense<0.000000e+00> : vector<8x8xf32>
    %173 = tpu.matmul %16, %172, %cst_108 {dimension_numbers = #tpu.dot_dimension_numbers<[1], [0], [0], [1], [0, 0, 1, 1], [], []>} : vector<8x32xbf16>, vector<32x8xbf16>, vector<8x8xf32> -> vector<8x8xf32>
    %c3_109 = arith.constant 3 : index
    %c0_110 = arith.constant 0 : index
    %c0_111 = arith.constant 0 : index
    %174 = vector.load %arg9[%c3_109, %c0_110, %c0_111] : memref<4x1x8xf32, #tpu.memory_space<vmem>>, vector<1x1x8xf32>
    %175 = vector.shape_cast %174 : vector<1x1x8xf32> to vector<1x8xf32>
    %176 = vector.broadcast %175 : vector<1x8xf32> to vector<8x8xf32>
    %177 = arith.addf %173, %176 : vector<8x8xf32>
    %c3_112 = arith.constant 3 : index
    %c0_113 = arith.constant 0 : index
    %c0_114 = arith.constant 0 : index
    %178 = vector.load %arg7[%c3_112, %c0_113, %c0_114] : memref<4x32x8xf32, #tpu.memory_space<vmem>>, vector<1x32x8xf32>
    %179 = vector.shape_cast %178 : vector<1x32x8xf32> to vector<32x8xf32>
    %180 = arith.truncf %179 : vector<32x8xf32> to vector<32x8xbf16>
    %cst_115 = arith.constant dense<0.000000e+00> : vector<16x8xf32>
    %181 = tpu.matmul %17, %180, %cst_115 {dimension_numbers = #tpu.dot_dimension_numbers<[1], [0], [0], [1], [0, 0, 1, 1], [], []>} : vector<16x32xbf16>, vector<32x8xbf16>, vector<16x8xf32> -> vector<16x8xf32>
    %c3_116 = arith.constant 3 : index
    %c0_117 = arith.constant 0 : index
    %c0_118 = arith.constant 0 : index
    %182 = vector.load %arg10[%c3_116, %c0_117, %c0_118] : memref<4x1x8xf32, #tpu.memory_space<vmem>>, vector<1x1x8xf32>
    %183 = vector.shape_cast %182 : vector<1x1x8xf32> to vector<1x8xf32>
    %184 = vector.broadcast %183 : vector<1x8xf32> to vector<16x8xf32>
    %185 = arith.addf %181, %184 : vector<16x8xf32>
    %c3_119 = arith.constant 3 : index
    %c0_120 = arith.constant 0 : index
    %c0_121 = arith.constant 0 : index
    %186 = vector.load %arg8[%c3_119, %c0_120, %c0_121] : memref<4x32x8xf32, #tpu.memory_space<vmem>>, vector<1x32x8xf32>
    %187 = vector.shape_cast %186 : vector<1x32x8xf32> to vector<32x8xf32>
    %188 = arith.truncf %187 : vector<32x8xf32> to vector<32x8xbf16>
    %cst_122 = arith.constant dense<0.000000e+00> : vector<16x8xf32>
    %189 = tpu.matmul %18, %188, %cst_122 {dimension_numbers = #tpu.dot_dimension_numbers<[1], [0], [0], [1], [0, 0, 1, 1], [], []>} : vector<16x32xbf16>, vector<32x8xbf16>, vector<16x8xf32> -> vector<16x8xf32>
    %c3_123 = arith.constant 3 : index
    %c0_124 = arith.constant 0 : index
    %c0_125 = arith.constant 0 : index
    %190 = vector.load %arg11[%c3_123, %c0_124, %c0_125] : memref<4x1x8xf32, #tpu.memory_space<vmem>>, vector<1x1x8xf32>
    %191 = vector.shape_cast %190 : vector<1x1x8xf32> to vector<1x8xf32>
    %192 = vector.broadcast %191 : vector<1x8xf32> to vector<16x8xf32>
    %193 = arith.addf %189, %192 : vector<16x8xf32>
    %194 = arith.truncf %177 : vector<8x8xf32> to vector<8x8xbf16>
    %195 = arith.truncf %185 : vector<16x8xf32> to vector<16x8xbf16>
    %cst_126 = arith.constant dense<0.000000e+00> : vector<8x16xf32>
    %196 = tpu.matmul %194, %195, %cst_126 {dimension_numbers = #tpu.dot_dimension_numbers<[1], [1], [0], [0], [0, 0, 1, 0], [], []>} : vector<8x8xbf16>, vector<16x8xbf16>, vector<8x16xf32> -> vector<8x16xf32>
    %cst_127 = arith.constant 0.353553385 : f32
    %197 = vector.broadcast %cst_127 : f32 to vector<8x16xf32>
    %198 = arith.mulf %196, %197 : vector<8x16xf32>
    %199 = vector.broadcast %15 : vector<1x16xf32> to vector<8x16xf32>
    %200 = arith.addf %198, %199 : vector<8x16xf32>
    %cst_128 = arith.constant dense<0xFF800000> : vector<8xf32>
    %201 = vector.multi_reduction <maximumf>, %200, %cst_128 [1] : vector<8x16xf32> to vector<8xf32>
    %202 = vector.shape_cast %201 : vector<8xf32> to vector<8x1xf32>
    %203 = vector.broadcast %202 : vector<8x1xf32> to vector<8x16xf32>
    %204 = arith.subf %200, %203 : vector<8x16xf32>
    %205 = math.exp %204 : vector<8x16xf32>
    %cst_129 = arith.constant dense<0.000000e+00> : vector<8xf32>
    %206 = vector.multi_reduction <add>, %205, %cst_129 [1] : vector<8x16xf32> to vector<8xf32>
    %207 = vector.shape_cast %206 : vector<8xf32> to vector<8x1xf32>
    %208 = tpu.reciprocal %207 {approx = true} : vector<8x1xf32> -> vector<8x1xf32>
    %209 = vector.broadcast %208 : vector<8x1xf32> to vector<8x16xf32>
    %210 = arith.mulf %205, %209 : vector<8x16xf32>
    %211 = arith.truncf %210 : vector<8x16xf32> to vector<8x16xbf16>
    %212 = arith.truncf %193 : vector<16x8xf32> to vector<16x8xbf16>
    %cst_130 = arith.constant dense<0.000000e+00> : vector<8x8xf32>
    %213 = tpu.matmul %211, %212, %cst_130 {dimension_numbers = #tpu.dot_dimension_numbers<[1], [0], [0], [1], [0, 0, 1, 1], [], []>} : vector<8x16xbf16>, vector<16x8xbf16>, vector<8x8xf32> -> vector<8x8xf32>
    %214 = arith.truncf %213 : vector<8x8xf32> to vector<8x8xbf16>
    %c3_131 = arith.constant 3 : index
    %c0_132 = arith.constant 0 : index
    %c0_133 = arith.constant 0 : index
    %215 = vector.load %arg12[%c3_131, %c0_132, %c0_133] : memref<4x8x32xf32, #tpu.memory_space<vmem>>, vector<1x8x32xf32>
    %216 = vector.shape_cast %215 : vector<1x8x32xf32> to vector<8x32xf32>
    %217 = arith.truncf %216 : vector<8x32xf32> to vector<8x32xbf16>
    %cst_134 = arith.constant dense<0.000000e+00> : vector<8x32xf32>
    %218 = tpu.matmul %214, %217, %cst_134 {dimension_numbers = #tpu.dot_dimension_numbers<[1], [0], [0], [1], [0, 0, 1, 1], [], []>} : vector<8x8xbf16>, vector<8x32xbf16>, vector<8x32xf32> -> vector<8x32xf32>
    %219 = arith.addf %169, %218 : vector<8x32xf32>
    %c0_135 = arith.constant 0 : index
    %c0_136 = arith.constant 0 : index
    %220 = vector.load %arg13[%c0_135, %c0_136] : memref<1x32xf32, #tpu.memory_space<vmem>>, vector<1x32xf32>
    %221 = vector.broadcast %220 : vector<1x32xf32> to vector<8x32xf32>
    %222 = arith.addf %219, %221 : vector<8x32xf32>
    %223 = arith.addf %1, %222 : vector<8x32xf32>
    %c0_137 = arith.constant 0 : index
    %c0_138 = arith.constant 0 : index
    %224 = vector.load %arg14[%c0_137, %c0_138] : memref<1x32xf32, #tpu.memory_space<vmem>>, vector<1x32xf32>
    %c0_139 = arith.constant 0 : index
    %c0_140 = arith.constant 0 : index
    %225 = vector.load %arg15[%c0_139, %c0_140] : memref<1x32xf32, #tpu.memory_space<vmem>>, vector<1x32xf32>
    %cst_141 = arith.constant dense<0.000000e+00> : vector<8xf32>
    %226 = vector.multi_reduction <add>, %223, %cst_141 [1] : vector<8x32xf32> to vector<8xf32>
    %227 = vector.shape_cast %226 : vector<8xf32> to vector<8x1xf32>
    %cst_142 = arith.constant 3.200000e+01 : f32
    %228 = vector.broadcast %cst_142 : f32 to vector<8x1xf32>
    %229 = arith.divf %227, %228 : vector<8x1xf32>
    %230 = vector.broadcast %229 : vector<8x1xf32> to vector<8x32xf32>
    %231 = arith.subf %223, %230 : vector<8x32xf32>
    %232 = arith.mulf %231, %231 : vector<8x32xf32>
    %cst_143 = arith.constant dense<0.000000e+00> : vector<8xf32>
    %233 = vector.multi_reduction <add>, %232, %cst_143 [1] : vector<8x32xf32> to vector<8xf32>
    %234 = vector.shape_cast %233 : vector<8xf32> to vector<8x1xf32>
    %cst_144 = arith.constant 3.200000e+01 : f32
    %235 = vector.broadcast %cst_144 : f32 to vector<8x1xf32>
    %236 = arith.divf %234, %235 : vector<8x1xf32>
    %cst_145 = arith.constant 9.99999974E-6 : f32
    %237 = vector.broadcast %cst_145 : f32 to vector<8x1xf32>
    %238 = arith.addf %236, %237 : vector<8x1xf32>
    %239 = math.rsqrt %238 : vector<8x1xf32>
    %240 = vector.broadcast %239 : vector<8x1xf32> to vector<8x32xf32>
    %241 = arith.mulf %231, %240 : vector<8x32xf32>
    %242 = vector.broadcast %224 : vector<1x32xf32> to vector<8x32xf32>
    %243 = arith.mulf %241, %242 : vector<8x32xf32>
    %244 = vector.broadcast %225 : vector<1x32xf32> to vector<8x32xf32>
    %245 = arith.addf %243, %244 : vector<8x32xf32>
    %c0_146 = arith.constant 0 : index
    %c0_147 = arith.constant 0 : index
    %c0_148 = arith.constant 0 : index
    %246 = vector.load %arg16[%c0_146, %c0_147, %c0_148] : memref<1x8x32xf32, #tpu.memory_space<vmem>>, vector<1x8x32xf32>
    %247 = vector.shape_cast %246 : vector<1x8x32xf32> to vector<8x32xf32>
    %248 = vector.shape_cast %245 : vector<8x32xf32> to vector<1x8x32xf32>
    tpu.vector_store %arg16[%c0_146, %c0_147, %c0_148], %248 {strides = array<i32>} : memref<1x8x32xf32, #tpu.memory_space<vmem>>, vector<1x8x32xf32>,
    return
  }
  func.func @transform_0(%arg0: i32) -> (i32, i32, i32) {
    %c0_i32 = arith.constant 0 : i32
    %c0_i32_0 = arith.constant 0 : i32
    %c0_i32_1 = arith.constant 0 : i32
    return %arg0, %c0_i32, %c0_i32_0 : i32, i32, i32
  }
  func.func @transform_1(%arg0: i32) -> (i32, i32, i32) {
    %c0_i32 = arith.constant 0 : i32
    %c0_i32_0 = arith.constant 0 : i32
    %c0_i32_1 = arith.constant 0 : i32
    return %arg0, %c0_i32, %c0_i32_0 : i32, i32, i32
  }
  func.func @transform_2(%arg0: i32) -> (i32, i32, i32) {
    %c0_i32 = arith.constant 0 : i32
    %c0_i32_0 = arith.constant 0 : i32
    %c0_i32_1 = arith.constant 0 : i32
    return %arg0, %c0_i32, %c0_i32_0 : i32, i32, i32
  }
  func.func @transform_3(%arg0: i32) -> (i32, i32, i32) {
    %c0_i32 = arith.constant 0 : i32
    %c0_i32_0 = arith.constant 0 : i32
    %c0_i32_1 = arith.constant 0 : i32
    return %arg0, %c0_i32, %c0_i32_0 : i32, i32, i32
  }
  func.func @transform_4(%arg0: i32) -> (i32, i32, i32) {
    %c0_i32 = arith.constant 0 : i32
    %c0_i32_0 = arith.constant 0 : i32
    %c0_i32_1 = arith.constant 0 : i32
    return %arg0, %c0_i32, %c0_i32_0 : i32, i32, i32
  }
  func.func @transform_5(%arg0: i32) -> (i32, i32, i32) {
    %c0_i32 = arith.constant 0 : i32
    %c0_i32_0 = arith.constant 0 : i32
    %c0_i32_1 = arith.constant 0 : i32
    %c0_i32_2 = arith.constant 0 : i32
    return %c0_i32, %c0_i32_0, %c0_i32_1 : i32, i32, i32
  }
  func.func @transform_6(%arg0: i32) -> (i32, i32, i32) {
    %c0_i32 = arith.constant 0 : i32
    %c0_i32_0 = arith.constant 0 : i32
    %c0_i32_1 = arith.constant 0 : i32
    %c0_i32_2 = arith.constant 0 : i32
    return %c0_i32, %c0_i32_0, %c0_i32_1 : i32, i32, i32
  }
  func.func @transform_7(%arg0: i32) -> (i32, i32, i32) {
    %c0_i32 = arith.constant 0 : i32
    %c0_i32_0 = arith.constant 0 : i32
    %c0_i32_1 = arith.constant 0 : i32
    %c0_i32_2 = arith.constant 0 : i32
    return %c0_i32, %c0_i32_0, %c0_i32_1 : i32, i32, i32
  }
  func.func @transform_8(%arg0: i32) -> (i32, i32, i32) {
    %c0_i32 = arith.constant 0 : i32
    %c0_i32_0 = arith.constant 0 : i32
    %c0_i32_1 = arith.constant 0 : i32
    %c0_i32_2 = arith.constant 0 : i32
    return %c0_i32, %c0_i32_0, %c0_i32_1 : i32, i32, i32
  }
  func.func @transform_9(%arg0: i32) -> (i32, i32, i32) {
    %c0_i32 = arith.constant 0 : i32
    %c0_i32_0 = arith.constant 0 : i32
    %c0_i32_1 = arith.constant 0 : i32
    %c0_i32_2 = arith.constant 0 : i32
    return %c0_i32, %c0_i32_0, %c0_i32_1 : i32, i32, i32
  }
  func.func @transform_10(%arg0: i32) -> (i32, i32, i32) {
    %c0_i32 = arith.constant 0 : i32
    %c0_i32_0 = arith.constant 0 : i32
    %c0_i32_1 = arith.constant 0 : i32
    %c0_i32_2 = arith.constant 0 : i32
    return %c0_i32, %c0_i32_0, %c0_i32_1 : i32, i32, i32
  }
  func.func @transform_11(%arg0: i32) -> (i32, i32, i32) {
    %c0_i32 = arith.constant 0 : i32
    %c0_i32_0 = arith.constant 0 : i32
    %c0_i32_1 = arith.constant 0 : i32
    %c0_i32_2 = arith.constant 0 : i32
    return %c0_i32, %c0_i32_0, %c0_i32_1 : i32, i32, i32
  }
  func.func @transform_12(%arg0: i32) -> (i32, i32) {
    %c0_i32 = arith.constant 0 : i32
    %c0_i32_0 = arith.constant 0 : i32
    %c0_i32_1 = arith.constant 0 : i32
    return %c0_i32, %c0_i32_0 : i32, i32
  }
  func.func @transform_13(%arg0: i32) -> (i32, i32) {
    %c0_i32 = arith.constant 0 : i32
    %c0_i32_0 = arith.constant 0 : i32
    %c0_i32_1 = arith.constant 0 : i32
    return %c0_i32, %c0_i32_0 : i32, i32
  }
  func.func @transform_14(%arg0: i32) -> (i32, i32) {
    %c0_i32 = arith.constant 0 : i32
    %c0_i32_0 = arith.constant 0 : i32
    %c0_i32_1 = arith.constant 0 : i32
    return %c0_i32, %c0_i32_0 : i32, i32
  }
  func.func @transform_15(%arg0: i32) -> (i32, i32, i32) {
    %c0_i32 = arith.constant 0 : i32
    %c0_i32_0 = arith.constant 0 : i32
    %c0_i32_1 = arith.constant 0 : i32
    return %arg0, %c0_i32, %c0_i32_0 : i32, i32, i32
  }
}

module attributes {stable_mosaic.version = 11 : i64} {
  func.func @_mlp3_kernel(%arg0: memref<16x32xf32, #tpu.memory_space<vmem>>, %arg1: memref<32x32xf32, #tpu.memory_space<vmem>>, %arg2: memref<1x32xf32, #tpu.memory_space<vmem>>, %arg3: memref<32x32xf32, #tpu.memory_space<vmem>>, %arg4: memref<1x32xf32, #tpu.memory_space<vmem>>, %arg5: memref<32x40xf32, #tpu.memory_space<vmem>>, %arg6: memref<1x40xf32, #tpu.memory_space<vmem>>, %arg7: memref<16x40xf32, #tpu.memory_space<vmem>>) attributes {dimension_semantics = [], scalar_prefetch = 0 : i64, scratch_operands = 0 : i64, tpu.core_type = #tpu.core_type<tc>} {
    %c0 = arith.constant 0 : index
    %c0_0 = arith.constant 0 : index
    %0 = vector.load %arg0[%c0, %c0_0] : memref<16x32xf32, #tpu.memory_space<vmem>>, vector<16x32xf32>
    %c0_1 = arith.constant 0 : index
    %c0_2 = arith.constant 0 : index
    %1 = vector.load %arg1[%c0_1, %c0_2] : memref<32x32xf32, #tpu.memory_space<vmem>>, vector<32x32xf32>
    %2 = arith.truncf %0 : vector<16x32xf32> to vector<16x32xbf16>
    %3 = arith.truncf %1 : vector<32x32xf32> to vector<32x32xbf16>
    %cst = arith.constant dense<0.000000e+00> : vector<16x32xf32>
    %4 = tpu.matmul %2, %3, %cst {dimension_numbers = #tpu.dot_dimension_numbers<[1], [0], [0], [1], [0, 0, 1, 1], [], []>} : vector<16x32xbf16>, vector<32x32xbf16>, vector<16x32xf32> -> vector<16x32xf32>
    %c0_3 = arith.constant 0 : index
    %c0_4 = arith.constant 0 : index
    %5 = vector.load %arg2[%c0_3, %c0_4] : memref<1x32xf32, #tpu.memory_space<vmem>>, vector<1x32xf32>
    %6 = vector.broadcast %5 : vector<1x32xf32> to vector<16x32xf32>
    %7 = arith.addf %4, %6 : vector<16x32xf32>
    %cst_5 = arith.constant 0.000000e+00 : f32
    %8 = vector.broadcast %cst_5 : f32 to vector<16x32xf32>
    %9 = arith.maximumf %7, %8 : vector<16x32xf32>
    %c0_6 = arith.constant 0 : index
    %c0_7 = arith.constant 0 : index
    %10 = vector.load %arg3[%c0_6, %c0_7] : memref<32x32xf32, #tpu.memory_space<vmem>>, vector<32x32xf32>
    %11 = arith.truncf %9 : vector<16x32xf32> to vector<16x32xbf16>
    %12 = arith.truncf %10 : vector<32x32xf32> to vector<32x32xbf16>
    %cst_8 = arith.constant dense<0.000000e+00> : vector<16x32xf32>
    %13 = tpu.matmul %11, %12, %cst_8 {dimension_numbers = #tpu.dot_dimension_numbers<[1], [0], [0], [1], [0, 0, 1, 1], [], []>} : vector<16x32xbf16>, vector<32x32xbf16>, vector<16x32xf32> -> vector<16x32xf32>
    %c0_9 = arith.constant 0 : index
    %c0_10 = arith.constant 0 : index
    %14 = vector.load %arg4[%c0_9, %c0_10] : memref<1x32xf32, #tpu.memory_space<vmem>>, vector<1x32xf32>
    %15 = vector.broadcast %14 : vector<1x32xf32> to vector<16x32xf32>
    %16 = arith.addf %13, %15 : vector<16x32xf32>
    %cst_11 = arith.constant 0.000000e+00 : f32
    %17 = vector.broadcast %cst_11 : f32 to vector<16x32xf32>
    %18 = arith.maximumf %16, %17 : vector<16x32xf32>
    %c0_12 = arith.constant 0 : index
    %c0_13 = arith.constant 0 : index
    %19 = vector.load %arg5[%c0_12, %c0_13] : memref<32x40xf32, #tpu.memory_space<vmem>>, vector<32x40xf32>
    %20 = arith.truncf %18 : vector<16x32xf32> to vector<16x32xbf16>
    %21 = arith.truncf %19 : vector<32x40xf32> to vector<32x40xbf16>
    %cst_14 = arith.constant dense<0.000000e+00> : vector<16x40xf32>
    %22 = tpu.matmul %20, %21, %cst_14 {dimension_numbers = #tpu.dot_dimension_numbers<[1], [0], [0], [1], [0, 0, 1, 1], [], []>} : vector<16x32xbf16>, vector<32x40xbf16>, vector<16x40xf32> -> vector<16x40xf32>
    %c0_15 = arith.constant 0 : index
    %c0_16 = arith.constant 0 : index
    %23 = vector.load %arg6[%c0_15, %c0_16] : memref<1x40xf32, #tpu.memory_space<vmem>>, vector<1x40xf32>
    %24 = vector.broadcast %23 : vector<1x40xf32> to vector<16x40xf32>
    %25 = arith.addf %22, %24 : vector<16x40xf32>
    %c0_17 = arith.constant 0 : index
    %c0_18 = arith.constant 0 : index
    %26 = vector.load %arg7[%c0_17, %c0_18] : memref<16x40xf32, #tpu.memory_space<vmem>>, vector<16x40xf32>
    tpu.vector_store %arg7[%c0_17, %c0_18], %25 {strides = array<i32>} : memref<16x40xf32, #tpu.memory_space<vmem>>, vector<16x40xf32>,
    return
  }
}

module attributes {stable_mosaic.version = 11 : i64} {
  func.func @_ln_kernel(%arg0: memref<16x32xf32, #tpu.memory_space<vmem>>, %arg1: memref<1x32xf32, #tpu.memory_space<vmem>>, %arg2: memref<1x32xf32, #tpu.memory_space<vmem>>, %arg3: memref<16x32xf32, #tpu.memory_space<vmem>>) attributes {dimension_semantics = [], scalar_prefetch = 0 : i64, scratch_operands = 0 : i64, tpu.core_type = #tpu.core_type<tc>} {
    %c0 = arith.constant 0 : index
    %c0_0 = arith.constant 0 : index
    %0 = vector.load %arg0[%c0, %c0_0] : memref<16x32xf32, #tpu.memory_space<vmem>>, vector<16x32xf32>
    %c0_1 = arith.constant 0 : index
    %c0_2 = arith.constant 0 : index
    %1 = vector.load %arg1[%c0_1, %c0_2] : memref<1x32xf32, #tpu.memory_space<vmem>>, vector<1x32xf32>
    %c0_3 = arith.constant 0 : index
    %c0_4 = arith.constant 0 : index
    %2 = vector.load %arg2[%c0_3, %c0_4] : memref<1x32xf32, #tpu.memory_space<vmem>>, vector<1x32xf32>
    %cst = arith.constant dense<0.000000e+00> : vector<16xf32>
    %3 = vector.multi_reduction <add>, %0, %cst [1] : vector<16x32xf32> to vector<16xf32>
    %4 = vector.shape_cast %3 : vector<16xf32> to vector<16x1xf32>
    %cst_5 = arith.constant 3.200000e+01 : f32
    %5 = vector.broadcast %cst_5 : f32 to vector<16x1xf32>
    %6 = arith.divf %4, %5 : vector<16x1xf32>
    %7 = vector.broadcast %6 : vector<16x1xf32> to vector<16x32xf32>
    %8 = arith.subf %0, %7 : vector<16x32xf32>
    %9 = arith.mulf %8, %8 : vector<16x32xf32>
    %cst_6 = arith.constant dense<0.000000e+00> : vector<16xf32>
    %10 = vector.multi_reduction <add>, %9, %cst_6 [1] : vector<16x32xf32> to vector<16xf32>
    %11 = vector.shape_cast %10 : vector<16xf32> to vector<16x1xf32>
    %cst_7 = arith.constant 3.200000e+01 : f32
    %12 = vector.broadcast %cst_7 : f32 to vector<16x1xf32>
    %13 = arith.divf %11, %12 : vector<16x1xf32>
    %cst_8 = arith.constant 9.99999974E-6 : f32
    %14 = vector.broadcast %cst_8 : f32 to vector<16x1xf32>
    %15 = arith.addf %13, %14 : vector<16x1xf32>
    %16 = math.rsqrt %15 : vector<16x1xf32>
    %17 = vector.broadcast %16 : vector<16x1xf32> to vector<16x32xf32>
    %18 = arith.mulf %8, %17 : vector<16x32xf32>
    %19 = vector.broadcast %1 : vector<1x32xf32> to vector<16x32xf32>
    %20 = arith.mulf %18, %19 : vector<16x32xf32>
    %21 = vector.broadcast %2 : vector<1x32xf32> to vector<16x32xf32>
    %22 = arith.addf %20, %21 : vector<16x32xf32>
    %c0_9 = arith.constant 0 : index
    %c0_10 = arith.constant 0 : index
    %23 = vector.load %arg3[%c0_9, %c0_10] : memref<16x32xf32, #tpu.memory_space<vmem>>, vector<16x32xf32>
    tpu.vector_store %arg3[%c0_9, %c0_10], %22 {strides = array<i32>} : memref<16x32xf32, #tpu.memory_space<vmem>>, vector<16x32xf32>,
    return
  }
}

</mosaic_0001>

<bundles_post_ra>
// kernel: transformer_forward.36
= control target key start
LH: loop header
LB: loop body
LE: loop exit
PB: predicated region body
PF: predicated region fallthrough
CT: control target
= control target key end

     0   :  { %vm25_vm0 = vcmask 261120   ;;  %s136_s0 = inlined_call_operand.vmem [shape: f32[16,32], index: 0, kind: input, shape index: {}]   ;;  %s137_s1 = inlined_call_operand.vmem [shape: f32[16,32], index: 1, kind: input, shape index: {}]   ;;  %s138_s2 = inlined_call_operand.vmem [shape: f32[1,32], index: 2, kind: input, shape index: {}]   ;;  %s139_s3 = inlined_call_operand.vmem [shape: f32[1,32], index: 3, kind: input, shape index: {}]   ;;  %s140_s4 = inlined_call_operand.vmem [shape: f32[16,32], index: 4, kind: output, shape index: {}]  }
   0x1   :  { %v17_v0 = vld [vmem:[%s136_s0] sm:$0xff]  ;;  %v18_v2 = vld [vmem:[%s136_s0 + $0x8] sm:$0xff] }
   0x2   :  { %v19_v1 = vld [vmem:[%s137_s1] sm:$0xff]  ;;  %v20_v4 = vld [vmem:[%s137_s1 + $0x8] sm:$0xff] }
   0x3   :  { %v21_v3 = vadd.f32 %v19_v1, %v17_v0  ;;  %v22_v5 = vadd.f32 %v20_v4, %v18_v2  ;;  %v75_v25 = vld [vmem:[%s138_s2] ss:$0 sm:$0xff] }
   0x4   :  { %v76_v27 = vld [vmem:[%s139_s3] ss:$0 sm:$0xff] }
   0x5   :  { %v26_v6 = vsel %vm25_vm0, %v21_v3, 0.0  ;;  %v29_v7 = vsel %vm25_vm0, %v22_v5, 0.0 }
   0x6   :  { %27 = vadd.xlane.f32.xlu0 %v26_v6 }
   0xa   :  { %30 = vadd.xlane.f32.xlu0 %v29_v7 }
  0x93   :  { %v28_v8 = vpop.xlane.xlu0 %27 }
  0x94   :  { %v33_v9 = vmul.f32 0.03125, %v28_v8 }
  0x96   :  { %v35_v10 = vsub.f32 %v21_v3, %v33_v9 }
  0x97   :  { %v31_v11 = vpop.xlane.xlu0 %30 }
  0x98   :  { %v34_v12 = vmul.f32 0.03125, %v31_v11  ;;  %v37_v13 = vmul.f32 %v35_v10, %v35_v10 }
  0x9a   :  { %v36_v14 = vsub.f32 %v22_v5, %v34_v12  ;;  %v39_v15 = vsel %vm25_vm0, %v37_v13, 0.0 }
  0x9b   :  { %40 = vadd.xlane.f32.xlu1 %v39_v15 }
  0x9c   :  { %v38_v16 = vmul.f32 %v36_v14, %v36_v14 }
  0x9e   :  { %v42_v17 = vsel %vm25_vm0, %v38_v16, 0.0 }
  0x9f   :  { %43 = vadd.xlane.f32.xlu1 %v42_v17 }
 0x128   :  { %v41_v18 = vpop.xlane.xlu1 %40 }
 0x129   :  { %v45_v19 = vmul.f32 0.03125, %v41_v18 }
 0x12b   :  { %v47_v20 = vadd.f32 1e-05, %v45_v19 }
 0x12c   :  { %v44_v21 = vpop.xlane.xlu1 %43 }
 0x12d   :  { %77 = vrsqrt.f32 %v47_v20  ;;  %v46_v22 = vmul.f32 0.03125, %v44_v21 }
 0x12f   :  { %v48_v23 = vadd.f32 1e-05, %v46_v22 }
 0x131   :  { %79 = vrsqrt.f32 %v48_v23 }
 0x137   :  { %v78_v24 = vpop.eup %77 }
 0x138   :  { %v51_v26 = vmul.f32 %v78_v24, %v35_v10 }
 0x13a   :  { %v59_v28 = vmul.f32 %v75_v25, %v51_v26 }
 0x13b   :  { %v80_v29 = vpop.eup %79 }
 0x13c   :  { %v67_v30 = vadd.f32 %v76_v27, %v59_v28  ;;  %v52_v31 = vmul.f32 %v80_v29, %v36_v14 }
 0x13e   :  { %69 = vst.msk [vmem:[%s140_s4] sm:$0xff] %vm25_vm0, %v67_v30  ;;  %v60_v32 = vmul.f32 %v75_v25, %v52_v31 }
 0x140   :  { %v68_v33 = vadd.f32 %v76_v27, %v60_v32 }
 0x142   :  { %70 = vst.msk [vmem:[%s140_s4 + $0x8] sm:$0xff] %vm25_vm0, %v68_v33 }

// kernel: transformer_forward.39
= control target key start
LH: loop header
LB: loop body
LE: loop exit
PB: predicated region body
PF: predicated region fallthrough
CT: control target
= control target key end

     0   :  { %v248_v0 = vmov 0.0   ;;  %vm249_vm0 = vmmov 0   ;;  %vm43_vm1 = vcmask 261120   ;;  %vm110_vm2 = vcmask 523264   ;;  %s357_s1 = inlined_call_operand.vmem [shape: f32[32,64], index: 1, kind: input, shape index: {}]   ;;  %s358_s3 = inlined_call_operand.vmem [shape: f32[64,32], index: 3, kind: input, shape index: {}]   ;;  %s359_s0 = inlined_call_operand.vmem [shape: f32[16,32], index: 0, kind: input, shape index: {}]   ;;  %s360_s2 = inlined_call_operand.vmem [shape: f32[1,64], index: 2, kind: input, shape index: {}]   ;;  %s361_s4 = inlined_call_operand.vmem [shape: f32[1,32], index: 4, kind: input, shape index: {}]   ;;  %s362_s5 = inlined_call_operand.vmem [shape: f32[1,32], index: 5, kind: input, shape index: {}]   ;;  %s363_s6 = inlined_call_operand.vmem [shape: f32[1,32], index: 6, kind: input, shape index: {}]   ;;  %s364_s7 = inlined_call_operand.vmem [shape: f32[16,32], index: 7, kind: output, shape index: {}]  }
   0x1   :  { %222 = vmatprep.subr.bf16.mxu0 %v248_v0  ;;  %v29_v1 = vld [vmem:[%s357_s1] sm:$0xff]  ;;  %v30_v2 = vld [vmem:[%s357_s1 + $0x8] sm:$0xff]  ;;  %v31_v3 = vld [vmem:[%s357_s1 + $0x10] sm:$0xff]  ;;  %226 = vmatprep.mubr.msk.bf16.mxu0 %vm249_vm0, %v248_v0 }
   0x2   :  { %v34_v4 = vpack.c.bf16 %v30_v2, %v29_v1  ;;  %v32_v5 = vld [vmem:[%s357_s1 + $0x18] sm:$0xff]  ;;  %230 = vmatprep.subr.bf16.mxu1 %v248_v0  ;;  %238 = vmatprep.mubr.msk.bf16.mxu1 %vm249_vm0, %v248_v0  ;;  %v90_v6 = vld [vmem:[%s358_s3] sm:$0xff]  ;;  %v91_v7 = vld [vmem:[%s358_s3 + $0x8] sm:$0xff] }
   0x3   :  { %v92_v8 = vld [vmem:[%s358_s3 + $0x10] sm:$0xff]  ;;  %v35_v9 = vpack.c.bf16 %v32_v5, %v31_v3  ;;  %v27_v10 = vld [vmem:[%s359_s0] sm:$0xff]  ;;  %v28_v11 = vld [vmem:[%s359_s0 + $0x8] sm:$0xff]  ;;  %v99_v12 = vpack.c.bf16 %v91_v7, %v90_v6 }
   0x4   :  { %223 = vmatpush3.bf16.msra.mxu0 %v34_v4  ;;  %v93_v13 = vld [vmem:[%s358_s3 + $0x18] sm:$0xff]  ;;  %v33_v15 = vpack.c.bf16 %v28_v11, %v27_v10  ;;  %v94_v16 = vld [vmem:[%s358_s3 + $0x20] sm:$0xff]  ;;  %v95_v17 = vld [vmem:[%s358_s3 + $0x28] sm:$0xff] }
   0x5   :  { %224 = vmatprep.subr.bf16.mxu0 %v248_v0  ;;  %231 = vmatpush3.bf16.msra.mxu1 %v99_v12  ;;  %v100_v14 = vpack.c.bf16 %v93_v13, %v92_v8  ;;  %v101_v18 = vpack.c.bf16 %v95_v17, %v94_v16  ;;  %v96_v19 = vld [vmem:[%s358_s3 + $0x30] sm:$0xff]  ;;  %v97_v20 = vld [vmem:[%s358_s3 + $0x38] sm:$0xff]  ;;  %v208_v22 = vld [vmem:[%s360_s2] ss:$0 sm:$0xff] }
   0x6   :  { %232 = vmatprep.subr.bf16.mxu1 %v248_v0  ;;  %v102_v21 = vpack.c.bf16 %v97_v20, %v96_v19  ;;  %v210_v32 = vld [vmem:[%s361_s4] ss:$0 sm:$0xff] }
   0x7   :  { %v212_v60 = vld [vmem:[%s362_s5] ss:$0 sm:$0xff] }
   0x8   :  { %225 = vmatpush3.bf16.msra.mxu0 %v35_v9  ;;  %v213_v62 = vld [vmem:[%s363_s6] ss:$0 sm:$0xff] }
   0x9   :  { %233 = vmatpush3.bf16.msra.mxu1 %v100_v14 }
   0xa   :  { %234 = vmatprep.subr.bf16.mxu1 %v248_v0 }
   0xb   :  { %227 = vmatmul.mubr.msk.bf16.vlgmr.msra.gmra.mrb[0].mxu0 %vm43_vm1, %v33_v15 }
   0xd   :  { %235 = vmatpush3.bf16.msra.mxu1 %v101_v18 }
   0xe   :  { %236 = vmatprep.subr.bf16.mxu1 %v248_v0 }
  0x11   :  { %237 = vmatpush3.bf16.msra.mxu1 %v102_v21 }
  0xde   :  { %v81_v23 = vpop.f32.mrb[0].mxu0 }
  0xdf   :  { %v82_v24 = vadd.f32 %v208_v22, %v81_v23  ;;  %v228_v25 = vpop.f32.mrb[1].mxu0 }
  0xe0   :  { %v84_v26 = vpop.f32.mrb[2].mxu0 }
  0xe1   :  { %v85_v27 = vadd.f32 %v208_v22, %v84_v26  ;;  %v229_v28 = vpop.f32.mrb[3].mxu0  ;;  %v88_v29 = vmax.f32 %v82_v24, 0.0 }
  0xe3   :  { %v89_v30 = vmax.f32 %v85_v27, 0.0 }
  0xe5   :  { %v98_v31 = vpack.c.bf16 %v89_v30, %v88_v29 }
  0xe7   :  { %239 = vmatmul.mubr.msk.bf16.vlgmr.msra.gmra.mrb[0].mxu1 %vm110_vm2, %v98_v31 }
 0x1ba   :  { %v148_v33 = vpop.f32.mrb[0].mxu1 }
 0x1bb   :  { %v149_v34 = vadd.f32 %v210_v32, %v148_v33  ;;  %v240_v35 = vpop.f32.mrb[1].mxu1 }
 0x1bc   :  { %v151_v36 = vpop.f32.mrb[2].mxu1 }
 0x1bd   :  { %v152_v37 = vadd.f32 %v210_v32, %v151_v36  ;;  %v241_v38 = vpop.f32.mrb[3].mxu1  ;;  %v155_v39 = vadd.f32 %v149_v34, %v27_v10 }
 0x1bf   :  { %v159_v40 = vsel %vm43_vm1, %v155_v39, 0.0  ;;  %v156_v41 = vadd.f32 %v152_v37, %v28_v11 }
 0x1c0   :  { %160 = vadd.xlane.f32.xlu0 %v159_v40 }
 0x1c1   :  { %v162_v42 = vsel %vm43_vm1, %v156_v41, 0.0 }
 0x1c4   :  { %163 = vadd.xlane.f32.xlu0 %v162_v42 }
 0x24d   :  { %v161_v43 = vpop.xlane.xlu0 %160 }
 0x24e   :  { %v166_v44 = vmul.f32 0.03125, %v161_v43 }
 0x250   :  { %v168_v45 = vsub.f32 %v155_v39, %v166_v44 }
 0x251   :  { %v164_v46 = vpop.xlane.xlu0 %163 }
 0x252   :  { %v167_v47 = vmul.f32 0.03125, %v164_v46  ;;  %v170_v48 = vmul.f32 %v168_v45, %v168_v45 }
 0x254   :  { %v169_v49 = vsub.f32 %v156_v41, %v167_v47  ;;  %v172_v50 = vsel %vm43_vm1, %v170_v48, 0.0 }
 0x255   :  { %173 = vadd.xlane.f32.xlu1 %v172_v50 }
 0x256   :  { %v171_v51 = vmul.f32 %v169_v49, %v169_v49 }
 0x258   :  { %v175_v52 = vsel %vm43_vm1, %v171_v51, 0.0 }
 0x259   :  { %176 = vadd.xlane.f32.xlu1 %v175_v52 }
 0x2e2   :  { %v174_v53 = vpop.xlane.xlu1 %173 }
 0x2e3   :  { %v178_v54 = vmul.f32 0.03125, %v174_v53 }
 0x2e5   :  { %v180_v55 = vadd.f32 1e-05, %v178_v54 }
 0x2e6   :  { %v177_v56 = vpop.xlane.xlu1 %176 }
 0x2e7   :  { %244 = vrsqrt.f32 %v180_v55  ;;  %v179_v57 = vmul.f32 0.03125, %v177_v56 }
 0x2e9   :  { %v181_v58 = vadd.f32 1e-05, %v179_v57 }
 0x2eb   :  { %246 = vrsqrt.f32 %v181_v58 }
 0x2f1   :  { %v245_v59 = vpop.eup %244 }
 0x2f2   :  { %v184_v61 = vmul.f32 %v245_v59, %v168_v45 }
 0x2f4   :  { %v192_v63 = vmul.f32 %v212_v60, %v184_v61 }
 0x2f5   :  { %v247_v0 = vpop.eup %246 }
 0x2f6   :  { %v200_v1 = vadd.f32 %v213_v62, %v192_v63  ;;  %v185_v2 = vmul.f32 %v247_v0, %v169_v49 }
 0x2f8   :  { %202 = vst.msk [vmem:[%s364_s7] sm:$0xff] %vm43_vm1, %v200_v1  ;;  %v193_v3 = vmul.f32 %v212_v60, %v185_v2 }
 0x2fa   :  { %v201_v4 = vadd.f32 %v213_v62, %v193_v3 }
 0x2fc   :  { %203 = vst.msk [vmem:[%s364_s7 + $0x8] sm:$0xff] %vm43_vm1, %v201_v4 }

// kernel: transformer_forward.37
= control target key start
LH: loop header
LB: loop body
LE: loop exit
PB: predicated region body
PF: predicated region fallthrough
CT: control target
= control target key end

     0   :  { %s2404_s29 = smov 0   ;;  %s2807_s0 = inlined_call_operand.vmem [shape: f32[2,8,32], index: 0, kind: input, shape index: {}, may-alias: {0,2}]   ;;  %s2808_s1 = inlined_call_operand.vmem [shape: f32[2,8,32], index: 1, kind: input, shape index: {}, may-alias: {1,3}]   ;;  %s2809_s2 = inlined_call_operand.vmem [shape: f32[2,8,32], index: 2, kind: input, shape index: {}, may-alias: {0,2}]   ;;  %s2810_s3 = inlined_call_operand.vmem [shape: f32[2,8,32], index: 3, kind: input, shape index: {}, may-alias: {1,3}]   ;;  %s2811_s4 = inlined_call_operand.vmem [shape: f32[4,32,8], index: 4, kind: input, shape index: {}]   ;;  %s2812_s5 = inlined_call_operand.vmem [shape: f32[4,32,8], index: 5, kind: input, shape index: {}]   ;;  %s2813_s6 = inlined_call_operand.vmem [shape: f32[4,32,8], index: 6, kind: input, shape index: {}]   ;;  %s2814_s7 = inlined_call_operand.vmem [shape: f32[4,1,8], index: 7, kind: input, shape index: {}]   ;;  %s2815_s8 = inlined_call_operand.vmem [shape: f32[4,1,8], index: 8, kind: input, shape index: {}]   ;;  %s2816_s9 = inlined_call_operand.vmem [shape: f32[4,1,8], index: 9, kind: input, shape index: {}]   ;;  %s2817_s10 = inlined_call_operand.vmem [shape: f32[4,8,32], index: 10, kind: input, shape index: {}]   ;;  %s2818_s11 = inlined_call_operand.vmem [shape: f32[1,32], index: 11, kind: input, shape index: {}]   ;;  %s2819_s12 = inlined_call_operand.vmem [shape: f32[1,32], index: 12, kind: input, shape index: {}]   ;;  %s2820_s13 = inlined_call_operand.vmem [shape: f32[1,32], index: 13, kind: input, shape index: {}]   ;;  %s2821_s14 = inlined_call_operand.vmem [shape: f32[2,8,32], index: 14, kind: output, shape index: {}]  }
   0x1 LB: > { %s1962_s30 = sadd.s32 4294967295, %s2324_s29   ;;  %p1966_p0 = scmp.ge.s32.totalorder %s2324_s29, 1  ;;  %s2324_s29 = sphi %s2404_s29, %s24_s29  }
   0x2   : > { %p438_p1 = scmp.lt.s32.totalorder %s2324_s29, 3 }
   0x4   : > { %p439_p2 = pnand %p1966_p0, %p438_p1 }
   0x5   : > { %v587_v0 = vld [vmem:[%s2812_s5] sm:$0xff] (!%p439_p2)  ;;  %v588_v1 = vld [vmem:[%s2812_s5 + $0x8] sm:$0xff] (!%p439_p2)  ;;  %v589_v2 = vld [vmem:[%s2812_s5 + $0x10] sm:$0xff] (!%p439_p2)  ;;  %p494_p3 = scmp.lt.s32.totalorder (!%p439_p2), %s1962_s30, 1  ;;  %v2326_v3 = vmov (!%p439_p2), 0.0   ;;  %vm2327_vm0 = vmmov (!%p439_p2), 0   ;;  %v521_v43 = vlaneseq (!%p439_p2) }
   0x6   : > { %442 = sbr.rel (%p439_p2) target bundleno = 4236 (0x108c), region = 76  ;;  %2129 = vmatprep.subr.bf16.mxu1 (!%p439_p2), %v2326_v3  ;;  %v591_v4 = vpack.c.bf16 (!%p439_p2), %v588_v1, %v587_v0  ;;  %2121 = vmatprep.subr.bf16.mxu0 (!%p439_p2), %v2326_v3  ;;  %v590_v5 = vld [vmem:[%s2812_s5 + $0x18] sm:$0xff] (!%p439_p2)  ;;  %v530_v6 = vld [vmem:[%s2811_s4] sm:$0xff] (!%p439_p2)  ;;  %v531_v7 = vld [vmem:[%s2811_s4 + $0x8] sm:$0xff] (!%p439_p2)  ;;  %vm543_vm1 = vcmask (!%p439_p2), 261120   ;;  %vm701_vm2 = vcmask (!%p439_p2), 64512  }
   0x7   : > { %v534_v8 = vpack.c.bf16 (!%p439_p2), %v531_v7, %v530_v6  ;;  %2133 = vmatprep.mubr.msk.bf16.mxu1 (!%p439_p2), %vm2327_vm0, %v2326_v3  ;;  %v532_v9 = vld [vmem:[%s2811_s4 + $0x10] sm:$0xff] (!%p439_p2)  ;;  %v533_v10 = vld [vmem:[%s2811_s4 + $0x18] sm:$0xff] (!%p439_p2)  ;;  %2125 = vmatprep.mubr.msk.bf16.mxu0 (!%p439_p2), %vm2327_vm0, %v2326_v3  ;;  %v592_v11 = vpack.c.bf16 (!%p439_p2), %v590_v5, %v589_v2  ;;  %v1974_v21 = vld [vmem:[%s2815_s8] ss:$0 sm:$0xff] (!%p439_p2)  ;;  %v522_v44 = vshrl.u32 (!%p439_p2), %v521_v43, 7  ;;  %v524_v45 = vand.u32 (!%p439_p2), 127, %v521_v43 }
   0x8   : > { %2130 = vmatpush3.bf16.msra.mxu1 (!%p439_p2), %v591_v4  ;;  %v535_v12 = vpack.c.bf16 (!%p439_p2), %v533_v10, %v532_v9  ;;  %v1972_v26 = vld [vmem:[%s2814_s7] ss:$0 sm:$0xff] (!%p439_p2)  ;;  %v644_v37 = vld [vmem:[%s2813_s6 + $0x8] sm:$0xff] (!%p439_p2)  ;;  %v645_v38 = vld [vmem:[%s2813_s6 + $0x10] sm:$0xff] (!%p439_p2)  ;;  %v2328_v47 = vmov (!%p439_p2), -1e+09  }
   0x9   : > { %2131 = vmatprep.subr.bf16.mxu1 (!%p439_p2), %v2326_v3  ;;  %2122 = vmatpush3.bf16.msra.mxu0 (!%p439_p2), %v534_v8  ;;  %v643_v36 = vld [vmem:[%s2813_s6] sm:$0xff] (!%p439_p2)  ;;  %v646_v40 = vld [vmem:[%s2813_s6 + $0x18] sm:$0xff] (!%p439_p2)  ;;  %vm525_vm3 = vcmp.le.s32.totalorder (!%p439_p2), %v524_v45, %v522_v44  ;;  %vm766_vm4 = vcmask (!%p439_p2), 1043456   ;;  %v1981_v6 = vld [vmem:[%s2811_s4 + $0x28] sm:$0xff] (!%p439_p2) }
   0xa   : > { %2123 = vmatprep.subr.bf16.mxu0 (!%p439_p2), %v2326_v3  ;;  %v647_v39 = vpack.c.bf16 (!%p439_p2), %v644_v37, %v643_v36  ;;  %v648_v41 = vpack.c.bf16 (!%p439_p2), %v646_v40, %v645_v38  ;;  %v2510_v48 = vsel (!%p439_p2), %vm525_vm3, 0.0, %v2328_v47  ;;  %v1976_v63 = vld [vmem:[%s2816_s9] ss:$0 sm:$0xff] (!%p439_p2)  ;;  %v1982_v8 = vld [vmem:[%s2811_s4 + $0x30] sm:$0xff] (!%p439_p2)  ;;  %v1983_v9 = vld [vmem:[%s2811_s4 + $0x38] sm:$0xff] (!%p439_p2) }
   0xb   : > { %v1980_v5 = vld [vmem:[%s2811_s4 + $0x20] sm:$0xff] (!%p439_p2)  ;;  %v819_v10 = vpack.c.bf16 (!%p439_p2), %v1983_v9, %v1982_v8  ;;  %v1995_v45 = vld [vmem:[%s2813_s6 + $0x28] sm:$0xff] (!%p439_p2) }
   0xc   : > { %2132 = vmatpush3.bf16.msra.mxu1 (!%p439_p2), %v592_v11  ;;  %v818_v7 = vpack.c.bf16 (!%p439_p2), %v1981_v6, %v1980_v5  ;;  %v1985_v37 = vld [vmem:[%s2814_s7 + $0x1] ss:$0 sm:$0xff] (!%p439_p2)  ;;  %v2003_v8 = vld [vmem:[%s2817_s10 + $0x8] sm:$0xff] (!%p439_p2) }
   0xd   : > { %s2823_s30 = smov (!%p494_p3, %s1962_s30), 1  ;;  %2124 = vmatpush3.bf16.msra.mxu0 %v535_v12  ;;  %2145 = vmatprep.subr.bf16.mxu1 %v2326_v3  ;;  %v1987_v12 = vld [vmem:[%s2812_s5 + $0x20] sm:$0xff]  ;;  %v1090_v9 = vpack.c.bf16 %v2003_v8, %v2003_v8 }
   0xe   : > { %s2443_s17 = sshll.u32 %s2823_s30, 3  ;;  %2137 = vmatprep.subr.bf16.mxu0 %v2326_v3  ;;  %v1994_v44 = vld [vmem:[%s2813_s6 + $0x20] sm:$0xff] }
   0xf   : > { %s505_s20 = scalar_lea.vmem %s2809_s2, %s2443_s17  ;;  %s509_s23 = scalar_lea.vmem %s2810_s3, %s2443_s17  ;;  %v928_v47 = vpack.c.bf16 %v1995_v45, %v1994_v44  ;;  %v2018_v44 = vld [vmem:[%s2815_s8 + $0x2] ss:$0 sm:$0xff] }
  0x10   : > { %v518_v13 = vld [vmem:[%s505_s20] sm:$0xff]  ;;  %s497_s25 = scalar_lea.vmem %s2807_s0, %s2443_s17  ;;  %s501_s28 = scalar_lea.vmem %s2808_s1, %s2443_s17 }
  0x11   : > { %v519_v14 = vld [vmem:[%s509_s23] sm:$0xff]  ;;  %v2503_v42 = vpack.c.bf16 %v518_v13, %v518_v13  ;;  %s513_s24 = scalar_lea.vmem %s2821_s14, %s2443_s17 }
  0x12   : > { %v520_v15 = vadd.f32 %v519_v14, %v518_v13  ;;  %v2462_v16 = vld [vmem:[%s497_s25] sm:$0xff]  ;;  %v1988_v13 = vld [vmem:[%s2812_s5 + $0x28] sm:$0xff] }
  0x13   : > { %v516_v17 = vld [vmem:[%s501_s28] sm:$0xff] }
  0x14   : > { %v2465_v18 = vpack.c.bf16 %v520_v15, %v520_v15  ;;  %v517_v19 = vadd.f32 %v516_v17, %v2462_v16  ;;  %v873_v17 = vpack.c.bf16 %v1988_v13, %v1987_v12  ;;  %v811_v12 = vld [vmem:[%s2817_s10] sm:$0xff] }
  0x15   : > { %v812_v13 = vpack.c.bf16 %v811_v12, %v811_v12 }
  0x16   : > { %2134 = vmatmul.mubr.msk.bf16.vlgmr.msra.gmra.mrb[0].mxu1 %vm543_vm1, %v2465_v18  ;;  %v2471_v20 = vpack.c.bf16 %v517_v19, %v517_v19 }
  0x17   : > { %2147 = vmatprep.mubr.msk.bf16.mxu1 %vm2327_vm0, %v2326_v3 }
  0x18   : > { %2126 = vmatmul.mubr.msk.bf16.vlgmr.msra.gmra.mrb[0].mxu0 %vm543_vm1, %v2471_v20 }
  0x19   : > { %2141 = vmatprep.mubr.msk.bf16.mxu0 %vm2327_vm0, %v2326_v3  ;;  %2138 = vmatpush3.bf16.msra.mxu0 %v647_v39 }
  0x1a   : > { %2139 = vmatprep.subr.bf16.mxu0 %v2326_v3 }
  0x1d   : > { %2140 = vmatpush3.bf16.msra.mxu0 %v648_v41 }
  0x1e   : > { %2151 = vmatprep.subr.bf16.mxu0 %v2326_v3 }
  0x20   : > { %2142 = vmatmul.mubr.msk.bf16.vlgmr.msra.gmra.mrb[4].mxu0 %vm543_vm1, %v2503_v42 }
  0x21   : > { %2153 = vmatprep.mubr.msk.bf16.mxu0 %vm2327_vm0, %v2326_v3 }
  0xe9   : > { %v637_v22 = vpop.f32.mrb[0].mxu1 }
  0xea   : > { %v638_v23 = vadd.f32 %v1974_v21, %v637_v22  ;;  %v2135_v24 = vpop.f32.mrb[1].mxu1  ;;  %v1989_v21 = vld [vmem:[%s2812_s5 + $0x30] sm:$0xff]  ;;  %v1990_v22 = vld [vmem:[%s2812_s5 + $0x38] sm:$0xff] }
  0xeb   : > { %v640_v25 = vpop.f32.mrb[2].mxu1  ;;  %v581_v27 = vpop.f32.mrb[0].mxu0 }
  0xec   : > { %v700_v28 = vpack.c.bf16 %v638_v23, %v638_v23  ;;  %v2136_v29 = vpop.f32.mrb[3].mxu1  ;;  %v2127_v30 = vpop.f32.mrb[1].mxu0  ;;  %v582_v33 = vadd.f32 %v1972_v26, %v581_v27  ;;  %v874_v23 = vpack.c.bf16 %v1990_v22, %v1989_v21  ;;  %v2013_v21 = vld [vmem:[%s2812_s5 + $0x40] sm:$0xff]  ;;  %v2014_v22 = vld [vmem:[%s2812_s5 + $0x48] sm:$0xff] }
  0xed   : > { %v584_v31 = vpop.f32.mrb[2].mxu0 }
  0xee   : > { %v706_v32 = vsel %vm701_vm2, %v700_v28, 0  ;;  %v2128_v34 = vpop.f32.mrb[3].mxu0  ;;  %v699_v35 = vpack.c.bf16 %v582_v33, %v582_v33 }
  0xef   : > { %2146 = vmatpush3.bf16.xpose.msra.mxu1 %v706_v32  ;;  %v1992_v32 = vld [vmem:[%s2815_s8 + $0x1] ss:$0 sm:$0xff] }
  0xf0   : > { %2157 = vmatprep.subr.bf16.mxu1 %v2326_v3 }
  0xf3   : > { %v693_v60 = vpop.f32.mrb[4].mxu0 }
  0xf4   : > { %v2143_v61 = vpop.f32.mrb[5].mxu0  ;;  %v694_v1 = vadd.f32 %v1976_v63, %v693_v60 }
  0xf5   : > { %v696_v62 = vpop.f32.mrb[6].mxu0 }
  0xf6   : > { %2148 = vmatmul.mubr.msk.bf16.vlgmr.msra.gmra.mrb[4].mxu1 %vm701_vm2, %v699_v35  ;;  %v2144_v0 = vpop.f32.mrb[7].mxu0  ;;  %v762_v2 = vpack.c.bf16 %v694_v1, %v694_v1 }
  0xf7   : > { %2161 = vmatprep.mubr.msk.bf16.mxu1 %vm2327_vm0, %v2326_v3  ;;  %2158 = vmatpush3.bf16.msra.mxu1 %v818_v7 }
  0xf8   : > { %v768_v4 = vsel %vm766_vm4, %v762_v2, 0  ;;  %2159 = vmatprep.subr.bf16.mxu1 %v2326_v3 }
  0xf9   : > { %2152 = vmatpush3.bf16.msra.mxu0 %v768_v4 }
  0xfa   : > { %2165 = vmatprep.subr.bf16.mxu0 %v2326_v3 }
  0xfb   : > { %2160 = vmatpush3.bf16.msra.mxu1 %v819_v10  ;;  %v1095_v10 = vsel %vm766_vm4, %v1090_v9, 0 }
  0xfc   : > { %2173 = vmatprep.subr.bf16.mxu1 %v2326_v3 }
  0xfe   : > { %2162 = vmatmul.mubr.msk.bf16.vlgmr.msra.gmra.mrb[8].mxu1 %vm543_vm1, %v2471_v20 }
  0xff   : > { %2177 = vmatprep.mubr.msk.bf16.mxu1 %vm2327_vm0, %v2326_v3  ;;  %2174 = vmatpush3.bf16.msra.mxu1 %v928_v47 }
 0x100   : > { %2175 = vmatprep.subr.bf16.mxu1 %v2326_v3 }
 0x1c9   : > { %v742_v46 = vpop.f32.mrb[4].mxu1 }
 0x1ca   : > { %v748_v49 = vmul.f32 0.35355338, %v742_v46  ;;  %v2149_v50 = vpop.f32.mrb[5].mxu1  ;;  %v1996_v46 = vld [vmem:[%s2813_s6 + $0x30] sm:$0xff] }
 0x1cb   : > { %v745_v51 = vpop.f32.mrb[6].mxu1 }
 0x1cc   : > { %v2150_v52 = vpop.f32.mrb[7].mxu1  ;;  %v749_v53 = vadd.f32 %v748_v49, %v2510_v48  ;;  %v1997_v49 = vld [vmem:[%s2813_s6 + $0x38] sm:$0xff] }
 0x1cd   : > { %v929_v50 = vpack.c.bf16 %v1997_v49, %v1996_v46 }
 0x1ce   : > { %v750_v54 = vsel %vm701_vm2, %v749_v53, -inf }
 0x1cf   : > { %751 = vmax.xlane.f32.xlu0 %v750_v54  ;;  %2176 = vmatpush3.bf16.msra.mxu1 %v929_v50 }
 0x1d0   : > { %2187 = vmatprep.subr.bf16.mxu1 %v2326_v3 }
 0x1d1   : > { %v862_v24 = vpop.f32.mrb[8].mxu1 }
 0x1d2   : > { %v2163_v25 = vpop.f32.mrb[9].mxu1  ;;  %v863_v41 = vadd.f32 %v1985_v37, %v862_v24  ;;  %2178 = vmatmul.mubr.msk.bf16.vlgmr.msra.gmra.mrb[12].mxu1 %vm543_vm1, %v2503_v42 }
 0x1d3   : > { %v865_v26 = vpop.f32.mrb[10].mxu1  ;;  %2189 = vmatprep.mubr.msk.bf16.mxu1 %vm2327_vm0, %v2326_v3  ;;  %v2015_v25 = vld [vmem:[%s2812_s5 + $0x50] sm:$0xff] }
 0x1d4   : > { %v2164_v27 = vpop.f32.mrb[11].mxu1  ;;  %v978_v43 = vpack.c.bf16 %v863_v41, %v863_v41  ;;  %v2016_v26 = vld [vmem:[%s2812_s5 + $0x58] sm:$0xff] }
 0x1d5   : > { %v1244_v27 = vpack.c.bf16 %v2016_v26, %v2015_v25  ;;  %v2025_v26 = vld [vmem:[%s2816_s9 + $0x2] ss:$0 sm:$0xff] }
 0x25c   : > { %v752_v55 = vpop.xlane.xlu0 %751 }
 0x25d   : > { %v753_v56 = vsub.f32 %v749_v53, %v752_v55 }
 0x25f   : > { %v754_v57 = vmul.f32 1.442695, %v753_v56 }
 0x261   : > { %2300 = vpow2.f32 %v754_v57 }
 0x26b   : > { %v2301_v58 = vpop.eup %2300 }
 0x26c   : > { %v756_v59 = vsel %vm701_vm2, %v2301_v58, 0.0 }
 0x26d   : > { %757 = vadd.xlane.f32.xlu0 %v756_v59 }
 0x2a5   : > { %v972_v59 = vpop.f32.mrb[12].mxu1 }
 0x2a6   : > { %v2179_v61 = vpop.f32.mrb[13].mxu1 }
 0x2a7   : > { %v975_v62 = vpop.f32.mrb[14].mxu1 }
 0x2a8   : > { %v2180_v0 = vpop.f32.mrb[15].mxu1 }
 0x2fa   : > { %v758_v11 = vpop.xlane.xlu0 %757 }
 0x2fb   : > { %2302 = vrcp.f32 %v758_v11 }
 0x305   : > { %v2303_v14 = vpop.eup %2302 }
 0x306   : > { %v760_v15 = vmul.f32 %v2303_v14, %v2301_v58  ;;  %v1999_v58 = vld [vmem:[%s2816_s9 + $0x1] ss:$0 sm:$0xff] }
 0x307   : > { %v973_v60 = vadd.f32 %v1999_v58, %v972_v59  ;;  %v2011_v58 = vld [vmem:[%s2814_s7 + $0x2] ss:$0 sm:$0xff] }
 0x308   : > { %v761_v19 = vpack.c.bf16 %v760_v15, %v760_v15 }
 0x309   : > { %v1040_v63 = vpack.c.bf16 %v973_v60, %v973_v60 }
 0x30a   : > { %2154 = vmatmul.mubr.msk.bf16.vlgmr.msra.gmra.mrb[8].mxu0 %vm701_vm2, %v761_v19  ;;  %v1141_v19 = vsel %vm766_vm4, %v812_v13, 0 }
 0x30b   : > { %2166 = vmatpush3.bf16.msra.mxu0 %v873_v17  ;;  %2169 = vmatprep.mubr.msk.bf16.mxu0 %vm2327_vm0, %v2326_v3  ;;  %v1045_v1 = vsel %vm766_vm4, %v1040_v63, 0 }
 0x30c   : > { %2167 = vmatprep.subr.bf16.mxu0 %v2326_v3  ;;  %2188 = vmatpush3.bf16.msra.mxu1 %v1045_v1  ;;  %v2020_v1 = vld [vmem:[%s2813_s6 + $0x40] sm:$0xff] }
 0x30d   : > { %2199 = vmatprep.subr.bf16.mxu1 %v2326_v3 }
 0x30f   : > { %2168 = vmatpush3.bf16.msra.mxu0 %v874_v23  ;;  %v1243_v23 = vpack.c.bf16 %v2014_v22, %v2013_v21 }
 0x310   : > { %2181 = vmatprep.subr.bf16.mxu0 %v2326_v3 }
 0x312   : > { %2170 = vmatmul.mubr.msk.bf16.vlgmr.msra.gmra.mrb[12].mxu0 %vm543_vm1, %v2465_v18 }
 0x313   : > { %2183 = vmatprep.mubr.msk.bf16.mxu0 %vm2327_vm0, %v2326_v3 }
 0x3dd   : > { %v2559_v28 = vpop.f32.mrb[8].mxu0 }
 0x3de   : > { %v2155_v29 = vpop.f32.mrb[9].mxu0  ;;  %v810_v24 = vpack.c.bf16 %v2559_v28, %v2559_v28  ;;  %v2006_v28 = vld [vmem:[%s2811_s4 + $0x40] sm:$0xff] }
 0x3df   : > { %v807_v30 = vpop.f32.mrb[10].mxu0  ;;  %v2007_v29 = vld [vmem:[%s2811_s4 + $0x48] sm:$0xff] }
 0x3e0   : > { %v2156_v31 = vpop.f32.mrb[11].mxu0 }
 0x3e1   : > { %v1188_v31 = vpack.c.bf16 %v2007_v29, %v2006_v28 }
 0x3e5   : > { %v917_v33 = vpop.f32.mrb[12].mxu0 }
 0x3e6   : > { %v918_v34 = vadd.f32 %v1992_v32, %v917_v33  ;;  %v2171_v35 = vpop.f32.mrb[13].mxu0 }
 0x3e7   : > { %v920_v36 = vpop.f32.mrb[14].mxu0  ;;  %v2009_v35 = vld [vmem:[%s2811_s4 + $0x58] sm:$0xff] }
 0x3e8   : > { %v979_v38 = vpack.c.bf16 %v918_v34, %v918_v34  ;;  %v2172_v39 = vpop.f32.mrb[15].mxu0  ;;  %v2008_v34 = vld [vmem:[%s2811_s4 + $0x50] sm:$0xff] }
 0x3ea   : > { %v984_v40 = vsel %vm701_vm2, %v979_v38, 0  ;;  %v1189_v38 = vpack.c.bf16 %v2009_v35, %v2008_v34 }
 0x3eb   : > { %2182 = vmatpush3.bf16.xpose.msra.mxu0 %v984_v40 }
 0x3ec   : > { %2193 = vmatprep.subr.bf16.mxu0 %v2326_v3 }
 0x3f2   : > { %2184 = vmatmul.mubr.msk.bf16.vlgmr.msra.gmra.mrb[16].mxu0 %vm701_vm2, %v978_v43 }
 0x3f3   : > { %2195 = vmatprep.mubr.msk.bf16.mxu0 %vm2327_vm0, %v2326_v3  ;;  %2194 = vmatpush3.bf16.msra.mxu0 %v1095_v10 }
 0x3f4   : > { %2205 = vmatprep.subr.bf16.mxu0 %v2326_v3 }
 0x4c5   : > { %v1020_v51 = vpop.f32.mrb[16].mxu0 }
 0x4c6   : > { %v1026_v52 = vmul.f32 0.35355338, %v1020_v51  ;;  %v2185_v53 = vpop.f32.mrb[17].mxu0 }
 0x4c7   : > { %v1023_v54 = vpop.f32.mrb[18].mxu0 }
 0x4c8   : > { %v2186_v55 = vpop.f32.mrb[19].mxu0  ;;  %v1027_v56 = vadd.f32 %v1026_v52, %v2510_v48 }
 0x4ca   : > { %v1028_v57 = vsel %vm701_vm2, %v1027_v56, -inf }
 0x4cb   : > { %1029 = vmax.xlane.f32.xlu1 %v1028_v57 }
 0x558   : > { %v1030_v2 = vpop.xlane.xlu1 %1029 }
 0x559   : > { %v1031_v4 = vsub.f32 %v1027_v56, %v1030_v2  ;;  %v2021_v2 = vld [vmem:[%s2813_s6 + $0x48] sm:$0xff] }
 0x55b   : > { %v1032_v5 = vmul.f32 1.442695, %v1031_v4  ;;  %v2022_v4 = vld [vmem:[%s2813_s6 + $0x50] sm:$0xff] }
 0x55d   : > { %2304 = vpow2.f32 %v1032_v5  ;;  %v1298_v5 = vpack.c.bf16 %v2021_v2, %v2020_v1  ;;  %v2043_v2 = vld [vmem:[%s2815_s8 + $0x3] ss:$0 sm:$0xff] }
 0x567   : > { %v2305_v6 = vpop.eup %2304 }
 0x568   : > { %v1034_v7 = vsel %vm701_vm2, %v2305_v6, 0.0 }
 0x569   : > { %1035 = vadd.xlane.f32.xlu1 %v1034_v7 }
 0x5f6   : > { %v1036_v11 = vpop.xlane.xlu1 %1035 }
 0x5f7   : > { %2306 = vrcp.f32 %v1036_v11 }
 0x601   : > { %v2307_v14 = vpop.eup %2306 }
 0x602   : > { %v1038_v15 = vmul.f32 %v2307_v14, %v2305_v6  ;;  %v2023_v6 = vld [vmem:[%s2813_s6 + $0x58] sm:$0xff] }
 0x603   : > { %v1299_v7 = vpack.c.bf16 %v2023_v6, %v2022_v4 }
 0x604   : > { %v1039_v17 = vpack.c.bf16 %v1038_v15, %v1038_v15 }
 0x606   : > { %2190 = vmatmul.mubr.msk.bf16.vlgmr.msra.gmra.mrb[16].mxu1 %vm701_vm2, %v1039_v17 }
 0x607   : > { %2200 = vmatpush3.bf16.msra.mxu1 %v1141_v19  ;;  %2201 = vmatprep.mubr.msk.bf16.mxu1 %vm2327_vm0, %v2326_v3 }
 0x608   : > { %2213 = vmatprep.subr.bf16.mxu1 %v2326_v3 }
 0x60e   : > { %2202 = vmatmul.mubr.msk.bf16.vlgmr.msra.gmra.mrb[20].mxu1 %vm701_vm2, %v810_v24 }
 0x60f   : > { %2214 = vmatpush3.bf16.msra.mxu1 %v1243_v23  ;;  %2217 = vmatprep.mubr.msk.bf16.mxu1 %vm2327_vm0, %v2326_v3 }
 0x610   : > { %2215 = vmatprep.subr.bf16.mxu1 %v2326_v3 }
 0x613   : > { %2216 = vmatpush3.bf16.msra.mxu1 %v1244_v27 }
 0x614   : > { %2229 = vmatprep.subr.bf16.mxu1 %v2326_v3 }
 0x616   : > { %2218 = vmatmul.mubr.msk.bf16.vlgmr.msra.gmra.mrb[24].mxu1 %vm543_vm1, %v2465_v18 }
 0x617   : > { %2231 = vmatprep.mubr.msk.bf16.mxu1 %vm2327_vm0, %v2326_v3 }
 0x6d9   : > { %v1081_v30 = vpop.f32.mrb[16].mxu1 }
 0x6da   : > { %v1087_v32 = vpack.c.bf16 %v1081_v30, %v1081_v30  ;;  %v2191_v33 = vpop.f32.mrb[17].mxu1 }
 0x6db   : > { %v1084_v36 = vpop.f32.mrb[18].mxu1 }
 0x6dc   : > { %v2192_v37 = vpop.f32.mrb[19].mxu1  ;;  %2196 = vmatmul.mubr.msk.bf16.vlgmr.msra.gmra.mrb[20].mxu0 %vm701_vm2, %v1087_v32 }
 0x6dd   : > { %2206 = vmatpush3.bf16.msra.mxu0 %v1188_v31  ;;  %2209 = vmatprep.mubr.msk.bf16.mxu0 %vm2327_vm0, %v2326_v3  ;;  %v2029_v31 = vld [vmem:[%s2817_s10 + $0x10] sm:$0xff] }
 0x6de   : > { %2207 = vmatprep.subr.bf16.mxu0 %v2326_v3  ;;  %v1460_v32 = vpack.c.bf16 %v2029_v31, %v2029_v31 }
 0x6e0   : > { %v1465_v33 = vsel %vm766_vm4, %v1460_v32, 0 }
 0x6e1   : > { %v1177_v39 = vpop.f32.mrb[20].mxu1  ;;  %2208 = vmatpush3.bf16.msra.mxu0 %v1189_v38  ;;  %v2031_v38 = vld [vmem:[%s2811_s4 + $0x60] sm:$0xff] }
 0x6e2   : > { %v2203_v40 = vpop.f32.mrb[21].mxu1  ;;  %2221 = vmatprep.subr.bf16.mxu0 %v2326_v3 }
 0x6e3   : > { %v1180_v41 = vpop.f32.mrb[22].mxu1 }
 0x6e4   : > { %v2204_v43 = vpop.f32.mrb[23].mxu1  ;;  %2210 = vmatmul.mubr.msk.bf16.vlgmr.msra.gmra.mrb[24].mxu0 %vm543_vm1, %v2471_v20  ;;  %v2033_v41 = vld [vmem:[%s2811_s4 + $0x70] sm:$0xff] }
 0x6e5   : > { %2225 = vmatprep.mubr.msk.bf16.mxu0 %vm2327_vm0, %v2326_v3  ;;  %2222 = vmatpush3.bf16.msra.mxu0 %v1298_v5  ;;  %v2034_v43 = vld [vmem:[%s2811_s4 + $0x78] sm:$0xff] }
 0x6e6   : > { %2223 = vmatprep.subr.bf16.mxu0 %v2326_v3 }
 0x6e9   : > { %v1287_v45 = vpop.f32.mrb[24].mxu1  ;;  %2224 = vmatpush3.bf16.msra.mxu0 %v1299_v7  ;;  %v2036_v7 = vld [vmem:[%s2814_s7 + $0x3] ss:$0 sm:$0xff] }
 0x6ea   : > { %v1288_v46 = vadd.f32 %v2018_v44, %v1287_v45  ;;  %v2219_v47 = vpop.f32.mrb[25].mxu1  ;;  %2235 = vmatprep.subr.bf16.mxu0 %v2326_v3  ;;  %v1514_v44 = vpack.c.bf16 %v2034_v43, %v2033_v41  ;;  %v2038_v45 = vld [vmem:[%s2812_s5 + $0x60] sm:$0xff] }
 0x6eb   : > { %v1290_v49 = vpop.f32.mrb[26].mxu1 }
 0x6ec   : > { %v1349_v50 = vpack.c.bf16 %v1288_v46, %v1288_v46  ;;  %v2220_v51 = vpop.f32.mrb[27].mxu1  ;;  %2226 = vmatmul.mubr.msk.bf16.vlgmr.msra.gmra.mrb[28].mxu0 %vm543_vm1, %v2503_v42  ;;  %v2039_v46 = vld [vmem:[%s2812_s5 + $0x68] sm:$0xff] }
 0x6ed   : > { %2237 = vmatprep.mubr.msk.bf16.mxu0 %vm2327_vm0, %v2326_v3  ;;  %v1568_v49 = vpack.c.bf16 %v2039_v46, %v2038_v45 }
 0x6ee   : > { %v1354_v52 = vsel %vm701_vm2, %v1349_v50, 0 }
 0x6ef   : > { %2230 = vmatpush3.bf16.xpose.msra.mxu1 %v1354_v52  ;;  %v2040_v52 = vld [vmem:[%s2812_s5 + $0x70] sm:$0xff] }
 0x6f0   : > { %2241 = vmatprep.subr.bf16.mxu1 %v2326_v3 }
 0x7af   : > { %v1131_v53 = vpop.f32.mrb[20].mxu0 }
 0x7b0   : > { %v2660_v54 = vadd.f32 %v1177_v39, %v1131_v53  ;;  %v2197_v55 = vpop.f32.mrb[21].mxu0  ;;  %v2032_v39 = vld [vmem:[%s2811_s4 + $0x68] sm:$0xff] }
 0x7b1   : > { %v1134_v56 = vpop.f32.mrb[22].mxu0  ;;  %v1513_v40 = vpack.c.bf16 %v2032_v39, %v2031_v38  ;;  %v2054_v38 = vld [vmem:[%s2817_s10 + $0x18] sm:$0xff] }
 0x7b2   : > { %v2198_v57 = vpop.f32.mrb[23].mxu0  ;;  %v1785_v39 = vpack.c.bf16 %v2054_v38, %v2054_v38 }
 0x7b7   : > { %v1232_v59 = vpop.f32.mrb[24].mxu0 }
 0x7b8   : > { %v1233_v60 = vadd.f32 %v2011_v58, %v1232_v59  ;;  %v2211_v61 = vpop.f32.mrb[25].mxu0 }
 0x7b9   : > { %v1235_v62 = vpop.f32.mrb[26].mxu0 }
 0x7ba   : > { %v1348_v63 = vpack.c.bf16 %v1233_v60, %v1233_v60  ;;  %v2212_v0 = vpop.f32.mrb[27].mxu0 }
 0x7bc   : > { %2232 = vmatmul.mubr.msk.bf16.vlgmr.msra.gmra.mrb[28].mxu1 %vm701_vm2, %v1348_v63 }
 0x7bd   : > { %2243 = vmatprep.mubr.msk.bf16.mxu1 %vm2327_vm0, %v2326_v3  ;;  %2242 = vmatpush3.bf16.msra.mxu1 %v1465_v33 }
 0x7be   : > { %2255 = vmatprep.subr.bf16.mxu1 %v2326_v3 }
 0x7bf   : > { %v1342_v23 = vpop.f32.mrb[28].mxu0 }
 0x7c0   : > { %v2227_v24 = vpop.f32.mrb[29].mxu0  ;;  %v1343_v28 = vadd.f32 %v2025_v26, %v1342_v23 }
 0x7c1   : > { %v1345_v25 = vpop.f32.mrb[30].mxu0 }
 0x7c2   : > { %v2228_v27 = vpop.f32.mrb[31].mxu0  ;;  %v1410_v29 = vpack.c.bf16 %v1343_v28, %v1343_v28 }
 0x7c4   : > { %v1415_v30 = vsel %vm766_vm4, %v1410_v29, 0 }
 0x7c5   : > { %2236 = vmatpush3.bf16.msra.mxu0 %v1415_v30 }
 0x7c6   : > { %2247 = vmatprep.subr.bf16.mxu0 %v2326_v3 }
 0x88f   : > { %v1390_v8 = vpop.f32.mrb[28].mxu1 }
 0x890   : > { %v1396_v9 = vmul.f32 0.35355338, %v1390_v8  ;;  %v2233_v10 = vpop.f32.mrb[29].mxu1 }
 0x891   : > { %v1393_v11 = vpop.f32.mrb[30].mxu1 }
 0x892   : > { %v2234_v12 = vpop.f32.mrb[31].mxu1  ;;  %v1397_v13 = vadd.f32 %v1396_v9, %v2510_v48 }
 0x893   : > { %v2045_v12 = vld [vmem:[%s2813_s6 + $0x60] sm:$0xff] }
 0x894   : > { %v1398_v14 = vsel %vm701_vm2, %v1397_v13, -inf }
 0x895   : > { %1399 = vmax.xlane.f32.xlu0 %v1398_v14  ;;  %v2047_v14 = vld [vmem:[%s2813_s6 + $0x70] sm:$0xff] }
 0x922   : > { %v1400_v15 = vpop.xlane.xlu0 %1399 }
 0x923   : > { %v1401_v17 = vsub.f32 %v1397_v13, %v1400_v15  ;;  %v2046_v13 = vld [vmem:[%s2813_s6 + $0x68] sm:$0xff] }
 0x924   : > { %v1623_v15 = vpack.c.bf16 %v2046_v13, %v2045_v12 }
 0x925   : > { %v1402_v19 = vmul.f32 1.442695, %v1401_v17  ;;  %v2048_v17 = vld [vmem:[%s2813_s6 + $0x78] sm:$0xff] }
 0x927   : > { %2308 = vpow2.f32 %v1402_v19  ;;  %v1624_v19 = vpack.c.bf16 %v2048_v17, %v2047_v14 }
 0x931   : > { %v2309_v21 = vpop.eup %2308 }
 0x932   : > { %v1404_v22 = vsel %vm701_vm2, %v2309_v21, 0.0 }
 0x933   : > { %1405 = vadd.xlane.f32.xlu1 %v1404_v22 }
 0x9c0   : > { %v1406_v34 = vpop.xlane.xlu1 %1405 }
 0x9c1   : > { %2310 = vrcp.f32 %v1406_v34  ;;  %v2050_v34 = vld [vmem:[%s2816_s9 + $0x3] ss:$0 sm:$0xff] }
 0x9cb   : > { %v2311_v35 = vpop.eup %2310 }
 0x9cc   : > { %v1408_v36 = vmul.f32 %v2311_v35, %v2309_v21 }
 0x9ce   : > { %v1409_v37 = vpack.c.bf16 %v1408_v36, %v1408_v36 }
 0x9d0   : > { %2238 = vmatmul.mubr.msk.bf16.vlgmr.msra.gmra.mrb[32].mxu0 %vm701_vm2, %v1409_v37 }
 0x9d1   : > { %2251 = vmatprep.mubr.msk.bf16.mxu0 %vm2327_vm0, %v2326_v3  ;;  %2248 = vmatpush3.bf16.msra.mxu0 %v1513_v40  ;;  %v1790_v40 = vsel %vm766_vm4, %v1785_v39, 0 }
 0x9d2   : > { %2249 = vmatprep.subr.bf16.mxu0 %v2326_v3 }
 0x9d5   : > { %2250 = vmatpush3.bf16.msra.mxu0 %v1514_v44 }
 0x9d6   : > { %2263 = vmatprep.subr.bf16.mxu0 %v2326_v3 }
 0x9d8   : > { %2252 = vmatmul.mubr.msk.bf16.vlgmr.msra.gmra.mrb[36].mxu0 %vm543_vm1, %v2471_v20  ;;  %v2041_v20 = vld [vmem:[%s2812_s5 + $0x78] sm:$0xff] }
 0x9d9   : > { %2267 = vmatprep.mubr.msk.bf16.mxu0 %vm2327_vm0, %v2326_v3  ;;  %v1569_v56 = vpack.c.bf16 %v2041_v20, %v2040_v52  ;;  %2264 = vmatpush3.bf16.msra.mxu0 %v1623_v15  ;;  %v2056_v20 = vld [vmem:[%s2818_s11] ss:$0 sm:$0xff] }
 0x9da   : > { %2265 = vmatprep.subr.bf16.mxu0 %v2326_v3 }
 0x9dd   : > { %2266 = vmatpush3.bf16.msra.mxu0 %v1624_v19 }
 0x9de   : > { %2277 = vmatprep.subr.bf16.mxu0 %v2326_v3 }
 0x9e0   : > { %2268 = vmatmul.mubr.msk.bf16.vlgmr.msra.gmra.mrb[40].mxu0 %vm543_vm1, %v2503_v42 }
 0x9e1   : > { %2279 = vmatprep.mubr.msk.bf16.mxu0 %vm2327_vm0, %v2326_v3 }
 0xaa3   : > { %v1451_v47 = vpop.f32.mrb[32].mxu0 }
 0xaa4   : > { %v1457_v50 = vpack.c.bf16 %v1451_v47, %v1451_v47  ;;  %v2239_v51 = vpop.f32.mrb[33].mxu0 }
 0xaa5   : > { %v1454_v53 = vpop.f32.mrb[34].mxu0 }
 0xaa6   : > { %v2240_v55 = vpop.f32.mrb[35].mxu0  ;;  %2244 = vmatmul.mubr.msk.bf16.vlgmr.msra.gmra.mrb[32].mxu1 %vm701_vm2, %v1457_v50 }
 0xaa7   : > { %2256 = vmatpush3.bf16.msra.mxu1 %v1568_v49  ;;  %2259 = vmatprep.mubr.msk.bf16.mxu1 %vm2327_vm0, %v2326_v3 }
 0xaa8   : > { %2257 = vmatprep.subr.bf16.mxu1 %v2326_v3 }
 0xaab   : > { %2258 = vmatpush3.bf16.msra.mxu1 %v1569_v56  ;;  %v1557_v57 = vpop.f32.mrb[36].mxu0 }
 0xaac   : > { %2271 = vmatprep.subr.bf16.mxu1 %v2326_v3  ;;  %v2253_v58 = vpop.f32.mrb[37].mxu0  ;;  %v1558_v10 = vadd.f32 %v2036_v7, %v1557_v57  ;;  %v2058_v7 = vld [vmem:[%s2820_s13] ss:$0 sm:$0xff] }
 0xaad   : > { %v1560_v59 = vpop.f32.mrb[38].mxu0 }
 0xaae   : > { %2260 = vmatmul.mubr.msk.bf16.vlgmr.msra.gmra.mrb[36].mxu1 %vm543_vm1, %v2465_v18  ;;  %v2254_v60 = vpop.f32.mrb[39].mxu0  ;;  %v1673_v11 = vpack.c.bf16 %v1558_v10, %v1558_v10 }
 0xaaf   : > { %2273 = vmatprep.mubr.msk.bf16.mxu1 %vm2327_vm0, %v2326_v3 }
 0xab3   : > { %v1667_v32 = vpop.f32.mrb[40].mxu0 }
 0xb79   : > { %v1501_v61 = vpop.f32.mrb[32].mxu1 }
 0xb7a   : > { %v2742_v62 = vadd.f32 %v1501_v61, %v2660_v54  ;;  %v2245_v63 = vpop.f32.mrb[33].mxu1 }
 0xb7b   : > { %v1504_v0 = vpop.f32.mrb[34].mxu1 }
 0xb7c   : > { %v2246_v1 = vpop.f32.mrb[35].mxu1 }
 0xb81   : > { %v1612_v4 = vpop.f32.mrb[36].mxu1 }
 0xb82   : > { %v1613_v18 = vadd.f32 %v2043_v2, %v1612_v4  ;;  %v2261_v5 = vpop.f32.mrb[37].mxu1 }
 0xb83   : > { %v1615_v6 = vpop.f32.mrb[38].mxu1 }
 0xb84   : > { %v1674_v8 = vpack.c.bf16 %v1613_v18, %v1613_v18  ;;  %v2262_v9 = vpop.f32.mrb[39].mxu1 }
 0xb86   : > { %v1679_v54 = vsel %vm701_vm2, %v1674_v8, 0 }
 0xb87   : > { %2272 = vmatpush3.bf16.xpose.msra.mxu1 %v1679_v54 }
 0xb88   : > { %2283 = vmatprep.subr.bf16.mxu1 %v2326_v3 }
 0xb8e   : > { %2274 = vmatmul.mubr.msk.bf16.vlgmr.msra.gmra.mrb[40].mxu1 %vm701_vm2, %v1673_v11 }
 0xb8f   : > { %2285 = vmatprep.mubr.msk.bf16.mxu1 %vm2327_vm0, %v2326_v3  ;;  %v2269_v3 = vpop.f32.mrb[41].mxu0  ;;  %2284 = vmatpush3.bf16.msra.mxu1 %v1790_v40 }
 0xb90   : > { %v1670_v33 = vpop.f32.mrb[42].mxu0 }
 0xb91   : > { %v2270_v35 = vpop.f32.mrb[43].mxu0 }
 0xc61   : > { %v1715_v21 = vpop.f32.mrb[40].mxu1 }
 0xc62   : > { %v1721_v22 = vmul.f32 0.35355338, %v1715_v21  ;;  %v2275_v23 = vpop.f32.mrb[41].mxu1 }
 0xc63   : > { %v1718_v24 = vpop.f32.mrb[42].mxu1 }
 0xc64   : > { %v2276_v25 = vpop.f32.mrb[43].mxu1  ;;  %v1722_v26 = vadd.f32 %v1721_v22, %v2510_v48  ;;  %v1668_v48 = vadd.f32 %v2050_v34, %v1667_v32 }
 0xc66   : > { %v1723_v27 = vsel %vm701_vm2, %v1722_v26, -inf  ;;  %v1735_v36 = vpack.c.bf16 %v1668_v48, %v1668_v48 }
 0xc67   : > { %1724 = vmax.xlane.f32.xlu0 %v1723_v27 }
 0xc68   : > { %v1740_v37 = vsel %vm766_vm4, %v1735_v36, 0 }
 0xc69   : > { %2278 = vmatpush3.bf16.msra.mxu0 %v1740_v37 }
 0xcf4   : > { %v1725_v28 = vpop.xlane.xlu0 %1724 }
 0xcf5   : > { %v1726_v29 = vsub.f32 %v1722_v26, %v1725_v28 }
 0xcf7   : > { %v1727_v30 = vmul.f32 1.442695, %v1726_v29 }
 0xcf9   : > { %2312 = vpow2.f32 %v1727_v30 }
 0xd03   : > { %v2313_v31 = vpop.eup %2312 }
 0xd04   : > { %v1729_v42 = vsel %vm701_vm2, %v2313_v31, 0.0 }
 0xd05   : > { %1730 = vadd.xlane.f32.xlu1 %v1729_v42 }
 0xd92   : > { %v1731_v41 = vpop.xlane.xlu1 %1730 }
 0xd93   : > { %2314 = vrcp.f32 %v1731_v41 }
 0xd9d   : > { %v2315_v43 = vpop.eup %2314 }
 0xd9e   : > { %v1733_v44 = vmul.f32 %v2315_v43, %v2313_v31 }
 0xda0   : > { %v1734_v45 = vpack.c.bf16 %v1733_v44, %v1733_v44 }
 0xda2   : > { %2280 = vmatmul.mubr.msk.bf16.vlgmr.msra.gmra.mrb[44].mxu0 %vm701_vm2, %v1734_v45 }
 0xe75   : > { %v1776_v46 = vpop.f32.mrb[44].mxu0 }
 0xe76   : > { %v1782_v47 = vpack.c.bf16 %v1776_v46, %v1776_v46  ;;  %v2281_v49 = vpop.f32.mrb[45].mxu0 }
 0xe77   : > { %v1779_v50 = vpop.f32.mrb[46].mxu0 }
 0xe78   : > { %v2282_v51 = vpop.f32.mrb[47].mxu0  ;;  %2286 = vmatmul.mubr.msk.bf16.vlgmr.msra.gmra.mrb[44].mxu1 %vm701_vm2, %v1782_v47 }
 0xf4b   : > { %v1826_v52 = vpop.f32.mrb[44].mxu1 }
 0xf4c   : > { %v1832_v53 = vadd.f32 %v1826_v52, %v2742_v62  ;;  %v2287_v55 = vpop.f32.mrb[45].mxu1 }
 0xf4d   : > { %v1829_v56 = vpop.f32.mrb[46].mxu1 }
 0xf4e   : > { %v1840_v57 = vadd.f32 %v2056_v20, %v1832_v53  ;;  %v2288_v58 = vpop.f32.mrb[47].mxu1 }
 0xf50   : > { %v1841_v59 = vadd.f32 %v1840_v57, %v2462_v16  ;;  %v2057_v16 = vld [vmem:[%s2819_s12] ss:$0 sm:$0xff] }
 0xf52   : > { %v1844_v60 = vsel %vm543_vm1, %v1841_v59, 0.0 }
 0xf53   : > { %1845 = vadd.xlane.f32.xlu0 %v1844_v60 }
 0xfe0   : > { %v1846_v61 = vpop.xlane.xlu0 %1845 }
 0xfe1   : > { %v1848_v63 = vmul.f32 0.03125, %v1846_v61 }
 0xfe3   : > { %v1849_v0 = vsub.f32 %v1841_v59, %v1848_v63 }
 0xfe5   : > { %v1850_v1 = vmul.f32 %v1849_v0, %v1849_v0 }
 0xfe7   : > { %v1851_v2 = vsel %vm543_vm1, %v1850_v1, 0.0 }
 0xfe8   : > { %1852 = vadd.xlane.f32.xlu1 %v1851_v2 }
0x1075   : > { %v1853_v4 = vpop.xlane.xlu1 %1852 }
0x1076   : > { %v1854_v18 = vmul.f32 0.03125, %v1853_v4 }
0x1078   : > { %v1855_v62 = vadd.f32 1e-05, %v1854_v18 }
0x107a   : > { %2316 = vrsqrt.f32 %v1855_v62 }
0x1084   : > { %v2317_v5 = vpop.eup %2316 }
0x1085   : > { %v1857_v6 = vmul.f32 %v2317_v5, %v1849_v0 }
0x1087   : > { %v1864_v8 = vmul.f32 %v2057_v16, %v1857_v6 }
0x1089   : > { %v1871_v9 = vadd.f32 %v2058_v7, %v1864_v8 }
0x108b   : > { %1872 = vst.msk [vmem:[%s513_s24] sm:$0xff] %vm543_vm1, %v1871_v9 }
0x108c PF: > { %s24_s29 = sadd.s32 1, %s2324_s29  }
0x108d   : > { %p21_p4 = scmp.ge.s32.totalorder %s24_s29, 4  }
0x108f   :  { %23 = sbr.rel (!%p21_p4) target bundleno = 1 (0x1), region = 136 }

// kernel: transformer_forward.44
= control target key start
LH: loop header
LB: loop body
LE: loop exit
PB: predicated region body
PF: predicated region fallthrough
CT: control target
= control target key end

     0   :  { %v296_v3 = vmov 0.0   ;;  %vm297_vm0 = vmmov 0   ;;  %s407_s0 = inlined_call_operand.vmem [shape: f32[16,32], index: 0, kind: input, shape index: {}]   ;;  %s408_s1 = inlined_call_operand.vmem [shape: f32[32,32], index: 1, kind: input, shape index: {}]   ;;  %s409_s2 = inlined_call_operand.vmem [shape: f32[1,32], index: 2, kind: input, shape index: {}]   ;;  %s410_s3 = inlined_call_operand.vmem [shape: f32[32,32], index: 3, kind: input, shape index: {}]   ;;  %s411_s4 = inlined_call_operand.vmem [shape: f32[1,32], index: 4, kind: input, shape index: {}]   ;;  %s412_s5 = inlined_call_operand.vmem [shape: f32[32,40], index: 5, kind: input, shape index: {}]   ;;  %s413_s6 = inlined_call_operand.vmem [shape: f32[1,40], index: 6, kind: input, shape index: {}]   ;;  %s414_s7 = inlined_call_operand.hbm [shape: f32[16,40], index: 7, kind: output, shape index: {}]  }
   0x1   :  { %v30_v0 = vld [vmem:[%s408_s1] sm:$0xff]  ;;  %v31_v1 = vld [vmem:[%s408_s1 + $0x8] sm:$0xff]  ;;  %v32_v2 = vld [vmem:[%s408_s1 + $0x10] sm:$0xff]  ;;  %243 = vmatprep.subr.bf16.mxu0 %v296_v3  ;;  %247 = vmatprep.mubr.msk.bf16.mxu0 %vm297_vm0, %v296_v3 }
   0x2   :  { %v35_v4 = vpack.c.bf16 %v31_v1, %v30_v0  ;;  %v33_v5 = vld [vmem:[%s408_s1 + $0x18] sm:$0xff]  ;;  %251 = vmatprep.subr.bf16.mxu1 %v296_v3  ;;  %255 = vmatprep.mubr.msk.bf16.mxu1 %vm297_vm0, %v296_v3 }
   0x3   :  { %12 = vsyncpa [#allocation3], 0  ;;  %v36_v6 = vpack.c.bf16 %v33_v5, %v32_v2  ;;  %v28_v7 = vld [vmem:[%s407_s0] sm:$0xff]  ;;  %v29_v8 = vld [vmem:[%s407_s0 + $0x8] sm:$0xff]  ;;  %vm44_vm1 = vcmask 261120   ;;  %vm209_vm2 = vcmask 326656  }
   0x4   :  { %244 = vmatpush3.bf16.msra.mxu0 %v35_v4  ;;  %v34_v9 = vpack.c.bf16 %v29_v8, %v28_v7  ;;  %v91_v10 = vld [vmem:[%s410_s3] sm:$0xff]  ;;  %v92_v11 = vld [vmem:[%s410_s3 + $0x8] sm:$0xff]  ;;  %v93_v13 = vld [vmem:[%s410_s3 + $0x10] sm:$0xff] }
   0x5   :  { %245 = vmatprep.subr.bf16.mxu0 %v296_v3  ;;  %v96_v12 = vpack.c.bf16 %v92_v11, %v91_v10  ;;  %v94_v14 = vld [vmem:[%s410_s3 + $0x18] sm:$0xff]  ;;  %v228_v16 = vld [vmem:[%s409_s2] ss:$0 sm:$0xff]  ;;  %v152_v27 = vld [vmem:[%s412_s5 + $0x8] sm:$0xff] }
   0x6   :  { %v97_v15 = vpack.c.bf16 %v94_v14, %v93_v13  ;;  %v151_v26 = vld [vmem:[%s412_s5] sm:$0xff]  ;;  %v153_v29 = vld [vmem:[%s412_s5 + $0x10] sm:$0xff]  ;;  %v154_v30 = vld [vmem:[%s412_s5 + $0x18] sm:$0xff]  ;;  %s298_s5 = smov [#allocation2]  }
   0x7   :  { %252 = vmatpush3.bf16.msra.mxu1 %v96_v12  ;;  %v156_v28 = vpack.c.bf16 %v152_v27, %v151_v26  ;;  %v157_v31 = vpack.c.bf16 %v154_v30, %v153_v29  ;;  %v230_v32 = vld [vmem:[%s411_s4] ss:$0 sm:$0xff]  ;;  %s217_s8 = sshll.u32 %s298_s5, 4  ;;  %s218_s8 = int_to_ptr.vmem [resolvable:$true] %s217_s8 }
   0x8   :  { %246 = vmatpush3.bf16.msra.mxu0 %v36_v6  ;;  %253 = vmatprep.subr.bf16.mxu1 %v296_v3  ;;  %v232_v42 = vld [vmem:[%s413_s6] ss:$0 sm:$0xff]  ;;  %s272_s4 = scalar_lea.vmem %s218_s8, 256  ;;  %p277_p1 = scmp.lt.s32.totalorder %s218_s8, %s218_s8 }
   0x9   :  { %259 = vmatprep.subr.bf16.mxu0 %v296_v3  ;;  %p273_p0 = scmp.ne.s32.totalorder %s218_s8, %s272_s4  ;;  %p278_p2 = scmp.lt.s32.totalorder %s272_s4, %s272_s4 }
   0xb   :  { %248 = vmatmul.mubr.msk.bf16.vlgmr.msra.gmra.mrb[0].mxu0 %vm44_vm1, %v34_v9  ;;  %254 = vmatpush3.bf16.msra.mxu1 %v97_v15  ;;  %p279_p3 = por %p278_p2, %p277_p1 }
   0xc   :  { %263 = vmatprep.mubr.msk.bf16.mxu0 %vm297_vm0, %v296_v3  ;;  %260 = vmatpush3.bf16.msra.mxu0 %v156_v28 }
   0xd   :  { %261 = vmatprep.subr.bf16.mxu0 %v296_v3  ;;  %p280_p4 = pnand %p279_p3, %p273_p0 }
  0x10   :  { %262 = vmatpush3.bf16.msra.mxu0 %v157_v31 }
  0xde   :  { %v82_v17 = vpop.f32.mrb[0].mxu0 }
  0xdf   :  { %v83_v18 = vadd.f32 %v228_v16, %v82_v17  ;;  %v249_v19 = vpop.f32.mrb[1].mxu0 }
  0xe0   :  { %v85_v20 = vpop.f32.mrb[2].mxu0 }
  0xe1   :  { %v86_v21 = vadd.f32 %v228_v16, %v85_v20  ;;  %v250_v22 = vpop.f32.mrb[3].mxu0  ;;  %v89_v23 = vmax.f32 %v83_v18, 0.0 }
  0xe3   :  { %v90_v24 = vmax.f32 %v86_v21, 0.0 }
  0xe5   :  { %v95_v25 = vpack.c.bf16 %v90_v24, %v89_v23 }
  0xe7   :  { %256 = vmatmul.mubr.msk.bf16.vlgmr.msra.gmra.mrb[0].mxu1 %vm44_vm1, %v95_v25 }
 0x1ba   :  { %v142_v33 = vpop.f32.mrb[0].mxu1 }
 0x1bb   :  { %v143_v34 = vadd.f32 %v230_v32, %v142_v33  ;;  %v257_v35 = vpop.f32.mrb[1].mxu1 }
 0x1bc   :  { %v145_v36 = vpop.f32.mrb[2].mxu1 }
 0x1bd   :  { %v146_v37 = vadd.f32 %v230_v32, %v145_v36  ;;  %v258_v38 = vpop.f32.mrb[3].mxu1  ;;  %v149_v39 = vmax.f32 %v143_v34, 0.0 }
 0x1bf   :  { %v150_v40 = vmax.f32 %v146_v37, 0.0 }
 0x1c1   :  { %v155_v41 = vpack.c.bf16 %v150_v40, %v149_v39 }
 0x1c3   :  { %264 = vmatmul.mubr.msk.bf16.vlgmr.msra.gmra.mrb[4].mxu0 %vm44_vm1, %v155_v41 }
 0x296   :  { %v202_v43 = vpop.f32.mrb[4].mxu0 }
 0x297   :  { %v203_v44 = vadd.f32 %v232_v42, %v202_v43  ;;  %v265_v45 = vpop.f32.mrb[5].mxu0 }
 0x298   :  { %v205_v46 = vpop.f32.mrb[6].mxu0 }
 0x299   :  { %210 = vst.msk [vmem:[#allocation2] sm:$0xff] %vm209_vm2, %v203_v44  ;;  %v206_v47 = vadd.f32 %v232_v42, %v205_v46  ;;  %v266_v48 = vpop.f32.mrb[7].mxu0 }
 0x29b   :  { %211 = vst.msk [vmem:[#allocation2 + $0x8] sm:$0xff] %vm209_vm2, %v206_v47 }
 0x29c   :  { %283 = shalt.err (!%p280_p4)
}
 0x29d   :  { %s284_s10 = scalar_lea.hbm %s414_s7, 256 }
 0x29e   :  { %p285_p5 = scmp.ne.s32.totalorder %s414_s7, %s284_s10  ;;  %p288_p6 = scmp.lt.u32.totalorder %s284_s10, %s414_s7 }
 0x2a0   :  { %p290_p7 = pnand %p288_p6, %p285_p5 }
 0x2a2   :  { %293 = shalt.err (!%p290_p7)
}
 0x2a3   :  { %s299_s14 = smov 128   ;;  %s300_s15 = smov 8  }
 0x2a4   :  { %223 = dma.vmem_to_hbm [thread:$0]  %s218_s8, 256, %s414_s7, [#allocation3], %s299_s14, %s299_s14, %s300_s15  }
 0x2a5   :  { %294 = dma.done.wait [#allocation3], 256  }
 0x2a6   :  { %295 = vsyncadd [#allocation3], 4294967040 }
 0x2a7   :  { %227 = vsyncpa [#allocation3], 1 }

// kernel: transformer_forward.43
= control target key start
LH: loop header
LB: loop body
LE: loop exit
PB: predicated region body
PF: predicated region fallthrough
CT: control target
= control target key end

     0   :  { %vm18_vm0 = vcmask 261120   ;;  %s118_s0 = inlined_call_operand.vmem [shape: f32[16,32], index: 0, kind: input, shape index: {}]   ;;  %s119_s1 = inlined_call_operand.vmem [shape: f32[1,32], index: 1, kind: input, shape index: {}]   ;;  %s120_s2 = inlined_call_operand.vmem [shape: f32[1,32], index: 2, kind: input, shape index: {}]   ;;  %s121_s3 = inlined_call_operand.vmem [shape: f32[16,32], index: 3, kind: output, shape index: {}]  }
   0x1   :  { %v14_v0 = vld [vmem:[%s118_s0] sm:$0xff]  ;;  %v15_v1 = vld [vmem:[%s118_s0 + $0x8] sm:$0xff] }
   0x2   :  { %v19_v2 = vsel %vm18_vm0, %v14_v0, 0.0  ;;  %v22_v3 = vsel %vm18_vm0, %v15_v1, 0.0  ;;  %v68_v21 = vld [vmem:[%s119_s1] ss:$0 sm:$0xff] }
   0x3   :  { %20 = vadd.xlane.f32.xlu0 %v19_v2  ;;  %v69_v23 = vld [vmem:[%s120_s2] ss:$0 sm:$0xff] }
   0x7   :  { %23 = vadd.xlane.f32.xlu0 %v22_v3 }
  0x90   :  { %v21_v4 = vpop.xlane.xlu0 %20 }
  0x91   :  { %v26_v5 = vmul.f32 0.03125, %v21_v4 }
  0x93   :  { %v28_v6 = vsub.f32 %v14_v0, %v26_v5 }
  0x94   :  { %v24_v7 = vpop.xlane.xlu0 %23 }
  0x95   :  { %v27_v8 = vmul.f32 0.03125, %v24_v7  ;;  %v30_v9 = vmul.f32 %v28_v6, %v28_v6 }
  0x97   :  { %v29_v10 = vsub.f32 %v15_v1, %v27_v8  ;;  %v32_v11 = vsel %vm18_vm0, %v30_v9, 0.0 }
  0x98   :  { %33 = vadd.xlane.f32.xlu1 %v32_v11 }
  0x99   :  { %v31_v12 = vmul.f32 %v29_v10, %v29_v10 }
  0x9b   :  { %v35_v13 = vsel %vm18_vm0, %v31_v12, 0.0 }
  0x9c   :  { %36 = vadd.xlane.f32.xlu1 %v35_v13 }
 0x125   :  { %v34_v14 = vpop.xlane.xlu1 %33 }
 0x126   :  { %v38_v15 = vmul.f32 0.03125, %v34_v14 }
 0x128   :  { %v40_v16 = vadd.f32 1e-05, %v38_v15 }
 0x129   :  { %v37_v17 = vpop.xlane.xlu1 %36 }
 0x12a   :  { %70 = vrsqrt.f32 %v40_v16  ;;  %v39_v18 = vmul.f32 0.03125, %v37_v17 }
 0x12c   :  { %v41_v19 = vadd.f32 1e-05, %v39_v18 }
 0x12e   :  { %72 = vrsqrt.f32 %v41_v19 }
 0x134   :  { %v71_v20 = vpop.eup %70 }
 0x135   :  { %v44_v22 = vmul.f32 %v71_v20, %v28_v6 }
 0x137   :  { %v52_v24 = vmul.f32 %v68_v21, %v44_v22 }
 0x138   :  { %v73_v25 = vpop.eup %72 }
 0x139   :  { %v60_v26 = vadd.f32 %v69_v23, %v52_v24  ;;  %v45_v27 = vmul.f32 %v73_v25, %v29_v10 }
 0x13b   :  { %62 = vst.msk [vmem:[%s121_s3] sm:$0xff] %vm18_vm0, %v60_v26  ;;  %v53_v28 = vmul.f32 %v68_v21, %v45_v27 }
 0x13d   :  { %v61_v29 = vadd.f32 %v69_v23, %v53_v28 }
 0x13f   :  { %63 = vst.msk [vmem:[%s121_s3 + $0x8] sm:$0xff] %vm18_vm0, %v61_v29 }

// kernel: transformer_forward.38
= control target key start
LH: loop header
LB: loop body
LE: loop exit
PB: predicated region body
PF: predicated region fallthrough
CT: control target
= control target key end

     0   :  { %s2469_s18 = smov 0   ;;  %s2874_s0 = inlined_call_operand.vmem [shape: f32[2,8,32], index: 0, kind: input, shape index: {}]   ;;  %s2875_s1 = inlined_call_operand.vmem [shape: f32[2,8,32], index: 1, kind: input, shape index: {}]   ;;  %s2876_s2 = inlined_call_operand.vmem [shape: f32[2,16,32], index: 2, kind: input, shape index: {}]   ;;  %s2877_s3 = inlined_call_operand.vmem [shape: f32[2,16,32], index: 3, kind: input, shape index: {}]   ;;  %s2878_s4 = inlined_call_operand.vmem [shape: f32[2,1,16], index: 4, kind: input, shape index: {}]   ;;  %s2879_s5 = inlined_call_operand.vmem [shape: f32[4,32,8], index: 5, kind: input, shape index: {}]   ;;  %s2880_s6 = inlined_call_operand.vmem [shape: f32[4,32,8], index: 6, kind: input, shape index: {}]   ;;  %s2881_s7 = inlined_call_operand.vmem [shape: f32[4,32,8], index: 7, kind: input, shape index: {}]   ;;  %s2882_s8 = inlined_call_operand.vmem [shape: f32[4,1,8], index: 8, kind: input, shape index: {}]   ;;  %s2883_s9 = inlined_call_operand.vmem [shape: f32[4,1,8], index: 9, kind: input, shape index: {}]   ;;  %s2884_s10 = inlined_call_operand.vmem [shape: f32[4,1,8], index: 10, kind: input, shape index: {}]   ;;  %s2885_s11 = inlined_call_operand.vmem [shape: f32[4,8,32], index: 11, kind: input, shape index: {}]   ;;  %s2886_s12 = inlined_call_operand.vmem [shape: f32[1,32], index: 12, kind: input, shape index: {}]   ;;  %s2887_s13 = inlined_call_operand.vmem [shape: f32[1,32], index: 13, kind: input, shape index: {}]   ;;  %s2888_s14 = inlined_call_operand.vmem [shape: f32[1,32], index: 14, kind: input, shape index: {}]   ;;  %s2889_s15 = inlined_call_operand.vmem [shape: f32[2,8,32], index: 15, kind: output, shape index: {}]  }
   0x1 LB: > { %s2020_s19 = sadd.s32 4294967295, %s2385_s18   ;;  %p2024_p0 = scmp.ge.s32.totalorder %s2385_s18, 1  ;;  %s2385_s18 = sphi %s2469_s18, %s25_s18  }
   0x2   : > { %p473_p1 = scmp.lt.s32.totalorder %s2385_s18, 3 }
   0x4   : > { %p474_p2 = pnand %p2024_p0, %p473_p1 }
   0x5   : > { %v633_v0 = vld [vmem:[%s2880_s6] sm:$0xff] (!%p474_p2)  ;;  %v634_v1 = vld [vmem:[%s2880_s6 + $0x8] sm:$0xff] (!%p474_p2)  ;;  %v635_v2 = vld [vmem:[%s2880_s6 + $0x10] sm:$0xff] (!%p474_p2)  ;;  %p536_p3 = scmp.lt.s32.totalorder (!%p474_p2), %s2020_s19, 1  ;;  %v2387_v3 = vmov (!%p474_p2), 0.0   ;;  %vm2388_vm0 = vmmov (!%p474_p2), 0   ;;  %v798_v47 = vlaneseq (!%p474_p2) }
   0x6   : > { %477 = sbr.rel (%p474_p2) target bundleno = 4242 (0x1092), region = 80  ;;  %2191 = vmatprep.subr.bf16.mxu1 (!%p474_p2), %v2387_v3  ;;  %v637_v4 = vpack.c.bf16 (!%p474_p2), %v634_v1, %v633_v0  ;;  %v636_v5 = vld [vmem:[%s2880_s6 + $0x18] sm:$0xff] (!%p474_p2)  ;;  %2183 = vmatprep.subr.bf16.mxu0 (!%p474_p2), %v2387_v3  ;;  %v576_v6 = vld [vmem:[%s2879_s5] sm:$0xff] (!%p474_p2)  ;;  %v577_v7 = vld [vmem:[%s2879_s5 + $0x8] sm:$0xff] (!%p474_p2)  ;;  %vm589_vm1 = vcmask (!%p474_p2), 261120   ;;  %vm749_vm2 = vcmask (!%p474_p2), 64512  }
   0x7   : > { %2195 = vmatprep.mubr.msk.bf16.mxu1 (!%p474_p2), %vm2388_vm0, %v2387_v3  ;;  %v580_v8 = vpack.c.bf16 (!%p474_p2), %v577_v7, %v576_v6  ;;  %v578_v9 = vld [vmem:[%s2879_s5 + $0x10] sm:$0xff] (!%p474_p2)  ;;  %v579_v10 = vld [vmem:[%s2879_s5 + $0x18] sm:$0xff] (!%p474_p2)  ;;  %2187 = vmatprep.mubr.msk.bf16.mxu0 (!%p474_p2), %vm2388_vm0, %v2387_v3  ;;  %v638_v11 = vpack.c.bf16 (!%p474_p2), %v636_v5, %v635_v2  ;;  %v2034_v25 = vld [vmem:[%s2883_s9] ss:$0 sm:$0xff] (!%p474_p2)  ;;  %v799_v48 = vshrl.u32 (!%p474_p2), %v798_v47, 7  ;;  %vm804_vm3 = vcmask (!%p474_p2), 130048  }
   0x8   : > { %2192 = vmatpush3.bf16.msra.mxu1 (!%p474_p2), %v637_v4  ;;  %v581_v12 = vpack.c.bf16 (!%p474_p2), %v579_v10, %v578_v9  ;;  %v2032_v36 = vld [vmem:[%s2882_s8] ss:$0 sm:$0xff] (!%p474_p2)  ;;  %v691_v42 = vld [vmem:[%s2881_s7 + $0x8] sm:$0xff] (!%p474_p2)  ;;  %v692_v43 = vld [vmem:[%s2881_s7 + $0x10] sm:$0xff] (!%p474_p2)  ;;  %vm1144_vm4 = vcmask (!%p474_p2), 1043456  }
   0x9   : > { %2193 = vmatprep.subr.bf16.mxu1 (!%p474_p2), %v2387_v3  ;;  %2184 = vmatpush3.bf16.msra.mxu0 (!%p474_p2), %v580_v8  ;;  %v690_v41 = vld [vmem:[%s2881_s7] sm:$0xff] (!%p474_p2)  ;;  %v693_v45 = vld [vmem:[%s2881_s7 + $0x18] sm:$0xff] (!%p474_p2)  ;;  %v800_v51 = vsub.s32 (!%p474_p2), 0, %v799_v48 }
   0xa   : > { %2185 = vmatprep.subr.bf16.mxu0 (!%p474_p2), %v2387_v3  ;;  %v694_v44 = vpack.c.bf16 (!%p474_p2), %v691_v42, %v690_v41  ;;  %v695_v46 = vpack.c.bf16 (!%p474_p2), %v693_v45, %v692_v43  ;;  %v2036_v4 = vld [vmem:[%s2884_s10] ss:$0 sm:$0xff] (!%p474_p2)  ;;  %v2045_v45 = vld [vmem:[%s2882_s8 + $0x1] ss:$0 sm:$0xff] (!%p474_p2) }
   0xb   : > { %v2040_v10 = vld [vmem:[%s2879_s5 + $0x20] sm:$0xff] (!%p474_p2) }
   0xc   : > { %2194 = vmatpush3.bf16.msra.mxu1 (!%p474_p2), %v638_v11  ;;  %v2041_v11 = vld [vmem:[%s2879_s5 + $0x28] sm:$0xff] (!%p474_p2) }
   0xd   : > { %s2891_s19 = smov (!%p536_p3, %s2020_s19), 1  ;;  %2186 = vmatpush3.bf16.msra.mxu0 %v581_v12  ;;  %2207 = vmatprep.subr.bf16.mxu1 %v2387_v3  ;;  %v869_v12 = vpack.c.bf16 %v2041_v11, %v2040_v10 }
   0xe   : > { %s2121_s23 = sshll.u32 %s2891_s19, 4  ;;  %s2512_s24 = sshll.u32 %s2891_s19, 3  ;;  %2199 = vmatprep.subr.bf16.mxu0 %v2387_v3 }
   0xf   : > { %s548_s27 = scalar_lea.vmem %s2876_s2, %s2121_s23  ;;  %s553_s30 = scalar_lea.vmem %s2877_s3, %s2121_s23 }
  0x10   : > { %v565_v13 = vld [vmem:[%s548_s27] sm:$0xff]  ;;  %v566_v14 = vld [vmem:[%s548_s27 + $0x8] sm:$0xff]  ;;  %s539_s20 = scalar_lea.vmem %s2874_s0, %s2512_s24  ;;  %s543_s25 = scalar_lea.vmem %s2875_s1, %s2512_s24 }
  0x11   : > { %v567_v15 = vld [vmem:[%s553_s30] sm:$0xff]  ;;  %v568_v16 = vld [vmem:[%s553_s30 + $0x8] sm:$0xff]  ;;  %v2529_v18 = vpack.c.bf16 %v566_v14, %v565_v13  ;;  %s556_s27 = scalar_lea.vmem %s2878_s4, %s2891_s19  ;;  %s560_s16 = scalar_lea.vmem %s2889_s15, %s2512_s24 }
  0x12   : > { %v569_v17 = vadd.f32 %v567_v15, %v565_v13  ;;  %v2531_v19 = vld [vmem:[%s539_s20] sm:$0xff]  ;;  %v570_v21 = vadd.f32 %v568_v16, %v566_v14  ;;  %v2042_v13 = vld [vmem:[%s2879_s5 + $0x30] sm:$0xff]  ;;  %v2043_v14 = vld [vmem:[%s2879_s5 + $0x38] sm:$0xff] }
  0x13   : > { %v563_v20 = vld [vmem:[%s543_s25] sm:$0xff]  ;;  %v870_v15 = vpack.c.bf16 %v2043_v14, %v2042_v13  ;;  %v2063_v14 = vld [vmem:[%s2885_s11 + $0x8] sm:$0xff] }
  0x14   : > { %v564_v22 = vadd.f32 %v563_v20, %v2531_v19  ;;  %v2536_v23 = vpack.c.bf16 %v570_v21, %v569_v17  ;;  %v571_v49 = vld [vmem:[%s556_s27] sm:$0x1]  ;;  %v2048_v20 = vld [vmem:[%s2880_s6 + $0x28] sm:$0xff] }
  0x15   : > { %v572_v50 = vmul.f32 -1e+09, %v571_v49  ;;  %v2047_v17 = vld [vmem:[%s2880_s6 + $0x20] sm:$0xff] }
  0x16   : > { %v2538_v24 = vpack.c.bf16 %v564_v22, %v564_v22  ;;  %2196 = vmatmul.mubr.msk.bf16.vlgmr.msra.gmra.mrb[0].mxu1 %vm589_vm1, %v2536_v23 }
  0x17   : > { %2209 = vmatprep.mubr.msk.bf16.mxu1 %vm2388_vm0, %v2387_v3  ;;  %v2581_v52 = vrot.slane %v572_v50, %v800_v51  ;;  %v2054_v50 = vld [vmem:[%s2881_s7 + $0x20] sm:$0xff]  ;;  %v2055_v51 = vld [vmem:[%s2881_s7 + $0x28] sm:$0xff] }
  0x18   : > { %2188 = vmatmul.mubr.msk.bf16.vlgmr.msra.gmra.mrb[0].mxu0 %vm589_vm1, %v2538_v24 }
  0x19   : > { %2203 = vmatprep.mubr.msk.bf16.mxu0 %vm2388_vm0, %v2387_v3  ;;  %2200 = vmatpush3.bf16.msra.mxu0 %v694_v44 }
  0x1a   : > { %2201 = vmatprep.subr.bf16.mxu0 %v2387_v3 }
  0x1d   : > { %2202 = vmatpush3.bf16.msra.mxu0 %v695_v46 }
  0x1e   : > { %2213 = vmatprep.subr.bf16.mxu0 %v2387_v3 }
  0x20   : > { %2204 = vmatmul.mubr.msk.bf16.vlgmr.msra.gmra.mrb[4].mxu0 %vm589_vm1, %v2529_v18 }
  0x21   : > { %2215 = vmatprep.mubr.msk.bf16.mxu0 %vm2388_vm0, %v2387_v3 }
  0xe9   : > { %v683_v26 = vpop.f32.mrb[0].mxu1 }
  0xea   : > { %v2197_v28 = vpop.f32.mrb[1].mxu1  ;;  %v684_v32 = vadd.f32 %v2034_v25, %v683_v26 }
  0xeb   : > { %v627_v27 = vpop.f32.mrb[0].mxu0  ;;  %v686_v30 = vpop.f32.mrb[2].mxu1  ;;  %v2050_v28 = vld [vmem:[%s2880_s6 + $0x38] sm:$0xff] }
  0xec   : > { %v2189_v29 = vpop.f32.mrb[1].mxu0  ;;  %v687_v33 = vadd.f32 %v2034_v25, %v686_v30  ;;  %v2198_v34 = vpop.f32.mrb[3].mxu1  ;;  %v628_v38 = vadd.f32 %v2032_v36, %v627_v27  ;;  %v924_v25 = vpack.c.bf16 %v2048_v20, %v2047_v17  ;;  %v2049_v27 = vld [vmem:[%s2880_s6 + $0x30] sm:$0xff]  ;;  %v862_v20 = vld [vmem:[%s2885_s11] sm:$0xff] }
  0xed   : > { %v630_v31 = vpop.f32.mrb[2].mxu0  ;;  %v925_v29 = vpack.c.bf16 %v2050_v28, %v2049_v27  ;;  %v2073_v28 = vld [vmem:[%s2880_s6 + $0x40] sm:$0xff] }
  0xee   : > { %v2190_v35 = vpop.f32.mrb[3].mxu0  ;;  %v748_v37 = vpack.c.bf16 %v687_v33, %v684_v32  ;;  %v747_v40 = vpack.c.bf16 %v628_v38, %v628_v38  ;;  %v2052_v38 = vld [vmem:[%s2883_s9 + $0x1] ss:$0 sm:$0xff] }
  0xf0   : > { %v754_v39 = vsel %vm749_vm2, %v748_v37, 0 }
  0xf1   : > { %2208 = vmatpush3.bf16.xpose.msra.mxu1 %v754_v39 }
  0xf2   : > { %2219 = vmatprep.subr.bf16.mxu1 %v2387_v3 }
  0xf3   : > { %v740_v60 = vpop.f32.mrb[4].mxu0 }
  0xf4   : > { %v2205_v61 = vpop.f32.mrb[5].mxu0  ;;  %v741_v5 = vadd.f32 %v2036_v4, %v740_v60 }
  0xf5   : > { %v743_v6 = vpop.f32.mrb[6].mxu0 }
  0xf6   : > { %v2206_v7 = vpop.f32.mrb[7].mxu0  ;;  %v744_v8 = vadd.f32 %v2036_v4, %v743_v6 }
  0xf8   : > { %2210 = vmatmul.mubr.msk.bf16.vlgmr.msra.gmra.mrb[4].mxu1 %vm749_vm2, %v747_v40  ;;  %v817_v9 = vpack.c.bf16 %v744_v8, %v741_v5  ;;  %v2059_v8 = vld [vmem:[%s2884_s10 + $0x1] ss:$0 sm:$0xff] }
  0xf9   : > { %2223 = vmatprep.mubr.msk.bf16.mxu1 %vm2388_vm0, %v2387_v3  ;;  %2220 = vmatpush3.bf16.msra.mxu1 %v869_v12 }
  0xfa   : > { %2214 = vmatpush3.bf16.msra.mxu0 %v817_v9  ;;  %2221 = vmatprep.subr.bf16.mxu1 %v2387_v3 }
  0xfb   : > { %2227 = vmatprep.subr.bf16.mxu0 %v2387_v3 }
  0xfd   : > { %2222 = vmatpush3.bf16.msra.mxu1 %v870_v15  ;;  %v1140_v15 = vpack.c.bf16 %v2063_v14, %v2063_v14 }
  0xfe   : > { %2235 = vmatprep.subr.bf16.mxu1 %v2387_v3 }
 0x100   : > { %2224 = vmatmul.mubr.msk.bf16.vlgmr.msra.gmra.mrb[8].mxu1 %vm589_vm1, %v2538_v24 }
 0x101   : > { %2239 = vmatprep.mubr.msk.bf16.mxu1 %vm2388_vm0, %v2387_v3 }
 0x1cb   : > { %v790_v53 = vpop.f32.mrb[4].mxu1 }
 0x1cc   : > { %v796_v54 = vmul.f32 0.35355338, %v790_v53  ;;  %v2211_v55 = vpop.f32.mrb[5].mxu1  ;;  %v2056_v53 = vld [vmem:[%s2881_s7 + $0x30] sm:$0xff] }
 0x1cd   : > { %v793_v56 = vpop.f32.mrb[6].mxu1  ;;  %v2057_v55 = vld [vmem:[%s2881_s7 + $0x38] sm:$0xff] }
 0x1ce   : > { %v2212_v57 = vpop.f32.mrb[7].mxu1  ;;  %v803_v58 = vadd.f32 %v2581_v52, %v796_v54  ;;  %v980_v54 = vpack.c.bf16 %v2055_v51, %v2054_v50  ;;  %v981_v56 = vpack.c.bf16 %v2057_v55, %v2056_v53  ;;  %v2078_v50 = vld [vmem:[%s2883_s9 + $0x2] ss:$0 sm:$0xff] }
 0x1d0   : > { %v805_v59 = vsel %vm804_vm3, %v803_v58, -inf  ;;  %2236 = vmatpush3.bf16.msra.mxu1 %v980_v54 }
 0x1d1   : > { %806 = vmax.xlane.f32.xlu0 %v805_v59  ;;  %2237 = vmatprep.subr.bf16.mxu1 %v2387_v3 }
 0x1d3   : > { %v913_v30 = vpop.f32.mrb[8].mxu1 }
 0x1d4   : > { %v2225_v31 = vpop.f32.mrb[9].mxu1  ;;  %v914_v47 = vadd.f32 %v2045_v45, %v913_v30  ;;  %2238 = vmatpush3.bf16.msra.mxu1 %v981_v56 }
 0x1d5   : > { %v916_v32 = vpop.f32.mrb[10].mxu1  ;;  %2249 = vmatprep.subr.bf16.mxu1 %v2387_v3 }
 0x1d6   : > { %v2226_v33 = vpop.f32.mrb[11].mxu1  ;;  %v1031_v49 = vpack.c.bf16 %v914_v47, %v914_v47  ;;  %v2075_v32 = vld [vmem:[%s2880_s6 + $0x50] sm:$0xff] }
 0x1d7   : > { %2240 = vmatmul.mubr.msk.bf16.vlgmr.msra.gmra.mrb[12].mxu1 %vm589_vm1, %v2529_v18  ;;  %v2076_v33 = vld [vmem:[%s2880_s6 + $0x58] sm:$0xff] }
 0x1d8   : > { %2251 = vmatprep.mubr.msk.bf16.mxu1 %vm2388_vm0, %v2387_v3 }
 0x25e   : > { %v807_v62 = vpop.xlane.xlu0 %806 }
 0x25f   : > { %v808_v63 = vsub.f32 %v803_v58, %v807_v62 }
 0x261   : > { %v809_v0 = vmul.f32 1.442695, %v808_v63 }
 0x263   : > { %2361 = vpow2.f32 %v809_v0 }
 0x26d   : > { %v2362_v1 = vpop.eup %2361 }
 0x26e   : > { %v811_v2 = vsel %vm804_vm3, %v2362_v1, 0.0 }
 0x26f   : > { %812 = vadd.xlane.f32.xlu0 %v811_v2 }
 0x2aa   : > { %v1024_v0 = vpop.f32.mrb[12].mxu1 }
 0x2ab   : > { %v1025_v9 = vadd.f32 %v2059_v8, %v1024_v0 }
 0x2fc   : > { %v813_v16 = vpop.xlane.xlu0 %812 }
 0x2fd   : > { %2363 = vrcp.f32 %v813_v16  ;;  %v1146_v16 = vsel %vm1144_vm4, %v1140_v15, 0 }
 0x307   : > { %v2364_v21 = vpop.eup %2363 }
 0x308   : > { %v815_v22 = vmul.f32 %v2364_v21, %v2362_v1  ;;  %v2241_v1 = vpop.f32.mrb[13].mxu1  ;;  %v863_v21 = vpack.c.bf16 %v862_v20, %v862_v20 }
 0x309   : > { %v1027_v10 = vpop.f32.mrb[14].mxu1  ;;  %v2071_v1 = vld [vmem:[%s2882_s8 + $0x2] ss:$0 sm:$0xff] }
 0x30a   : > { %v816_v26 = vpack.c.bf16 %v815_v22, %v815_v22  ;;  %v2242_v11 = vpop.f32.mrb[15].mxu1  ;;  %v1028_v12 = vadd.f32 %v2059_v8, %v1027_v10  ;;  %v1192_v27 = vsel %vm1144_vm4, %v863_v21, 0  ;;  %v2081_v10 = vld [vmem:[%s2881_s7 + $0x48] sm:$0xff] }
 0x30b   : > { %v2082_v11 = vld [vmem:[%s2881_s7 + $0x50] sm:$0xff] }
 0x30c   : > { %2216 = vmatmul.mubr.msk.bf16.vlgmr.msra.gmra.mrb[8].mxu0 %vm804_vm3, %v816_v26  ;;  %v1093_v13 = vpack.c.bf16 %v1028_v12, %v1025_v9  ;;  %v2080_v9 = vld [vmem:[%s2881_s7 + $0x40] sm:$0xff] }
 0x30d   : > { %2228 = vmatpush3.bf16.msra.mxu0 %v924_v25  ;;  %2231 = vmatprep.mubr.msk.bf16.mxu0 %vm2388_vm0, %v2387_v3  ;;  %v1350_v12 = vpack.c.bf16 %v2081_v10, %v2080_v9  ;;  %v2103_v10 = vld [vmem:[%s2883_s9 + $0x3] ss:$0 sm:$0xff] }
 0x30e   : > { %2229 = vmatprep.subr.bf16.mxu0 %v2387_v3  ;;  %2250 = vmatpush3.bf16.msra.mxu1 %v1093_v13  ;;  %v2083_v13 = vld [vmem:[%s2881_s7 + $0x58] sm:$0xff] }
 0x30f   : > { %2261 = vmatprep.subr.bf16.mxu1 %v2387_v3  ;;  %v1351_v14 = vpack.c.bf16 %v2083_v13, %v2082_v11 }
 0x311   : > { %2230 = vmatpush3.bf16.msra.mxu0 %v925_v29  ;;  %v2074_v29 = vld [vmem:[%s2880_s6 + $0x48] sm:$0xff] }
 0x312   : > { %2243 = vmatprep.subr.bf16.mxu0 %v2387_v3  ;;  %v1294_v30 = vpack.c.bf16 %v2074_v29, %v2073_v28 }
 0x314   : > { %2232 = vmatmul.mubr.msk.bf16.vlgmr.msra.gmra.mrb[12].mxu0 %vm589_vm1, %v2536_v23 }
 0x315   : > { %2245 = vmatprep.mubr.msk.bf16.mxu0 %vm2388_vm0, %v2387_v3 }
 0x3df   : > { %v2629_v34 = vpop.f32.mrb[8].mxu0 }
 0x3e0   : > { %v2217_v35 = vpop.f32.mrb[9].mxu0  ;;  %v861_v31 = vpack.c.bf16 %v2629_v34, %v2629_v34  ;;  %v2066_v34 = vld [vmem:[%s2879_s5 + $0x40] sm:$0xff] }
 0x3e1   : > { %v858_v36 = vpop.f32.mrb[10].mxu0  ;;  %v1295_v35 = vpack.c.bf16 %v2076_v33, %v2075_v32  ;;  %v2085_v33 = vld [vmem:[%s2884_s10 + $0x2] ss:$0 sm:$0xff] }
 0x3e2   : > { %v2218_v37 = vpop.f32.mrb[11].mxu0  ;;  %v2067_v36 = vld [vmem:[%s2879_s5 + $0x48] sm:$0xff] }
 0x3e7   : > { %v968_v39 = vpop.f32.mrb[12].mxu0 }
 0x3e8   : > { %v2233_v40 = vpop.f32.mrb[13].mxu0  ;;  %v969_v42 = vadd.f32 %v2052_v38, %v968_v39 }
 0x3e9   : > { %v971_v41 = vpop.f32.mrb[14].mxu0 }
 0x3ea   : > { %v972_v43 = vadd.f32 %v2052_v38, %v971_v41  ;;  %v2234_v44 = vpop.f32.mrb[15].mxu0  ;;  %v1239_v38 = vpack.c.bf16 %v2067_v36, %v2066_v34  ;;  %v2068_v41 = vld [vmem:[%s2879_s5 + $0x50] sm:$0xff] }
 0x3ec   : > { %v1032_v46 = vpack.c.bf16 %v972_v43, %v969_v42  ;;  %v2069_v42 = vld [vmem:[%s2879_s5 + $0x58] sm:$0xff] }
 0x3ed   : > { %v1240_v45 = vpack.c.bf16 %v2069_v42, %v2068_v41 }
 0x3ee   : > { %v1037_v48 = vsel %vm749_vm2, %v1032_v46, 0 }
 0x3ef   : > { %2244 = vmatpush3.bf16.xpose.msra.mxu0 %v1037_v48 }
 0x3f0   : > { %2255 = vmatprep.subr.bf16.mxu0 %v2387_v3 }
 0x3f6   : > { %2246 = vmatmul.mubr.msk.bf16.vlgmr.msra.gmra.mrb[16].mxu0 %vm749_vm2, %v1031_v49 }
 0x3f7   : > { %2257 = vmatprep.mubr.msk.bf16.mxu0 %vm2388_vm0, %v2387_v3  ;;  %2256 = vmatpush3.bf16.msra.mxu0 %v1146_v16 }
 0x3f8   : > { %2267 = vmatprep.subr.bf16.mxu0 %v2387_v3 }
 0x4c9   : > { %v1073_v57 = vpop.f32.mrb[16].mxu0 }
 0x4ca   : > { %v1079_v58 = vmul.f32 0.35355338, %v1073_v57  ;;  %v2247_v59 = vpop.f32.mrb[17].mxu0 }
 0x4cb   : > { %v1076_v60 = vpop.f32.mrb[18].mxu0 }
 0x4cc   : > { %v2248_v61 = vpop.f32.mrb[19].mxu0  ;;  %v1080_v62 = vadd.f32 %v1079_v58, %v2581_v52 }
 0x4ce   : > { %v1081_v63 = vsel %vm804_vm3, %v1080_v62, -inf }
 0x4cf   : > { %1082 = vmax.xlane.f32.xlu1 %v1081_v63 }
 0x55c   : > { %v1083_v2 = vpop.xlane.xlu1 %1082 }
 0x55d   : > { %v1084_v4 = vsub.f32 %v1080_v62, %v1083_v2 }
 0x55f   : > { %v1085_v5 = vmul.f32 1.442695, %v1084_v4 }
 0x561   : > { %2365 = vpow2.f32 %v1085_v5 }
 0x56b   : > { %v2366_v6 = vpop.eup %2365 }
 0x56c   : > { %v1087_v7 = vsel %vm804_vm3, %v2366_v6, 0.0 }
 0x56d   : > { %1088 = vadd.xlane.f32.xlu1 %v1087_v7 }
 0x5fa   : > { %v1089_v17 = vpop.xlane.xlu1 %1088 }
 0x5fb   : > { %2367 = vrcp.f32 %v1089_v17 }
 0x605   : > { %v2368_v22 = vpop.eup %2367 }
 0x606   : > { %v1091_v25 = vmul.f32 %v2368_v22, %v2366_v6 }
 0x608   : > { %v1092_v26 = vpack.c.bf16 %v1091_v25, %v1091_v25 }
 0x60a   : > { %2252 = vmatmul.mubr.msk.bf16.vlgmr.msra.gmra.mrb[16].mxu1 %vm804_vm3, %v1092_v26 }
 0x60b   : > { %2262 = vmatpush3.bf16.msra.mxu1 %v1192_v27  ;;  %2263 = vmatprep.mubr.msk.bf16.mxu1 %vm2388_vm0, %v2387_v3 }
 0x60c   : > { %2275 = vmatprep.subr.bf16.mxu1 %v2387_v3 }
 0x612   : > { %2264 = vmatmul.mubr.msk.bf16.vlgmr.msra.gmra.mrb[20].mxu1 %vm749_vm2, %v861_v31 }
 0x613   : > { %2276 = vmatpush3.bf16.msra.mxu1 %v1294_v30  ;;  %2279 = vmatprep.mubr.msk.bf16.mxu1 %vm2388_vm0, %v2387_v3 }
 0x614   : > { %2277 = vmatprep.subr.bf16.mxu1 %v2387_v3 }
 0x617   : > { %2278 = vmatpush3.bf16.msra.mxu1 %v1295_v35 }
 0x618   : > { %2291 = vmatprep.subr.bf16.mxu1 %v2387_v3 }
 0x61a   : > { %2280 = vmatmul.mubr.msk.bf16.vlgmr.msra.gmra.mrb[24].mxu1 %vm589_vm1, %v2536_v23 }
 0x61b   : > { %2293 = vmatprep.mubr.msk.bf16.mxu1 %vm2388_vm0, %v2387_v3 }
 0x6dd   : > { %v1131_v37 = vpop.f32.mrb[16].mxu1 }
 0x6de   : > { %v1137_v39 = vpack.c.bf16 %v1131_v37, %v1131_v37  ;;  %v2253_v40 = vpop.f32.mrb[17].mxu1 }
 0x6df   : > { %v1134_v43 = vpop.f32.mrb[18].mxu1 }
 0x6e0   : > { %v2254_v44 = vpop.f32.mrb[19].mxu1  ;;  %2258 = vmatmul.mubr.msk.bf16.vlgmr.msra.gmra.mrb[20].mxu0 %vm749_vm2, %v1137_v39  ;;  %v2089_v39 = vld [vmem:[%s2885_s11 + $0x10] sm:$0xff] }
 0x6e1   : > { %2268 = vmatpush3.bf16.msra.mxu0 %v1239_v38  ;;  %2271 = vmatprep.mubr.msk.bf16.mxu0 %vm2388_vm0, %v2387_v3  ;;  %v1510_v40 = vpack.c.bf16 %v2089_v39, %v2089_v39 }
 0x6e2   : > { %2269 = vmatprep.subr.bf16.mxu0 %v2387_v3 }
 0x6e3   : > { %v1515_v41 = vsel %vm1144_vm4, %v1510_v40, 0 }
 0x6e5   : > { %v1228_v46 = vpop.f32.mrb[20].mxu1  ;;  %2270 = vmatpush3.bf16.msra.mxu0 %v1240_v45 }
 0x6e6   : > { %v2265_v47 = vpop.f32.mrb[21].mxu1  ;;  %2283 = vmatprep.subr.bf16.mxu0 %v2387_v3 }
 0x6e7   : > { %v1231_v48 = vpop.f32.mrb[22].mxu1  ;;  %v2092_v47 = vld [vmem:[%s2879_s5 + $0x68] sm:$0xff] }
 0x6e8   : > { %v2266_v49 = vpop.f32.mrb[23].mxu1  ;;  %2272 = vmatmul.mubr.msk.bf16.vlgmr.msra.gmra.mrb[24].mxu0 %vm589_vm1, %v2538_v24 }
 0x6e9   : > { %2287 = vmatprep.mubr.msk.bf16.mxu0 %vm2388_vm0, %v2387_v3  ;;  %2284 = vmatpush3.bf16.msra.mxu0 %v1350_v12  ;;  %v2093_v49 = vld [vmem:[%s2879_s5 + $0x70] sm:$0xff] }
 0x6ea   : > { %2285 = vmatprep.subr.bf16.mxu0 %v2387_v3 }
 0x6ed   : > { %v1338_v51 = vpop.f32.mrb[24].mxu1  ;;  %2286 = vmatpush3.bf16.msra.mxu0 %v1351_v14 }
 0x6ee   : > { %v1339_v53 = vadd.f32 %v2078_v50, %v1338_v51  ;;  %v2281_v54 = vpop.f32.mrb[25].mxu1  ;;  %2297 = vmatprep.subr.bf16.mxu0 %v2387_v3 }
 0x6ef   : > { %v1341_v55 = vpop.f32.mrb[26].mxu1  ;;  %v2099_v54 = vld [vmem:[%s2880_s6 + $0x68] sm:$0xff] }
 0x6f0   : > { %v1342_v56 = vadd.f32 %v2078_v50, %v1341_v55  ;;  %v2282_v57 = vpop.f32.mrb[27].mxu1  ;;  %2288 = vmatmul.mubr.msk.bf16.vlgmr.msra.gmra.mrb[28].mxu0 %vm589_vm1, %v2529_v18  ;;  %v2094_v50 = vld [vmem:[%s2879_s5 + $0x78] sm:$0xff] }
 0x6f1   : > { %2299 = vmatprep.mubr.msk.bf16.mxu0 %vm2388_vm0, %v2387_v3  ;;  %v1564_v51 = vpack.c.bf16 %v2094_v50, %v2093_v49 }
 0x6f2   : > { %v1402_v58 = vpack.c.bf16 %v1342_v56, %v1339_v53  ;;  %v2098_v53 = vld [vmem:[%s2880_s6 + $0x60] sm:$0xff] }
 0x6f3   : > { %v1618_v56 = vpack.c.bf16 %v2099_v54, %v2098_v53 }
 0x6f4   : > { %v1407_v59 = vsel %vm749_vm2, %v1402_v58, 0 }
 0x6f5   : > { %2292 = vmatpush3.bf16.xpose.msra.mxu1 %v1407_v59  ;;  %v2100_v59 = vld [vmem:[%s2880_s6 + $0x70] sm:$0xff] }
 0x6f6   : > { %2303 = vmatprep.subr.bf16.mxu1 %v2387_v3 }
 0x7b3   : > { %v1182_v60 = vpop.f32.mrb[20].mxu0 }
 0x7b4   : > { %v2729_v61 = vadd.f32 %v1228_v46, %v1182_v60  ;;  %v2259_v62 = vpop.f32.mrb[21].mxu0  ;;  %v2091_v46 = vld [vmem:[%s2879_s5 + $0x60] sm:$0xff] }
 0x7b5   : > { %v1185_v63 = vpop.f32.mrb[22].mxu0  ;;  %v1563_v48 = vpack.c.bf16 %v2092_v47, %v2091_v46  ;;  %v2114_v47 = vld [vmem:[%s2885_s11 + $0x18] sm:$0xff] }
 0x7b6   : > { %v2260_v0 = vpop.f32.mrb[23].mxu0 }
 0x7bb   : > { %v1283_v2 = vpop.f32.mrb[24].mxu0 }
 0x7bc   : > { %v1284_v4 = vadd.f32 %v2071_v1, %v1283_v2  ;;  %v2273_v5 = vpop.f32.mrb[25].mxu0 }
 0x7bd   : > { %v1286_v6 = vpop.f32.mrb[26].mxu0 }
 0x7be   : > { %v1401_v7 = vpack.c.bf16 %v1284_v4, %v1284_v4  ;;  %v2274_v8 = vpop.f32.mrb[27].mxu0 }
 0x7c0   : > { %2294 = vmatmul.mubr.msk.bf16.vlgmr.msra.gmra.mrb[28].mxu1 %vm749_vm2, %v1401_v7 }
 0x7c1   : > { %2305 = vmatprep.mubr.msk.bf16.mxu1 %vm2388_vm0, %v2387_v3  ;;  %2304 = vmatpush3.bf16.msra.mxu1 %v1515_v41 }
 0x7c2   : > { %2317 = vmatprep.subr.bf16.mxu1 %v2387_v3 }
 0x7c3   : > { %v1394_v26 = vpop.f32.mrb[28].mxu0 }
 0x7c4   : > { %v2289_v27 = vpop.f32.mrb[29].mxu0  ;;  %v1395_v35 = vadd.f32 %v2085_v33, %v1394_v26  ;;  %v2107_v26 = vld [vmem:[%s2881_s7 + $0x70] sm:$0xff] }
 0x7c5   : > { %v1397_v34 = vpop.f32.mrb[30].mxu0 }
 0x7c6   : > { %v2290_v36 = vpop.f32.mrb[31].mxu0  ;;  %v1398_v37 = vadd.f32 %v2085_v33, %v1397_v34 }
 0x7c8   : > { %v1463_v38 = vpack.c.bf16 %v1398_v37, %v1395_v35 }
 0x7ca   : > { %2298 = vmatpush3.bf16.msra.mxu0 %v1463_v38 }
 0x7cb   : > { %2309 = vmatprep.subr.bf16.mxu0 %v2387_v3 }
 0x893   : > { %v1443_v15 = vpop.f32.mrb[28].mxu1 }
 0x894   : > { %v1449_v16 = vmul.f32 0.35355338, %v1443_v15  ;;  %v2295_v17 = vpop.f32.mrb[29].mxu1 }
 0x895   : > { %v1446_v20 = vpop.f32.mrb[30].mxu1 }
 0x896   : > { %v2296_v21 = vpop.f32.mrb[31].mxu1  ;;  %v1450_v22 = vadd.f32 %v1449_v16, %v2581_v52  ;;  %v2096_v16 = vld [vmem:[%s2882_s8 + $0x3] ss:$0 sm:$0xff] }
 0x898   : > { %v1451_v25 = vsel %vm804_vm3, %v1450_v22, -inf }
 0x899   : > { %1452 = vmax.xlane.f32.xlu0 %v1451_v25  ;;  %v2106_v25 = vld [vmem:[%s2881_s7 + $0x68] sm:$0xff] }
 0x926   : > { %v1453_v28 = vpop.xlane.xlu0 %1452 }
 0x927   : > { %v1454_v29 = vsub.f32 %v1450_v22, %v1453_v28  ;;  %v2105_v22 = vld [vmem:[%s2881_s7 + $0x60] sm:$0xff]  ;;  %v2108_v28 = vld [vmem:[%s2881_s7 + $0x78] sm:$0xff] }
 0x928   : > { %v1674_v27 = vpack.c.bf16 %v2106_v25, %v2105_v22 }
 0x929   : > { %v1455_v30 = vmul.f32 1.442695, %v1454_v29  ;;  %v1675_v29 = vpack.c.bf16 %v2108_v28, %v2107_v26 }
 0x92b   : > { %2369 = vpow2.f32 %v1455_v30 }
 0x935   : > { %v2370_v31 = vpop.eup %2369 }
 0x936   : > { %v1457_v32 = vsel %vm804_vm3, %v2370_v31, 0.0 }
 0x937   : > { %1458 = vadd.xlane.f32.xlu1 %v1457_v32 }
 0x9c4   : > { %v1459_v42 = vpop.xlane.xlu1 %1458 }
 0x9c5   : > { %2371 = vrcp.f32 %v1459_v42 }
 0x9cf   : > { %v2372_v43 = vpop.eup %2371 }
 0x9d0   : > { %v1461_v44 = vmul.f32 %v2372_v43, %v2370_v31 }
 0x9d2   : > { %v1462_v45 = vpack.c.bf16 %v1461_v44, %v1461_v44 }
 0x9d4   : > { %2300 = vmatmul.mubr.msk.bf16.vlgmr.msra.gmra.mrb[32].mxu0 %vm804_vm3, %v1462_v45 }
 0x9d5   : > { %2313 = vmatprep.mubr.msk.bf16.mxu0 %vm2388_vm0, %v2387_v3  ;;  %2310 = vmatpush3.bf16.msra.mxu0 %v1563_v48  ;;  %v1834_v48 = vpack.c.bf16 %v2114_v47, %v2114_v47 }
 0x9d6   : > { %2311 = vmatprep.subr.bf16.mxu0 %v2387_v3 }
 0x9d7   : > { %v1839_v49 = vsel %vm1144_vm4, %v1834_v48, 0 }
 0x9d9   : > { %2312 = vmatpush3.bf16.msra.mxu0 %v1564_v51 }
 0x9da   : > { %2325 = vmatprep.subr.bf16.mxu0 %v2387_v3 }
 0x9dc   : > { %2314 = vmatmul.mubr.msk.bf16.vlgmr.msra.gmra.mrb[36].mxu0 %vm589_vm1, %v2538_v24  ;;  %v2101_v24 = vld [vmem:[%s2880_s6 + $0x78] sm:$0xff] }
 0x9dd   : > { %2329 = vmatprep.mubr.msk.bf16.mxu0 %vm2388_vm0, %v2387_v3  ;;  %v1619_v63 = vpack.c.bf16 %v2101_v24, %v2100_v59  ;;  %2326 = vmatpush3.bf16.msra.mxu0 %v1674_v27 }
 0x9de   : > { %2327 = vmatprep.subr.bf16.mxu0 %v2387_v3 }
 0x9e1   : > { %2328 = vmatpush3.bf16.msra.mxu0 %v1675_v29 }
 0x9e2   : > { %2339 = vmatprep.subr.bf16.mxu0 %v2387_v3 }
 0x9e4   : > { %2330 = vmatmul.mubr.msk.bf16.vlgmr.msra.gmra.mrb[40].mxu0 %vm589_vm1, %v2529_v18 }
 0x9e5   : > { %2341 = vmatprep.mubr.msk.bf16.mxu0 %vm2388_vm0, %v2387_v3 }
 0xaa7   : > { %v1501_v55 = vpop.f32.mrb[32].mxu0 }
 0xaa8   : > { %v1507_v57 = vpack.c.bf16 %v1501_v55, %v1501_v55  ;;  %v2301_v58 = vpop.f32.mrb[33].mxu0 }
 0xaa9   : > { %v1504_v60 = vpop.f32.mrb[34].mxu0 }
 0xaaa   : > { %v2302_v62 = vpop.f32.mrb[35].mxu0  ;;  %2306 = vmatmul.mubr.msk.bf16.vlgmr.msra.gmra.mrb[32].mxu1 %vm749_vm2, %v1507_v57  ;;  %v2116_v60 = vld [vmem:[%s2886_s12] ss:$0 sm:$0xff] }
 0xaab   : > { %2318 = vmatpush3.bf16.msra.mxu1 %v1618_v56  ;;  %2321 = vmatprep.mubr.msk.bf16.mxu1 %vm2388_vm0, %v2387_v3 }
 0xaac   : > { %2319 = vmatprep.subr.bf16.mxu1 %v2387_v3 }
 0xaaf   : > { %2320 = vmatpush3.bf16.msra.mxu1 %v1619_v63  ;;  %v1607_v0 = vpop.f32.mrb[36].mxu0 }
 0xab0   : > { %2333 = vmatprep.subr.bf16.mxu1 %v2387_v3  ;;  %v2315_v1 = vpop.f32.mrb[37].mxu0 }
 0xab1   : > { %v1610_v2 = vpop.f32.mrb[38].mxu0 }
 0xab2   : > { %2322 = vmatmul.mubr.msk.bf16.vlgmr.msra.gmra.mrb[36].mxu1 %vm589_vm1, %v2536_v23  ;;  %v2316_v4 = vpop.f32.mrb[39].mxu0 }
 0xab3   : > { %2335 = vmatprep.mubr.msk.bf16.mxu1 %vm2388_vm0, %v2387_v3 }
 0xab7   : > { %v1718_v37 = vpop.f32.mrb[40].mxu0 }
 0xab8   : > { %v2331_v38 = vpop.f32.mrb[41].mxu0 }
 0xab9   : > { %v1721_v44 = vpop.f32.mrb[42].mxu0 }
 0xb7d   : > { %v1551_v5 = vpop.f32.mrb[32].mxu1 }
 0xb7e   : > { %v2810_v6 = vadd.f32 %v1551_v5, %v2729_v61  ;;  %v2307_v7 = vpop.f32.mrb[33].mxu1  ;;  %v1608_v61 = vadd.f32 %v2096_v16, %v1607_v0 }
 0xb7f   : > { %v1554_v8 = vpop.f32.mrb[34].mxu1 }
 0xb80   : > { %v2308_v9 = vpop.f32.mrb[35].mxu1  ;;  %v1725_v21 = vpack.c.bf16 %v1608_v61, %v1608_v61 }
 0xb85   : > { %v1662_v11 = vpop.f32.mrb[36].mxu1 }
 0xb86   : > { %v2323_v23 = vpop.f32.mrb[37].mxu1  ;;  %v1663_v13 = vadd.f32 %v2103_v10, %v1662_v11 }
 0xb87   : > { %v1665_v12 = vpop.f32.mrb[38].mxu1 }
 0xb88   : > { %v1666_v14 = vadd.f32 %v2103_v10, %v1665_v12  ;;  %v2324_v15 = vpop.f32.mrb[39].mxu1 }
 0xb89   : > { %v2118_v15 = vld [vmem:[%s2888_s14] ss:$0 sm:$0xff] }
 0xb8a   : > { %v1726_v17 = vpack.c.bf16 %v1666_v14, %v1663_v13 }
 0xb8c   : > { %v1731_v20 = vsel %vm749_vm2, %v1726_v17, 0 }
 0xb8d   : > { %2334 = vmatpush3.bf16.xpose.msra.mxu1 %v1731_v20 }
 0xb8e   : > { %2345 = vmatprep.subr.bf16.mxu1 %v2387_v3 }
 0xb94   : > { %2336 = vmatmul.mubr.msk.bf16.vlgmr.msra.gmra.mrb[40].mxu1 %vm749_vm2, %v1725_v21 }
 0xb95   : > { %2347 = vmatprep.mubr.msk.bf16.mxu1 %vm2388_vm0, %v2387_v3  ;;  %v2110_v3 = vld [vmem:[%s2884_s10 + $0x3] ss:$0 sm:$0xff]  ;;  %2346 = vmatpush3.bf16.msra.mxu1 %v1839_v49 }
 0xb96   : > { %v1719_v43 = vadd.f32 %v2110_v3, %v1718_v37  ;;  %v1722_v45 = vadd.f32 %v2110_v3, %v1721_v44 }
 0xb98   : > { %v1787_v46 = vpack.c.bf16 %v1722_v45, %v1719_v43 }
 0xb9a   : > { %2340 = vmatpush3.bf16.msra.mxu0 %v1787_v46 }
 0xc67   : > { %v1767_v30 = vpop.f32.mrb[40].mxu1 }
 0xc68   : > { %v1773_v31 = vmul.f32 0.35355338, %v1767_v30  ;;  %v2337_v32 = vpop.f32.mrb[41].mxu1 }
 0xc69   : > { %v1770_v33 = vpop.f32.mrb[42].mxu1 }
 0xc6a   : > { %v2338_v35 = vpop.f32.mrb[43].mxu1  ;;  %v1774_v34 = vadd.f32 %v1773_v31, %v2581_v52  ;;  %v2332_v52 = vpop.f32.mrb[43].mxu0 }
 0xc6c   : > { %v1775_v36 = vsel %vm804_vm3, %v1774_v34, -inf }
 0xc6d   : > { %1776 = vmax.xlane.f32.xlu0 %v1775_v36 }
 0xcfa   : > { %v1777_v39 = vpop.xlane.xlu0 %1776 }
 0xcfb   : > { %v1778_v40 = vsub.f32 %v1774_v34, %v1777_v39 }
 0xcfd   : > { %v1779_v41 = vmul.f32 1.442695, %v1778_v40 }
 0xcff   : > { %2373 = vpow2.f32 %v1779_v41 }
 0xd09   : > { %v2374_v18 = vpop.eup %2373 }
 0xd0a   : > { %v1781_v42 = vsel %vm804_vm3, %v2374_v18, 0.0 }
 0xd0b   : > { %1782 = vadd.xlane.f32.xlu1 %v1781_v42 }
 0xd98   : > { %v1783_v50 = vpop.xlane.xlu1 %1782 }
 0xd99   : > { %2375 = vrcp.f32 %v1783_v50 }
 0xda3   : > { %v2376_v51 = vpop.eup %2375 }
 0xda4   : > { %v1785_v53 = vmul.f32 %v2376_v51, %v2374_v18 }
 0xda6   : > { %v1786_v54 = vpack.c.bf16 %v1785_v53, %v1785_v53 }
 0xda8   : > { %2342 = vmatmul.mubr.msk.bf16.vlgmr.msra.gmra.mrb[44].mxu0 %vm804_vm3, %v1786_v54 }
 0xe7b   : > { %v1825_v55 = vpop.f32.mrb[44].mxu0 }
 0xe7c   : > { %v1831_v56 = vpack.c.bf16 %v1825_v55, %v1825_v55  ;;  %v2343_v57 = vpop.f32.mrb[45].mxu0 }
 0xe7d   : > { %v1828_v58 = vpop.f32.mrb[46].mxu0 }
 0xe7e   : > { %v2344_v59 = vpop.f32.mrb[47].mxu0  ;;  %2348 = vmatmul.mubr.msk.bf16.vlgmr.msra.gmra.mrb[44].mxu1 %vm749_vm2, %v1831_v56 }
 0xf51   : > { %v1875_v24 = vpop.f32.mrb[44].mxu1 }
 0xf52   : > { %v1881_v62 = vadd.f32 %v1875_v24, %v2810_v6  ;;  %v2349_v63 = vpop.f32.mrb[45].mxu1 }
 0xf53   : > { %v1878_v0 = vpop.f32.mrb[46].mxu1 }
 0xf54   : > { %v1889_v1 = vadd.f32 %v2116_v60, %v1881_v62  ;;  %v2350_v2 = vpop.f32.mrb[47].mxu1 }
 0xf56   : > { %v1890_v4 = vadd.f32 %v1889_v1, %v2531_v19  ;;  %v2117_v19 = vld [vmem:[%s2887_s13] ss:$0 sm:$0xff] }
 0xf58   : > { %v1893_v5 = vsel %vm589_vm1, %v1890_v4, 0.0 }
 0xf59   : > { %1894 = vadd.xlane.f32.xlu0 %v1893_v5 }
 0xfe6   : > { %v1895_v7 = vpop.xlane.xlu0 %1894 }
 0xfe7   : > { %v1897_v8 = vmul.f32 0.03125, %v1895_v7 }
 0xfe9   : > { %v1898_v9 = vsub.f32 %v1890_v4, %v1897_v8 }
 0xfeb   : > { %v1899_v10 = vmul.f32 %v1898_v9, %v1898_v9 }
 0xfed   : > { %v1900_v11 = vsel %vm589_vm1, %v1899_v10, 0.0 }
 0xfee   : > { %1901 = vadd.xlane.f32.xlu1 %v1900_v11 }
0x107b   : > { %v1902_v23 = vpop.xlane.xlu1 %1901 }
0x107c   : > { %v1903_v12 = vmul.f32 0.03125, %v1902_v23 }
0x107e   : > { %v1904_v6 = vadd.f32 1e-05, %v1903_v12 }
0x1080   : > { %2377 = vrsqrt.f32 %v1904_v6 }
0x108a   : > { %v2378_v13 = vpop.eup %2377 }
0x108b   : > { %v1906_v14 = vmul.f32 %v2378_v13, %v1898_v9 }
0x108d   : > { %v1913_v16 = vmul.f32 %v2117_v19, %v1906_v14 }
0x108f   : > { %v1920_v17 = vadd.f32 %v2118_v15, %v1913_v16 }
0x1091   : > { %1921 = vst.msk [vmem:[%s560_s16] sm:$0xff] %vm589_vm1, %v1920_v17 }
0x1092 PF: > { %s25_s18 = sadd.s32 1, %s2385_s18  }
0x1093   : > { %p22_p4 = scmp.ge.s32.totalorder %s25_s18, 4  }
0x1095   :  { %24 = sbr.rel (!%p22_p4) target bundleno = 1 (0x1), region = 143 }

</bundles_post_ra>
